<compile_context>
chip_gen: v6e
topology: v6e:2x2x1
jax: 0.10.0
libtpu: 0.0.40
codegen_flags: <defaults>
</compile_context>

<pallas_src>
import functools

import jax
import jax.numpy as jnp
from jax import lax
from jax.experimental import pallas as pl
from jax.experimental.pallas import tpu as pltpu


def _round_up(x, m):
    return (x + m - 1) // m * m


def _pick_band_rows(H, Wp, target_rows=256):
    """Largest divisor R of H such that a band has <= target_rows flat rows."""
    best = 1
    for r in range(1, H + 1):
        if H % r == 0 and r * Wp <= target_rows:
            best = r
    return best


def _vmem_limit_bytes():
    # Generation-aware budget: ~3/4 of physical VMEM (v5e/v6e 128 MiB -> 96,
    # v7x 64 MiB -> 48); conservative fallback if the query is unavailable.
    try:
        cap = int(pltpu.get_tpu_info().vmem_capacity_bytes)
        return min(cap * 3 // 4, 96 * 1024 * 1024)
    except Exception:
        return 48 * 1024 * 1024


# ----------------------------- Pallas kernel --------------------------------
def bottleneck_kernel(x_ref,
                      w1_ref, s1_ref, b1_ref,
                      w2_ref, s2_ref, b2_ref,
                      w3_ref, s3_ref, b3_ref,
                      out_ref, t1s_ref,
                      *, H, W, Wp, R):
    """Grid = (batch, band). One band = R output rows x full padded width Wp.

    x_ref  : (1, H+2, Wp, Cin)  zero-padded image (block is resident across the
                                bands of one batch step; no re-DMA per band).
    out_ref: (1, R, Wp, Cout)   padded-column-layout output band: column xp
                                holds output pixel column xp-1 (wrapper strips).
    t1s_ref: (8 + (R+2)*Wp + 8, Cmid) bf16 band scratch holding conv1 output;
             8 guard rows on each side keep all 9 conv2 tap windows in range
             (guards only ever feed stripped halo columns).
    """
    b = pl.program_id(1)
    Cin = x_ref.shape[-1]
    Cmid = w1_ref.shape[-1]
    Cout = w3_ref.shape[-1]
    PAD0 = 8
    M_in = (R + 2) * Wp          # conv1 rows for this band (1-row halo each side)
    M_out = R * Wp               # output rows for this band
    row0 = b * R                 # first padded x row consumed by this band

    # zero the guard rows (their values only reach stripped halo columns)
    zeros8 = jnp.zeros((PAD0, Cmid), jnp.bfloat16)
    t1s_ref[pl.ds(0, PAD0), :] = zeros8
    t1s_ref[pl.ds(PAD0 + M_in, PAD0), :] = zeros8

    # ---- conv1 (1x1) + bn1 + relu over the band (+ halo rows) ----------------
    xb = x_ref[:, pl.ds(row0, R + 2), :, :].reshape(M_in, Cin)
    t1 = jnp.dot(xb.astype(jnp.bfloat16), w1_ref[...],
                 preferred_element_type=jnp.float32)
    t1 = jnp.maximum(t1 * s1_ref[...] + b1_ref[...], 0.0)

    # in-kernel interior mask (true zero padding for conv2); iota comparisons
    # are cheap VPU filler and replace the old DMA'd (M,1) mask array.
    ri = lax.broadcasted_iota(jnp.int32, (R + 2, Wp, Cmid), 0) + row0
    ci = lax.broadcasted_iota(jnp.int32, (R + 2, Wp, Cmid), 1)
    interior = ((ri >= 1) & (ri <= H) & (ci >= 1) & (ci <= W)).reshape(M_in, Cmid)
    t1s_ref[pl.ds(PAD0, M_in), :] = jnp.where(interior, t1, 0.0).astype(jnp.bfloat16)

    # ---- conv2 (3x3, pad=1): 9 shifted flat windows of the band scratch ------
    # band-sized f32 accumulator stays register-resident; each window feeds a
    # full-width bf16 MXU matmul with f32 accumulation.
    acc = jnp.zeros((M_out, Cmid), jnp.float32)
    for dy in range(3):
        for dx in range(3):
            off = PAD0 - 1 + dy * Wp + dx        # static offset
            win = t1s_ref[pl.ds(off, M_out), :]  # (M_out, Cmid) bf16
            acc = acc + jnp.dot(win, w2_ref[dy * 3 + dx],
                                preferred_element_type=jnp.float32)
    t2 = jnp.maximum(acc * s2_ref[...] + b2_ref[...], 0.0)

    # ---- conv3 (1x1) + bn3 ----------------------------------------------------
    t3 = jnp.dot(t2.astype(jnp.bfloat16), w3_ref[...],
                 preferred_element_type=jnp.float32)
    t3 = t3 * s3_ref[...] + b3_ref[...]

    # ---- residual add + relu: sublane-aligned x read, aligned full-width store
    res = x_ref[:, pl.ds(row0 + 1, R), :, :].reshape(M_out, Cin)
    out_ref[...] = jnp.maximum(t3 + res, 0.0).reshape(1, R, Wp, Cout)


# ------------------------------ wrapper --------------------------------------
def bottleneck_pallas(x_nchw, kernel_params, band_rows=None):
    (w1, s1, b1, w2, s2, b2, w3, s3, b3) = kernel_params
    x = jnp.transpose(x_nchw, (0, 2, 3, 1)).astype(jnp.float32)   # NHWC, f32
    N, H, W, Cin = x.shape
    Cmid_p = w1.shape[1]
    Cout = w3.shape[1]
    assert Cout == Cin, "identity residual requires inplanes == planes * expansion"

    Wp = _round_up(W + 2, 8)                 # sublane-aligned padded width
    Hp = H + 2                               # 1-row conv halo top and bottom
    R = band_rows if band_rows is not None else _pick_band_rows(H, Wp)
    assert H % R == 0, "band_rows must divide H"
    num_bands = H // R

    # spatial zero pad (fuses with the NCHW->NHWC transpose in XLA)
    xp = jnp.pad(x, ((0, 0), (1, 1), (1, Wp - W - 1), (0, 0)))

    kernel = functools.partial(bottleneck_kernel, H=H, W=W, Wp=Wp, R=R)
    m_scratch = (R + 2) * Wp + 16

    grid_spec = pltpu.PrefetchScalarGridSpec(
        num_scalar_prefetch=0,
        grid=(N, num_bands),                 # batch x spatial band, both independent
        in_specs=[
            pl.BlockSpec((1, Hp, Wp, Cin), lambda n, b: (n, 0, 0, 0)),
            pl.BlockSpec(w1.shape, lambda n, b: (0, 0)),
            pl.BlockSpec(s1.shape, lambda n, b: (0, 0)),
            pl.BlockSpec(b1.shape, lambda n, b: (0, 0)),
            pl.BlockSpec(w2.shape, lambda n, b: (0, 0, 0)),
            pl.BlockSpec(s2.shape, lambda n, b: (0, 0)),
            pl.BlockSpec(b2.shape, lambda n, b: (0, 0)),
            pl.BlockSpec(w3.shape, lambda n, b: (0, 0)),
            pl.BlockSpec(s3.shape, lambda n, b: (0, 0)),
            pl.BlockSpec(b3.shape, lambda n, b: (0, 0)),
        ],
        # padded-column-layout output: aligned, full-lane-width stores
        out_specs=pl.BlockSpec((1, R, Wp, Cout), lambda n, b: (n, b, 0, 0)),
        scratch_shapes=[pltpu.VMEM((m_scratch, Cmid_p), jnp.bfloat16)],
    )

    out = pl.pallas_call(
        kernel,
        out_shape=jax.ShapeDtypeStruct((N, H, Wp, Cout), jnp.float32),
        grid_spec=grid_spec,
        compiler_params=pltpu.CompilerParams(
            dimension_semantics=("parallel", "parallel"),  # megacore on both axes
            vmem_limit_bytes=_vmem_limit_bytes(),
        ),
    )(xp, w1, s1, b1, w2, s2, b2, w3, s3, b3)

    out = out[:, :, 1:W + 1, :]              # strip the column padding (fuses below)
    return jnp.transpose(out, (0, 3, 1, 2))  # back to NCHW


# ------------------------- deterministic parameters --------------------------
def fold_bn(gamma, beta, mean, var, eps=1e-5):
    scale = gamma / jnp.sqrt(var + eps)
    bias = beta - mean * scale
    return scale, bias


def make_params(key, inplanes, planes):
    expansion = 4
    cout = planes * expansion
    assert cout == inplanes, "identity residual requires inplanes == planes * expansion"
    ks = jax.random.split(key, 6)

    # conv weights in PyTorch layout, then repacked
    w1_pt = jax.random.normal(ks[0], (planes, inplanes, 1, 1), jnp.float32) * 0.1
    w2_pt = jax.random.normal(ks[1], (planes, planes, 3, 3), jnp.float32) * 0.1
    w3_pt = jax.random.normal(ks[2], (cout, planes, 1, 1), jnp.float32) * 0.1

    def bn(k, c):
        kk = jax.random.split(k, 4)
        gamma = 1.0 + 0.1 * jax.random.normal(kk[0], (c,), jnp.float32)
        beta = 0.1 * jax.random.normal(kk[1], (c,), jnp.float32)
        mean = 0.1 * jax.random.normal(kk[2], (c,), jnp.float32)
        var = jnp.abs(jax.random.normal(kk[3], (c,), jnp.float32)) + 0.5
        return fold_bn(gamma, beta, mean, var)

    s1, b1 = bn(ks[3], planes)
    s2, b2 = bn(ks[4], planes)
    s3, b3 = bn(ks[5], cout)

    # ---- unpadded f32 params for the JAX reference ----
    w1 = jnp.transpose(w1_pt[:, :, 0, 0], (1, 0))               # (Cin, Cmid)
    w2_hwio = jnp.transpose(w2_pt, (2, 3, 1, 0))                # (3,3,Cmid,Cmid)
    w3 = jnp.transpose(w3_pt[:, :, 0, 0], (1, 0))               # (Cmid, Cout)
    ref_params = (w1, s1, b1, w2_hwio, s2, b2, w3, s3, b3)

    # ---- lane-padded / bf16-packed params for the Pallas kernel ----
    cmid_p = _round_up(planes, 128)                             # lane-dense mid channels
    pc = cmid_p - planes
    w1_k = jnp.pad(w1, ((0, 0), (0, pc))).astype(jnp.bfloat16)              # (Cin, Cmid_p)
    w2_k = jnp.pad(w2_hwio.reshape(9, planes, planes),
                   ((0, 0), (0, pc), (0, pc))).astype(jnp.bfloat16)         # (9, Cmid_p, Cmid_p)
    w3_k = jnp.pad(w3, ((0, pc), (0, 0))).astype(jnp.bfloat16)              # (Cmid_p, Cout)
    s1_k = jnp.pad(s1, (0, pc)).reshape(1, cmid_p)
    b1_k = jnp.pad(b1, (0, pc)).reshape(1, cmid_p)
    s2_k = jnp.pad(s2, (0, pc)).reshape(1, cmid_p)
    b2_k = jnp.pad(b2, (0, pc)).reshape(1, cmid_p)
    s3_k = s3.reshape(1, cout)
    b3_k = b3.reshape(1, cout)
    kernel_params = (w1_k, s1_k, b1_k, w2_k, s2_k, b2_k, w3_k, s3_k, b3_k)
    return kernel_params, ref_params


# ------------------------------ JAX reference ---------------------------------
def bottleneck_reference(x_nchw, ref_params):
    (w1, s1, b1, w2_hwio, s2, b2, w3, s3, b3) = ref_params
    x = jnp.transpose(x_nchw, (0, 2, 3, 1)).astype(jnp.float32)  # NHWC

    t1 = jnp.einsum('nhwc,co->nhwo', x.astype(jnp.bfloat16),
                    w1.astype(jnp.bfloat16),
                    preferred_element_type=jnp.float32)
    t1 = jnp.maximum(t1 * s1 + b1, 0.0)

    t2 = lax.conv_general_dilated(
        t1.astype(jnp.bfloat16), w2_hwio.astype(jnp.bfloat16),
        window_strides=(1, 1), padding='SAME',
        dimension_numbers=('NHWC', 'HWIO', 'NHWC'),
        preferred_element_type=jnp.float32)
    t2 = jnp.maximum(t2 * s2 + b2, 0.0)

    t3 = jnp.einsum('nhwc,co->nhwo', t2.astype(jnp.bfloat16),
                    w3.astype(jnp.bfloat16),
                    preferred_element_type=jnp.float32)
    t3 = t3 * s3 + b3

    out = jnp.maximum(t3 + x, 0.0)
    return jnp.transpose(out, (0, 3, 1, 2))


# --------------------------------- main ---------------------------------------
if __name__ == "__main__":
    key = jax.random.PRNGKey(0)
    k_x, k_p = jax.random.split(key)

    # small shapes: batch=2, inplanes=16, planes=4 (=> out channels 16), 16x16
    N, inplanes, H, W = 2, 16, 16, 16
    planes = 4

    x = jax.random.normal(k_x, (N, inplanes, H, W), jnp.float32)
    kernel_params, ref_params = make_params(k_p, inplanes, planes)

    ref = jax.block_until_ready(bottleneck_reference(x, ref_params))

    # default (auto) band size -> 2 bands at this shape
    out = jax.block_until_ready(bottleneck_pallas(x, kernel_params))
    assert out.shape == (N, planes * 4, H, W)
    err = float(jnp.max(jnp.abs(out - ref)))
    assert err < 5e-3, f"Pallas output mismatch vs reference (auto bands): max|err|={err}"

    # explicit smaller bands -> 4 bands, exercises the band tiling more heavily
    out2 = jax.block_until_ready(bottleneck_pallas(x, kernel_params, band_rows=4))
    err2 = float(jnp.max(jnp.abs(out2 - ref)))
    assert err2 < 5e-3, f"Pallas output mismatch vs reference (4 bands): max|err|={err2}"

    print("KERNEL_OK")
</pallas_src>

<mosaic_0001>
module attributes {stable_mosaic.version = 11 : i64} {
  func.func @bottleneck_kernel(%arg0: i32, %arg1: i32, %arg2: memref<1x18x24x16xf32, #tpu.memory_space<vmem>>, %arg3: memref<16x128xbf16, #tpu.memory_space<vmem>>, %arg4: memref<1x128xf32, #tpu.memory_space<vmem>>, %arg5: memref<1x128xf32, #tpu.memory_space<vmem>>, %arg6: memref<9x128x128xbf16, #tpu.memory_space<vmem>>, %arg7: memref<1x128xf32, #tpu.memory_space<vmem>>, %arg8: memref<1x128xf32, #tpu.memory_space<vmem>>, %arg9: memref<128x16xbf16, #tpu.memory_space<vmem>>, %arg10: memref<1x16xf32, #tpu.memory_space<vmem>>, %arg11: memref<1x16xf32, #tpu.memory_space<vmem>>, %arg12: memref<1x8x24x16xf32, #tpu.memory_space<vmem>>, %arg13: memref<256x128xbf16, #tpu.memory_space<vmem>>) attributes {dimension_semantics = [#tpu.dimension_semantics<parallel>, #tpu.dimension_semantics<parallel>], iteration_bounds = array<i64: 2, 2>, scalar_prefetch = 0 : i64, scratch_operands = 1 : i64, tpu.core_type = #tpu.core_type<tc>, window_params = [{transform_indices = @transform_0, window_bounds = array<i64: 1, 18, 24, 16>}, {pipeline_mode = #tpu.pipeline_mode<synchronous>, transform_indices = @transform_1, window_bounds = array<i64: 16, 128>}, {pipeline_mode = #tpu.pipeline_mode<synchronous>, transform_indices = @transform_2, window_bounds = array<i64: 1, 128>}, {pipeline_mode = #tpu.pipeline_mode<synchronous>, transform_indices = @transform_3, window_bounds = array<i64: 1, 128>}, {pipeline_mode = #tpu.pipeline_mode<synchronous>, transform_indices = @transform_4, window_bounds = array<i64: 9, 128, 128>}, {pipeline_mode = #tpu.pipeline_mode<synchronous>, transform_indices = @transform_5, window_bounds = array<i64: 1, 128>}, {pipeline_mode = #tpu.pipeline_mode<synchronous>, transform_indices = @transform_6, window_bounds = array<i64: 1, 128>}, {pipeline_mode = #tpu.pipeline_mode<synchronous>, transform_indices = @transform_7, window_bounds = array<i64: 128, 16>}, {pipeline_mode = #tpu.pipeline_mode<synchronous>, transform_indices = @transform_8, window_bounds = array<i64: 1, 16>}, {pipeline_mode = #tpu.pipeline_mode<synchronous>, transform_indices = @transform_9, window_bounds = array<i64: 1, 16>}, {transform_indices = @transform_10, window_bounds = array<i64: 1, 8, 24, 16>}]} {
    %c8_i32 = arith.constant 8 : i32
    %0 = arith.muli %arg1, %c8_i32 : i32
    %cst = arith.constant 0.000000e+00 : bf16
    %1 = vector.broadcast %cst : bf16 to vector<8x128xbf16>
    %c0 = arith.constant 0 : index
    %c0_0 = arith.constant 0 : index
    %2 = vector.load %arg13[%c0, %c0_0] : memref<256x128xbf16, #tpu.memory_space<vmem>>, vector<8x128xbf16>
    tpu.vector_store %arg13[%c0, %c0_0], %1 {strides = array<i32>} : memref<256x128xbf16, #tpu.memory_space<vmem>>, vector<8x128xbf16>,
    %c248 = arith.constant 248 : index
    %c0_1 = arith.constant 0 : index
    %3 = vector.load %arg13[%c248, %c0_1] : memref<256x128xbf16, #tpu.memory_space<vmem>>, vector<8x128xbf16>
    tpu.vector_store %arg13[%c248, %c0_1], %1 {strides = array<i32>} : memref<256x128xbf16, #tpu.memory_space<vmem>>, vector<8x128xbf16>,
    %c0_2 = arith.constant 0 : index
    %4 = arith.index_cast %0 : i32 to index
    %c0_3 = arith.constant 0 : index
    %c0_4 = arith.constant 0 : index
    %5 = vector.load %arg2[%c0_2, %4, %c0_3, %c0_4] : memref<1x18x24x16xf32, #tpu.memory_space<vmem>>, vector<1x10x24x16xf32>
    %6 = vector.shape_cast %5 : vector<1x10x24x16xf32> to vector<240x16xf32>
    %7 = arith.truncf %6 : vector<240x16xf32> to vector<240x16xbf16>
    %c0_5 = arith.constant 0 : index
    %c0_6 = arith.constant 0 : index
    %8 = vector.load %arg3[%c0_5, %c0_6] : memref<16x128xbf16, #tpu.memory_space<vmem>>, vector<16x128xbf16>
    %cst_7 = arith.constant dense<0.000000e+00> : vector<240x128xf32>
    %9 = tpu.matmul %7, %8, %cst_7 {dimension_numbers = #tpu.dot_dimension_numbers<[1], [0], [0], [1], [0, 0, 1, 1], [], []>} : vector<240x16xbf16>, vector<16x128xbf16>, vector<240x128xf32> -> vector<240x128xf32>
    %c0_8 = arith.constant 0 : index
    %c0_9 = arith.constant 0 : index
    %10 = vector.load %arg4[%c0_8, %c0_9] : memref<1x128xf32, #tpu.memory_space<vmem>>, vector<1x128xf32>
    %11 = vector.broadcast %10 : vector<1x128xf32> to vector<240x128xf32>
    %12 = arith.mulf %9, %11 : vector<240x128xf32>
    %c0_10 = arith.constant 0 : index
    %c0_11 = arith.constant 0 : index
    %13 = vector.load %arg5[%c0_10, %c0_11] : memref<1x128xf32, #tpu.memory_space<vmem>>, vector<1x128xf32>
    %14 = vector.broadcast %13 : vector<1x128xf32> to vector<240x128xf32>
    %15 = arith.addf %12, %14 : vector<240x128xf32>
    %cst_12 = arith.constant 0.000000e+00 : f32
    %16 = vector.broadcast %cst_12 : f32 to vector<240x128xf32>
    %17 = arith.maximumf %15, %16 : vector<240x128xf32>
    %18 = tpu.iota {dimensions = array<i32: 0>} : vector<10x24x128xi32>
    %19 = vector.broadcast %0 : i32 to vector<10x24x128xi32>
    %20 = arith.addi %18, %19 : vector<10x24x128xi32>
    %21 = tpu.iota {dimensions = array<i32: 1>} : vector<10x24x128xi32>
    %c1_i32 = arith.constant 1 : i32
    %22 = vector.broadcast %c1_i32 : i32 to vector<10x24x128xi32>
    %23 = arith.cmpi sge, %20, %22 : vector<10x24x128xi32>
    %c16_i32 = arith.constant 16 : i32
    %24 = vector.broadcast %c16_i32 : i32 to vector<10x24x128xi32>
    %25 = arith.cmpi sle, %20, %24 : vector<10x24x128xi32>
    %26 = arith.andi %23, %25 : vector<10x24x128xi1>
    %c1_i32_13 = arith.constant 1 : i32
    %27 = vector.broadcast %c1_i32_13 : i32 to vector<10x24x128xi32>
    %28 = arith.cmpi sge, %21, %27 : vector<10x24x128xi32>
    %29 = arith.andi %26, %28 : vector<10x24x128xi1>
    %c16_i32_14 = arith.constant 16 : i32
    %30 = vector.broadcast %c16_i32_14 : i32 to vector<10x24x128xi32>
    %31 = arith.cmpi sle, %21, %30 : vector<10x24x128xi32>
    %32 = arith.andi %29, %31 : vector<10x24x128xi1>
    %33 = vector.shape_cast %32 : vector<10x24x128xi1> to vector<240x128xi1>
    %cst_15 = arith.constant 0.000000e+00 : f32
    %34 = vector.broadcast %cst_15 : f32 to vector<240x128xf32>
    %35 = arith.select %33, %17, %34 : vector<240x128xi1>, vector<240x128xf32>
    %36 = arith.truncf %35 : vector<240x128xf32> to vector<240x128xbf16>
    %c8 = arith.constant 8 : index
    %c0_16 = arith.constant 0 : index
    %37 = vector.load %arg13[%c8, %c0_16] : memref<256x128xbf16, #tpu.memory_space<vmem>>, vector<240x128xbf16>
    tpu.vector_store %arg13[%c8, %c0_16], %36 {strides = array<i32>} : memref<256x128xbf16, #tpu.memory_space<vmem>>, vector<240x128xbf16>,
    %cst_17 = arith.constant 0.000000e+00 : f32
    %38 = vector.broadcast %cst_17 : f32 to vector<192x128xf32>
    %c7 = arith.constant 7 : index
    %c0_18 = arith.constant 0 : index
    %39 = vector.load %arg13[%c7, %c0_18] : memref<256x128xbf16, #tpu.memory_space<vmem>>, vector<192x128xbf16>
    %c0_19 = arith.constant 0 : index
    %c0_20 = arith.constant 0 : index
    %c0_21 = arith.constant 0 : index
    %40 = vector.load %arg6[%c0_19, %c0_20, %c0_21] : memref<9x128x128xbf16, #tpu.memory_space<vmem>>, vector<1x128x128xbf16>
    %41 = vector.shape_cast %40 : vector<1x128x128xbf16> to vector<128x128xbf16>
    %cst_22 = arith.constant dense<0.000000e+00> : vector<192x128xf32>
    %42 = tpu.matmul %39, %41, %cst_22 {dimension_numbers = #tpu.dot_dimension_numbers<[1], [0], [0], [1], [0, 0, 1, 1], [], []>} : vector<192x128xbf16>, vector<128x128xbf16>, vector<192x128xf32> -> vector<192x128xf32>
    %43 = arith.addf %38, %42 : vector<192x128xf32>
    %c8_23 = arith.constant 8 : index
    %c0_24 = arith.constant 0 : index
    %44 = vector.load %arg13[%c8_23, %c0_24] : memref<256x128xbf16, #tpu.memory_space<vmem>>, vector<192x128xbf16>
    %c1 = arith.constant 1 : index
    %c0_25 = arith.constant 0 : index
    %c0_26 = arith.constant 0 : index
    %45 = vector.load %arg6[%c1, %c0_25, %c0_26] : memref<9x128x128xbf16, #tpu.memory_space<vmem>>, vector<1x128x128xbf16>
    %46 = vector.shape_cast %45 : vector<1x128x128xbf16> to vector<128x128xbf16>
    %cst_27 = arith.constant dense<0.000000e+00> : vector<192x128xf32>
    %47 = tpu.matmul %44, %46, %cst_27 {dimension_numbers = #tpu.dot_dimension_numbers<[1], [0], [0], [1], [0, 0, 1, 1], [], []>} : vector<192x128xbf16>, vector<128x128xbf16>, vector<192x128xf32> -> vector<192x128xf32>
    %48 = arith.addf %43, %47 : vector<192x128xf32>
    %c9 = arith.constant 9 : index
    %c0_28 = arith.constant 0 : index
    %49 = vector.load %arg13[%c9, %c0_28] : memref<256x128xbf16, #tpu.memory_space<vmem>>, vector<192x128xbf16>
    %c2 = arith.constant 2 : index
    %c0_29 = arith.constant 0 : index
    %c0_30 = arith.constant 0 : index
    %50 = vector.load %arg6[%c2, %c0_29, %c0_30] : memref<9x128x128xbf16, #tpu.memory_space<vmem>>, vector<1x128x128xbf16>
    %51 = vector.shape_cast %50 : vector<1x128x128xbf16> to vector<128x128xbf16>
    %cst_31 = arith.constant dense<0.000000e+00> : vector<192x128xf32>
    %52 = tpu.matmul %49, %51, %cst_31 {dimension_numbers = #tpu.dot_dimension_numbers<[1], [0], [0], [1], [0, 0, 1, 1], [], []>} : vector<192x128xbf16>, vector<128x128xbf16>, vector<192x128xf32> -> vector<192x128xf32>
    %53 = arith.addf %48, %52 : vector<192x128xf32>
    %c31 = arith.constant 31 : index
    %c0_32 = arith.constant 0 : index
    %54 = vector.load %arg13[%c31, %c0_32] : memref<256x128xbf16, #tpu.memory_space<vmem>>, vector<192x128xbf16>
    %c3 = arith.constant 3 : index
    %c0_33 = arith.constant 0 : index
    %c0_34 = arith.constant 0 : index
    %55 = vector.load %arg6[%c3, %c0_33, %c0_34] : memref<9x128x128xbf16, #tpu.memory_space<vmem>>, vector<1x128x128xbf16>
    %56 = vector.shape_cast %55 : vector<1x128x128xbf16> to vector<128x128xbf16>
    %cst_35 = arith.constant dense<0.000000e+00> : vector<192x128xf32>
    %57 = tpu.matmul %54, %56, %cst_35 {dimension_numbers = #tpu.dot_dimension_numbers<[1], [0], [0], [1], [0, 0, 1, 1], [], []>} : vector<192x128xbf16>, vector<128x128xbf16>, vector<192x128xf32> -> vector<192x128xf32>
    %58 = arith.addf %53, %57 : vector<192x128xf32>
    %c32 = arith.constant 32 : index
    %c0_36 = arith.constant 0 : index
    %59 = vector.load %arg13[%c32, %c0_36] : memref<256x128xbf16, #tpu.memory_space<vmem>>, vector<192x128xbf16>
    %c4 = arith.constant 4 : index
    %c0_37 = arith.constant 0 : index
    %c0_38 = arith.constant 0 : index
    %60 = vector.load %arg6[%c4, %c0_37, %c0_38] : memref<9x128x128xbf16, #tpu.memory_space<vmem>>, vector<1x128x128xbf16>
    %61 = vector.shape_cast %60 : vector<1x128x128xbf16> to vector<128x128xbf16>
    %cst_39 = arith.constant dense<0.000000e+00> : vector<192x128xf32>
    %62 = tpu.matmul %59, %61, %cst_39 {dimension_numbers = #tpu.dot_dimension_numbers<[1], [0], [0], [1], [0, 0, 1, 1], [], []>} : vector<192x128xbf16>, vector<128x128xbf16>, vector<192x128xf32> -> vector<192x128xf32>
    %63 = arith.addf %58, %62 : vector<192x128xf32>
    %c33 = arith.constant 33 : index
    %c0_40 = arith.constant 0 : index
    %64 = vector.load %arg13[%c33, %c0_40] : memref<256x128xbf16, #tpu.memory_space<vmem>>, vector<192x128xbf16>
    %c5 = arith.constant 5 : index
    %c0_41 = arith.constant 0 : index
    %c0_42 = arith.constant 0 : index
    %65 = vector.load %arg6[%c5, %c0_41, %c0_42] : memref<9x128x128xbf16, #tpu.memory_space<vmem>>, vector<1x128x128xbf16>
    %66 = vector.shape_cast %65 : vector<1x128x128xbf16> to vector<128x128xbf16>
    %cst_43 = arith.constant dense<0.000000e+00> : vector<192x128xf32>
    %67 = tpu.matmul %64, %66, %cst_43 {dimension_numbers = #tpu.dot_dimension_numbers<[1], [0], [0], [1], [0, 0, 1, 1], [], []>} : vector<192x128xbf16>, vector<128x128xbf16>, vector<192x128xf32> -> vector<192x128xf32>
    %68 = arith.addf %63, %67 : vector<192x128xf32>
    %c55 = arith.constant 55 : index
    %c0_44 = arith.constant 0 : index
    %69 = vector.load %arg13[%c55, %c0_44] : memref<256x128xbf16, #tpu.memory_space<vmem>>, vector<192x128xbf16>
    %c6 = arith.constant 6 : index
    %c0_45 = arith.constant 0 : index
    %c0_46 = arith.constant 0 : index
    %70 = vector.load %arg6[%c6, %c0_45, %c0_46] : memref<9x128x128xbf16, #tpu.memory_space<vmem>>, vector<1x128x128xbf16>
    %71 = vector.shape_cast %70 : vector<1x128x128xbf16> to vector<128x128xbf16>
    %cst_47 = arith.constant dense<0.000000e+00> : vector<192x128xf32>
    %72 = tpu.matmul %69, %71, %cst_47 {dimension_numbers = #tpu.dot_dimension_numbers<[1], [0], [0], [1], [0, 0, 1, 1], [], []>} : vector<192x128xbf16>, vector<128x128xbf16>, vector<192x128xf32> -> vector<192x128xf32>
    %73 = arith.addf %68, %72 : vector<192x128xf32>
    %c56 = arith.constant 56 : index
    %c0_48 = arith.constant 0 : index
    %74 = vector.load %arg13[%c56, %c0_48] : memref<256x128xbf16, #tpu.memory_space<vmem>>, vector<192x128xbf16>
    %c7_49 = arith.constant 7 : index
    %c0_50 = arith.constant 0 : index
    %c0_51 = arith.constant 0 : index
    %75 = vector.load %arg6[%c7_49, %c0_50, %c0_51] : memref<9x128x128xbf16, #tpu.memory_space<vmem>>, vector<1x128x128xbf16>
    %76 = vector.shape_cast %75 : vector<1x128x128xbf16> to vector<128x128xbf16>
    %cst_52 = arith.constant dense<0.000000e+00> : vector<192x128xf32>
    %77 = tpu.matmul %74, %76, %cst_52 {dimension_numbers = #tpu.dot_dimension_numbers<[1], [0], [0], [1], [0, 0, 1, 1], [], []>} : vector<192x128xbf16>, vector<128x128xbf16>, vector<192x128xf32> -> vector<192x128xf32>
    %78 = arith.addf %73, %77 : vector<192x128xf32>
    %c57 = arith.constant 57 : index
    %c0_53 = arith.constant 0 : index
    %79 = vector.load %arg13[%c57, %c0_53] : memref<256x128xbf16, #tpu.memory_space<vmem>>, vector<192x128xbf16>
    %c8_54 = arith.constant 8 : index
    %c0_55 = arith.constant 0 : index
    %c0_56 = arith.constant 0 : index
    %80 = vector.load %arg6[%c8_54, %c0_55, %c0_56] : memref<9x128x128xbf16, #tpu.memory_space<vmem>>, vector<1x128x128xbf16>
    %81 = vector.shape_cast %80 : vector<1x128x128xbf16> to vector<128x128xbf16>
    %cst_57 = arith.constant dense<0.000000e+00> : vector<192x128xf32>
    %82 = tpu.matmul %79, %81, %cst_57 {dimension_numbers = #tpu.dot_dimension_numbers<[1], [0], [0], [1], [0, 0, 1, 1], [], []>} : vector<192x128xbf16>, vector<128x128xbf16>, vector<192x128xf32> -> vector<192x128xf32>
    %83 = arith.addf %78, %82 : vector<192x128xf32>
    %c0_58 = arith.constant 0 : index
    %c0_59 = arith.constant 0 : index
    %84 = vector.load %arg7[%c0_58, %c0_59] : memref<1x128xf32, #tpu.memory_space<vmem>>, vector<1x128xf32>
    %85 = vector.broadcast %84 : vector<1x128xf32> to vector<192x128xf32>
    %86 = arith.mulf %83, %85 : vector<192x128xf32>
    %c0_60 = arith.constant 0 : index
    %c0_61 = arith.constant 0 : index
    %87 = vector.load %arg8[%c0_60, %c0_61] : memref<1x128xf32, #tpu.memory_space<vmem>>, vector<1x128xf32>
    %88 = vector.broadcast %87 : vector<1x128xf32> to vector<192x128xf32>
    %89 = arith.addf %86, %88 : vector<192x128xf32>
    %cst_62 = arith.constant 0.000000e+00 : f32
    %90 = vector.broadcast %cst_62 : f32 to vector<192x128xf32>
    %91 = arith.maximumf %89, %90 : vector<192x128xf32>
    %92 = arith.truncf %91 : vector<192x128xf32> to vector<192x128xbf16>
    %c0_63 = arith.constant 0 : index
    %c0_64 = arith.constant 0 : index
    %93 = vector.load %arg9[%c0_63, %c0_64] : memref<128x16xbf16, #tpu.memory_space<vmem>>, vector<128x16xbf16>
    %cst_65 = arith.constant dense<0.000000e+00> : vector<192x16xf32>
    %94 = tpu.matmul %92, %93, %cst_65 {dimension_numbers = #tpu.dot_dimension_numbers<[1], [0], [0], [1], [0, 0, 1, 1], [], []>} : vector<192x128xbf16>, vector<128x16xbf16>, vector<192x16xf32> -> vector<192x16xf32>
    %c0_66 = arith.constant 0 : index
    %c0_67 = arith.constant 0 : index
    %95 = vector.load %arg10[%c0_66, %c0_67] : memref<1x16xf32, #tpu.memory_space<vmem>>, vector<1x16xf32>
    %96 = vector.broadcast %95 : vector<1x16xf32> to vector<192x16xf32>
    %97 = arith.mulf %94, %96 : vector<192x16xf32>
    %c0_68 = arith.constant 0 : index
    %c0_69 = arith.constant 0 : index
    %98 = vector.load %arg11[%c0_68, %c0_69] : memref<1x16xf32, #tpu.memory_space<vmem>>, vector<1x16xf32>
    %99 = vector.broadcast %98 : vector<1x16xf32> to vector<192x16xf32>
    %100 = arith.addf %97, %99 : vector<192x16xf32>
    %c1_i32_70 = arith.constant 1 : i32
    %101 = arith.addi %0, %c1_i32_70 : i32
    %c0_71 = arith.constant 0 : index
    %102 = arith.index_cast %101 : i32 to index
    %c0_72 = arith.constant 0 : index
    %c0_73 = arith.constant 0 : index
    %103 = vector.load %arg2[%c0_71, %102, %c0_72, %c0_73] : memref<1x18x24x16xf32, #tpu.memory_space<vmem>>, vector<1x8x24x16xf32>
    %104 = vector.shape_cast %103 : vector<1x8x24x16xf32> to vector<192x16xf32>
    %105 = arith.addf %100, %104 : vector<192x16xf32>
    %cst_74 = arith.constant 0.000000e+00 : f32
    %106 = vector.broadcast %cst_74 : f32 to vector<192x16xf32>
    %107 = arith.maximumf %105, %106 : vector<192x16xf32>
    %108 = vector.shape_cast %107 : vector<192x16xf32> to vector<1x8x24x16xf32>
    %c0_75 = arith.constant 0 : index
    %c0_76 = arith.constant 0 : index
    %c0_77 = arith.constant 0 : index
    %c0_78 = arith.constant 0 : index
    %109 = vector.load %arg12[%c0_75, %c0_76, %c0_77, %c0_78] : memref<1x8x24x16xf32, #tpu.memory_space<vmem>>, vector<1x8x24x16xf32>
    tpu.vector_store %arg12[%c0_75, %c0_76, %c0_77, %c0_78], %108 {strides = array<i32>} : memref<1x8x24x16xf32, #tpu.memory_space<vmem>>, vector<1x8x24x16xf32>,
    return
  }
  func.func @transform_0(%arg0: i32, %arg1: i32) -> (i32, i32, i32, i32) {
    %c0_i32 = arith.constant 0 : i32
    %c0_i32_0 = arith.constant 0 : i32
    %c0_i32_1 = arith.constant 0 : i32
    %c0_i32_2 = arith.constant 0 : i32
    return %arg0, %c0_i32, %c0_i32_0, %c0_i32_1 : i32, i32, i32, i32
  }
  func.func @transform_1(%arg0: i32, %arg1: i32) -> (i32, i32) {
    %c0_i32 = arith.constant 0 : i32
    %c0_i32_0 = arith.constant 0 : i32
    %c0_i32_1 = arith.constant 0 : i32
    return %c0_i32, %c0_i32_0 : i32, i32
  }
  func.func @transform_2(%arg0: i32, %arg1: i32) -> (i32, i32) {
    %c0_i32 = arith.constant 0 : i32
    %c0_i32_0 = arith.constant 0 : i32
    %c0_i32_1 = arith.constant 0 : i32
    return %c0_i32, %c0_i32_0 : i32, i32
  }
  func.func @transform_3(%arg0: i32, %arg1: i32) -> (i32, i32) {
    %c0_i32 = arith.constant 0 : i32
    %c0_i32_0 = arith.constant 0 : i32
    %c0_i32_1 = arith.constant 0 : i32
    return %c0_i32, %c0_i32_0 : i32, i32
  }
  func.func @transform_4(%arg0: i32, %arg1: i32) -> (i32, i32, i32) {
    %c0_i32 = arith.constant 0 : i32
    %c0_i32_0 = arith.constant 0 : i32
    %c0_i32_1 = arith.constant 0 : i32
    %c0_i32_2 = arith.constant 0 : i32
    return %c0_i32, %c0_i32_0, %c0_i32_1 : i32, i32, i32
  }
  func.func @transform_5(%arg0: i32, %arg1: i32) -> (i32, i32) {
    %c0_i32 = arith.constant 0 : i32
    %c0_i32_0 = arith.constant 0 : i32
    %c0_i32_1 = arith.constant 0 : i32
    return %c0_i32, %c0_i32_0 : i32, i32
  }
  func.func @transform_6(%arg0: i32, %arg1: i32) -> (i32, i32) {
    %c0_i32 = arith.constant 0 : i32
    %c0_i32_0 = arith.constant 0 : i32
    %c0_i32_1 = arith.constant 0 : i32
    return %c0_i32, %c0_i32_0 : i32, i32
  }
  func.func @transform_7(%arg0: i32, %arg1: i32) -> (i32, i32) {
    %c0_i32 = arith.constant 0 : i32
    %c0_i32_0 = arith.constant 0 : i32
    %c0_i32_1 = arith.constant 0 : i32
    return %c0_i32, %c0_i32_0 : i32, i32
  }
  func.func @transform_8(%arg0: i32, %arg1: i32) -> (i32, i32) {
    %c0_i32 = arith.constant 0 : i32
    %c0_i32_0 = arith.constant 0 : i32
    %c0_i32_1 = arith.constant 0 : i32
    return %c0_i32, %c0_i32_0 : i32, i32
  }
  func.func @transform_9(%arg0: i32, %arg1: i32) -> (i32, i32) {
    %c0_i32 = arith.constant 0 : i32
    %c0_i32_0 = arith.constant 0 : i32
    %c0_i32_1 = arith.constant 0 : i32
    return %c0_i32, %c0_i32_0 : i32, i32
  }
  func.func @transform_10(%arg0: i32, %arg1: i32) -> (i32, i32, i32, i32) {
    %c0_i32 = arith.constant 0 : i32
    %c0_i32_0 = arith.constant 0 : i32
    %c0_i32_1 = arith.constant 0 : i32
    return %arg0, %arg1, %c0_i32, %c0_i32_0 : i32, i32, i32, i32
  }
}

</mosaic_0001>

<bundles_post_ra>
// kernel: tpu_custom_call.1
= control target key start
LH: loop header
LB: loop body
LE: loop exit
PB: predicated region body
PF: predicated region fallthrough
CT: control target
= control target key end

     0   :  { %s6365_s13 = smov 0   ;;  %s6367_s14 = smov 0   ;;  %s8235_s0 = inlined_call_operand.vmem [shape: f32[2,18,24,16], index: 0, kind: input, shape index: {}]   ;;  %s8236_s1 = inlined_call_operand.vmem [shape: bf16[16,128], index: 1, kind: input, shape index: {}]   ;;  %s8237_s2 = inlined_call_operand.vmem [shape: f32[1,128], index: 2, kind: input, shape index: {}]   ;;  %s8238_s3 = inlined_call_operand.vmem [shape: f32[1,128], index: 3, kind: input, shape index: {}]   ;;  %s8239_s4 = inlined_call_operand.vmem [shape: bf16[9,128,128], index: 4, kind: input, shape index: {}]   ;;  %s8240_s5 = inlined_call_operand.vmem [shape: f32[1,128], index: 5, kind: input, shape index: {}]   ;;  %s8241_s6 = inlined_call_operand.vmem [shape: f32[1,128], index: 6, kind: input, shape index: {}]   ;;  %s8242_s7 = inlined_call_operand.vmem [shape: bf16[128,16], index: 7, kind: input, shape index: {}]   ;;  %s8243_s8 = inlined_call_operand.vmem [shape: f32[1,16], index: 8, kind: input, shape index: {}]   ;;  %s8244_s9 = inlined_call_operand.vmem [shape: f32[1,16], index: 9, kind: input, shape index: {}]   ;;  %s8245_s10 = inlined_call_operand.vmem [shape: f32[2,16,24,16], index: 10, kind: output, shape index: {}]  }
   0x1   :  { %s6369_s15 = smov 0   ;;  %s6371_s16 = smov 0  }
   0x2   :  { %s6373_s17 = smov 0  }
   0x3 LB: > { %s29_s18 = sadd.s32 1, %s6297_s15  ;;  %s32_s19 = sadd.s32 1, %s6301_s16  ;;  %s6305_s17 = sphi %s6373_s17, %s20_s17   ;;  %s6301_s16 = sphi %s6371_s16, %s8368_s16   ;;  %s6297_s15 = sphi %s6369_s15, %s8367_s15   ;;  %s6293_s14 = sphi %s6367_s14, %s8366_s14   ;;  %s6289_s13 = sphi %s6365_s13, %s8365_s13  }
   0x4   : > { %p30_p0 = scmp.ge.s32.totalorder %s29_s18, 2  ;;  %p4824_p1 = scmp.ge.s32.totalorder %s6305_s17, 1 }
   0x5   : > { %p326_p2 = scmp.lt.s32.totalorder %s6305_s17, 5 }
   0x6   : > { %s8370_s18 = smov (%p30_p0, %s29_s18), 0  ;;  %s8372_s19 = smov (!%p30_p0, %s32_s19), %s6301_s16 }
   0x7   : > { %p327_p3 = pnand %p4824_p1, %p326_p2  ;;  %p34_p4 = scmp.ge.s32.totalorder %s8372_s19, 2 }
   0x9   : > { %s8374_s19 = smov (%p34_p4, %s8372_s19), 0  ;;  %330 = sbr.rel (%p327_p3) target bundleno = 945 (0x3b1), region = 60 }
   0xe   : > { %v6070_v0 = vld [vmem:[%s8236_s1] sm:$0xff]   ;;  %v6307_v1 = vmov 0.0   ;;  %p369_p5 = scmp.lt.s32.totalorder %s6293_s14, 1  ;;  %vm6308_vm0 = vmmov 0   ;;  %s4829_s22 = smul.u32 192, %s6289_s13  ;;  %vm444_vm1 = vcmask 130048  }
   0xf   : > { %5562 = vmatprep.subr.bf16.mxu0 %v6307_v1  ;;  %5564 = vmatprep.mubr.msk.bf16.mxu0 %vm6308_vm0, %v6307_v1  ;;  %v6071_v31 = vld [vmem:[%s8239_s4 + $0x78] sm:$0xff]   ;;  %v6073_v33 = vld [vmem:[%s8239_s4 + $0x70] sm:$0xff]   ;;  %v6074_v36 = vld [vmem:[%s8239_s4 + $0x68] sm:$0xff]   ;;  %v6309_v37 = vmov 0   ;;  %s6546_s28 = sshll.u32 %s6289_s13, 3 }
  0x10   : > { %5563 = vmatpush3.bf16.msra.mxu0 %v6070_v0  ;;  %s8376_s14 = smov (!%p369_p5, %s6293_s14), 1  ;;  %5624 = vmatprep.subr.bf16.mxu1 %v6071_v31  ;;  %387 = vst [vmem:[#allocation2] sm:$0xf] %v6309_v37  ;;  %388 = vst [vmem:[#allocation2 + $0x7c] sm:$0xf] %v6309_v37  ;;  %v6072_v38 = vld [vmem:[%s8239_s4 + $0xb8] sm:$0xff]  }
  0x11   : > { %s6024_s23 = smul.u32 432, %s8376_s14  ;;  %5625 = vmatpush3.bf16.msra.mxu1 %v6071_v31  ;;  %5704 = vmatprep.subr.bf16.mxu0 %v6072_v38  ;;  %v6075_v40 = vld [vmem:[%s8239_s4 + $0x60] sm:$0xff]   ;;  %v6076_v43 = vld [vmem:[%s8239_s4 + $0x58] sm:$0xff]   ;;  %v6077_v44 = vld [vmem:[%s8239_s4 + $0xb0] sm:$0xff]   ;;  %p377_p6 = scmp.lt.s32.totalorder %s6546_s28, 15 }
  0x12   : > { %5626 = vmatprep.subr.bf16.mxu1 %v6073_v33  ;;  %v6078_v46 = vld [vmem:[%s8239_s4 + $0x50] sm:$0xff]   ;;  %v6079_v47 = vld [vmem:[%s8239_s4 + $0xa8] sm:$0xff]   ;;  %v6084_v51 = vld [vmem:[%s8239_s4 + $0xa0] sm:$0xff]   ;;  %s6026_s13 = smul.u32 48, %s8376_s14 }
  0x13   : > { %s373_s26 = scalar_lea.vmem %s8235_s0, %s6024_s23  ;;  %v6080_v50 = vld [vmem:[%s8239_s4 + $0x48] sm:$0xff]   ;;  %v6085_v53 = vld [vmem:[%s8239_s4 + $0x40] sm:$0xff]   ;;  %v6086_v54 = vld [vmem:[%s8239_s4 + $0x98] sm:$0xff]  }
  0x14   : > { %s6410_s27 = scalar_lea.vmem %s373_s26, %s4829_s22  ;;  %v6088_v57 = vld [vmem:[%s8239_s4 + $0x90] sm:$0xff]   ;;  %v6089_v59 = vld [vmem:[%s8239_s4 + $0x88] sm:$0xff]   ;;  %v6094_v63 = vld [vmem:[%s8239_s4 + $0x80] sm:$0xff]  }
  0x15   : > { %v391_v2 = vld [vmem:[%s6410_s27] sm:$0xff]  ;;  %v392_v3 = vld [vmem:[%s6410_s27 + $0x8] sm:$0xff]  ;;  %v393_v5 = vld [vmem:[%s6410_s27 + $0x10] sm:$0xff]  ;;  %5627 = vmatpush3.bf16.msra.mxu1 %v6073_v33 }
  0x16   : > { %v421_v4 = vpack.c.bf16 %v392_v3, %v391_v2  ;;  %v394_v6 = vld [vmem:[%s6410_s27 + $0x18] sm:$0xff]  ;;  %v395_v8 = vld [vmem:[%s6410_s27 + $0x20] sm:$0xff]  ;;  %v396_v9 = vld [vmem:[%s6410_s27 + $0x28] sm:$0xff]  ;;  %5628 = vmatprep.subr.bf16.mxu1 %v6074_v36  ;;  %v757_v2 = vlaneseq  ;;  %v6549_v3 = vstv %s6546_s28  ;;  %s8378_s28 = smov (!%p377_p6, %s6546_s28), 15 }
  0x17   : > { %v422_v7 = vpack.c.bf16 %v394_v6, %v393_v5  ;;  %v423_v10 = vpack.c.bf16 %v396_v9, %v395_v8  ;;  %v397_v11 = vld [vmem:[%s6410_s27 + $0x30] sm:$0xff]  ;;  %v398_v12 = vld [vmem:[%s6410_s27 + $0x38] sm:$0xff]  ;;  %v399_v14 = vld [vmem:[%s6410_s27 + $0x40] sm:$0xff]  ;;  %vm761_vm2 = vcmp.ge.s32.totalorder %v6549_v3, 1  ;;  %vm771_vm3 = vcmp.le.s32.totalorder %v6549_v3, 16  ;;  %s6025_s20 = smul.u32 3, %s8378_s28 }
  0x18   : > { %5565 = vmatmul.mubr.msk.bf16.vlgmr.msra.gmra.mxu0 %vm444_vm1, %v421_v4  ;;  %v424_v13 = vpack.c.bf16 %v398_v12, %v397_v11  ;;  %v400_v15 = vld [vmem:[%s6410_s27 + $0x48] sm:$0xff]  ;;  %v401_v17 = vld [vmem:[%s6410_s27 + $0x50] sm:$0xff]  ;;  %v402_v18 = vld [vmem:[%s6410_s27 + $0x58] sm:$0xff]  ;;  %v6551_v4 = vshrl.u32 %v757_v2, 7 }
  0x19   : > { %5568 = vmatprep.mubr.msk.bf16.mxu0 %vm6308_vm0, %v6307_v1  ;;  %v425_v16 = vpack.c.bf16 %v400_v15, %v399_v14  ;;  %v426_v19 = vpack.c.bf16 %v402_v18, %v401_v17  ;;  %v403_v20 = vld [vmem:[%s6410_s27 + $0x60] sm:$0xff]  ;;  %v404_v21 = vld [vmem:[%s6410_s27 + $0x68] sm:$0xff]  ;;  %v405_v23 = vld [vmem:[%s6410_s27 + $0x70] sm:$0xff]  ;;  %5629 = vmatpush3.bf16.msra.mxu1 %v6074_v36  ;;  %s381_s23 = sadd.s32 %s6026_s13, %s6025_s20 }
  0x1a   : > { %v427_v22 = vpack.c.bf16 %v404_v21, %v403_v20  ;;  %v406_v24 = vld [vmem:[%s6410_s27 + $0x78] sm:$0xff]  ;;  %v407_v26 = vld [vmem:[%s6410_s27 + $0x80] sm:$0xff]  ;;  %v408_v27 = vld [vmem:[%s6410_s27 + $0x88] sm:$0xff]  ;;  %5705 = vmatpush3.bf16.msra.mxu0 %v6072_v38  ;;  %5630 = vmatprep.subr.bf16.mxu1 %v6075_v40  ;;  %vm791_vm5 = vcmp.ge.s32.totalorder %v6551_v4, 1  ;;  %v6578_v15 = vadd.s32 16, %v6551_v4  ;;  %v749_v38 = vadd.s32 2, %v6549_v3 }
  0x1b   : > { %v428_v25 = vpack.c.bf16 %v406_v24, %v405_v23  ;;  %v429_v28 = vpack.c.bf16 %v408_v27, %v407_v26  ;;  %v409_v29 = vld [vmem:[%s6410_s27 + $0x90] sm:$0xff]  ;;  %v410_v30 = vld [vmem:[%s6410_s27 + $0x98] sm:$0xff]  ;;  %v411_v34 = vld [vmem:[%s6410_s27 + $0xa0] sm:$0xff]  ;;  %5706 = vmatprep.subr.bf16.mxu0 %v6077_v44  ;;  %v748_v23 = vadd.s32 1, %v6549_v3  ;;  %s4827_s14 = sshll.u32 %s381_s23, 3 }
  0x1c   : > { %v430_v32 = vpack.c.bf16 %v410_v30, %v409_v29  ;;  %v412_v35 = vld [vmem:[%s6410_s27 + $0xa8] sm:$0xff]  ;;  %v413_v41 = vld [vmem:[%s6410_s27 + $0xb0] sm:$0xff]  ;;  %v414_v42 = vld [vmem:[%s6410_s27 + $0xb8] sm:$0xff]  ;;  %vm826_vm7 = vcmp.le.s32.totalorder %v6578_v15, 16  ;;  %vm763_vm13 = vcmp.ge.s32.totalorder %v749_v38, 1  ;;  %vm773_vm14 = vcmp.le.s32.totalorder %v749_v38, 16  ;;  %s8105_s29 = scalar_lea.vmem %s8245_s10, %s4827_s14 }
  0x1d   : > { %v431_v39 = vpack.c.bf16 %v412_v35, %v411_v34  ;;  %5631 = vmatpush3.bf16.msra.mxu1 %v6075_v40  ;;  %v432_v45 = vpack.c.bf16 %v414_v42, %v413_v41  ;;  %v415_v48 = vld [vmem:[%s6410_s27 + $0xc0] sm:$0xff]  ;;  %v416_v49 = vld [vmem:[%s6410_s27 + $0xc8] sm:$0xff]  ;;  %v417_v55 = vld [vmem:[%s6410_s27 + $0xd0] sm:$0xff]  ;;  %vm762_vm9 = vcmp.ge.s32.totalorder %v748_v23, 1  ;;  %vm772_vm10 = vcmp.le.s32.totalorder %v748_v23, 16 }
  0x1e   : > { %5632 = vmatprep.subr.bf16.mxu1 %v6076_v43  ;;  %5707 = vmatpush3.bf16.msra.mxu0 %v6077_v44  ;;  %v433_v52 = vpack.c.bf16 %v416_v49, %v415_v48  ;;  %v418_v56 = vld [vmem:[%s6410_s27 + $0xd8] sm:$0xff]  ;;  %v419_v60 = vld [vmem:[%s6410_s27 + $0xe0] sm:$0xff]  ;;  %v420_v61 = vld [vmem:[%s6410_s27 + $0xe8] sm:$0xff]  ;;  %v750_v23 = vadd.s32 3, %v6549_v3 }
  0x1f   : > { %5708 = vmatprep.subr.bf16.mxu0 %v6079_v47  ;;  %v434_v58 = vpack.c.bf16 %v418_v56, %v417_v55  ;;  %v435_v62 = vpack.c.bf16 %v420_v61, %v419_v60  ;;  %v6536_v0 = vld [vmem:[%s8239_s4 + $0x38] sm:$0xff]   ;;  %v6556_v5 = vld [vmem:[%s8237_s2] ss:$0 sm:$0xff]  ;;  %vm6566_vm4 = vmand %vm761_vm2, %vm771_vm3  ;;  %vm1359_vm3 = vsmask.f32 4352 }
  0x20   : > { %5569 = vmatmul.mubr.msk.bf16.gmra.mxu0 %vm444_vm1, %v422_v7  ;;  %v6563_v7 = vld [vmem:[%s8238_s3] ss:$0 sm:$0xff]  ;;  %vm794_vm6 = vmand %vm6566_vm4, %vm791_vm5  ;;  %v1037_v35 = vld [vmem:[#allocation2] sm:$0x8] }
  0x21   : > { %5572 = vmatprep.mubr.msk.bf16.mxu0 %vm6308_vm0, %v6307_v1  ;;  %5633 = vmatpush3.bf16.msra.mxu1 %v6076_v43  ;;  %vm829_vm8 = vmand %vm6566_vm4, %vm826_vm7 }
  0x22   : > { %5634 = vmatprep.subr.bf16.mxu1 %v6078_v46  ;;  %5709 = vmatpush3.bf16.msra.mxu0 %v6079_v47  ;;  %vm6593_vm11 = vmand %vm762_vm9, %vm772_vm10  ;;  %vm774_vm9 = vcmp.le.s32.totalorder %v750_v23, 16 }
  0x23   : > { %5710 = vmatprep.subr.bf16.mxu0 %v6084_v51  ;;  %vm797_vm12 = vmand %vm6593_vm11, %vm791_vm5 }
  0x24   : > { %vm6608_vm15 = vmand %vm763_vm13, %vm773_vm14 }
  0x25   : > { %5635 = vmatpush3.bf16.msra.mxu1 %v6078_v46  ;;  %vm800_vm2 = vmand %vm6608_vm15, %vm791_vm5 }
  0x26   : > { %5636 = vmatprep.subr.bf16.mxu1 %v6080_v50  ;;  %5711 = vmatpush3.bf16.msra.mxu0 %v6084_v51 }
  0x27   : > { %5712 = vmatprep.subr.bf16.mxu0 %v6086_v54 }
  0x28   : > { %5573 = vmatmul.mubr.msk.bf16.gmra.mxu0 %vm444_vm1, %v423_v10 }
  0x29   : > { %5576 = vmatprep.mubr.msk.bf16.mxu0 %vm6308_vm0, %v6307_v1  ;;  %5637 = vmatpush3.bf16.msra.mxu1 %v6080_v50 }
  0x2a   : > { %5638 = vmatprep.subr.bf16.mxu1 %v6085_v53  ;;  %5713 = vmatpush3.bf16.msra.mxu0 %v6086_v54 }
  0x2b   : > { %5714 = vmatprep.subr.bf16.mxu0 %v6088_v57 }
  0x2d   : > { %5639 = vmatpush3.bf16.msra.mxu1 %v6085_v53  ;;  %v751_v53 = vadd.s32 4, %v6549_v3 }
  0x2e   : > { %5715 = vmatpush3.bf16.msra.mxu0 %v6088_v57  ;;  %5664 = vmatprep.subr.bf16.mxu1 %v6536_v0 }
  0x2f   : > { %5716 = vmatprep.subr.bf16.mxu0 %v6089_v59  ;;  %vm775_vm13 = vcmp.le.s32.totalorder %v751_v53, 16 }
  0x30   : > { %5577 = vmatmul.mubr.msk.bf16.gmra.mxu0 %vm444_vm1, %v424_v13 }
  0x31   : > { %5580 = vmatprep.mubr.msk.bf16.mxu0 %vm6308_vm0, %v6307_v1 }
  0x32   : > { %5717 = vmatpush3.bf16.msra.mxu0 %v6089_v59 }
  0x33   : > { %5718 = vmatprep.subr.bf16.mxu0 %v6094_v63 }
  0x36   : > { %5719 = vmatpush3.bf16.msra.mxu0 %v6094_v63 }
  0x38   : > { %5581 = vmatmul.mubr.msk.bf16.gmra.mxu0 %vm444_vm1, %v425_v16 }
  0x39   : > { %5584 = vmatprep.mubr.msk.bf16.mxu0 %vm6308_vm0, %v6307_v1 }
  0x40   : > { %5585 = vmatmul.mubr.msk.bf16.gmra.mxu0 %vm444_vm1, %v426_v19 }
  0x41   : > { %5588 = vmatprep.mubr.msk.bf16.mxu0 %vm6308_vm0, %v6307_v1 }
  0x48   : > { %5589 = vmatmul.mubr.msk.bf16.gmra.mxu0 %vm444_vm1, %v427_v22 }
  0x49   : > { %5592 = vmatprep.mubr.msk.bf16.mxu0 %vm6308_vm0, %v6307_v1 }
  0x50   : > { %5593 = vmatmul.mubr.msk.bf16.gmra.mxu0 %vm444_vm1, %v428_v25 }
  0x51   : > { %5596 = vmatprep.mubr.msk.bf16.mxu0 %vm6308_vm0, %v6307_v1 }
  0x58   : > { %5597 = vmatmul.mubr.msk.bf16.gmra.mxu0 %vm444_vm1, %v429_v28 }
  0x59   : > { %5600 = vmatprep.mubr.msk.bf16.mxu0 %vm6308_vm0, %v6307_v1 }
  0x60   : > { %5601 = vmatmul.mubr.msk.bf16.gmra.mxu0 %vm444_vm1, %v430_v32 }
  0x61   : > { %5604 = vmatprep.mubr.msk.bf16.mxu0 %vm6308_vm0, %v6307_v1 }
  0x68   : > { %5605 = vmatmul.mubr.msk.bf16.gmra.mxu0 %vm444_vm1, %v431_v39 }
  0x69   : > { %5608 = vmatprep.mubr.msk.bf16.mxu0 %vm6308_vm0, %v6307_v1 }
  0x70   : > { %5609 = vmatmul.mubr.msk.bf16.gmra.mxu0 %vm444_vm1, %v432_v45 }
  0x71   : > { %5612 = vmatprep.mubr.msk.bf16.mxu0 %vm6308_vm0, %v6307_v1 }
  0x78   : > { %5613 = vmatmul.mubr.msk.bf16.gmra.mxu0 %vm444_vm1, %v433_v52 }
  0x79   : > { %5616 = vmatprep.mubr.msk.bf16.mxu0 %vm6308_vm0, %v6307_v1 }
  0x80   : > { %5617 = vmatmul.mubr.msk.bf16.gmra.mxu0 %vm444_vm1, %v434_v58 }
  0x81   : > { %5620 = vmatprep.mubr.msk.bf16.mxu0 %vm6308_vm0, %v6307_v1  ;;  %v6542_v1 = vld [vmem:[%s8239_s4 + $0x138] sm:$0xff]   ;;  %vm6617_vm0 = vmand %vm6593_vm11, %vm826_vm7 }
  0x82   : > { %5784 = vmatprep.subr.bf16.mxu0 %v6542_v1 }
  0x88   : > { %5621 = vmatmul.mubr.msk.bf16.gmra.mxu0 %vm444_vm1, %v435_v62 }
  0xd8   : > { %v524_v6 = vpop.f32.mrf.mxu0 }
  0xd9   : > { %v650_v8 = vmul.f32 %v6556_v5, %v524_v6 }
  0xda   : > { %v5566_v10 = vpop.f32.mrf.mxu0 }
  0xdb   : > { %v687_v11 = vadd.f32 %v6563_v7, %v650_v8 }
  0xdc   : > { %v527_v12 = vpop.f32.mrf.mxu0 }
  0xdd   : > { %v717_v13 = vmax.f32 %v687_v11, 0.0  ;;  %v651_v14 = vmul.f32 %v6556_v5, %v527_v12 }
  0xde   : > { %v5567_v16 = vpop.f32.mrf.mxu0 }
  0xdf   : > { %v857_v17 = vsel %vm794_vm6, %v717_v13, 0.0  ;;  %v688_v18 = vadd.f32 %v6563_v7, %v651_v14  ;;  %vm6646_vm6 = vmand %vm6608_vm15, %vm826_vm7 }
  0xe0   : > { %v5232_v19 = vpack.c.bf16 %v857_v17, %v857_v17  ;;  %v532_v20 = vpop.f32.mrf.mxu0 }
  0xe1   : > { %v652_v21 = vmul.f32 %v6556_v5, %v532_v20  ;;  %v718_v24 = vmax.f32 %v688_v18, 0.0 }
  0xe2   : > { %1007 = vst [vmem:[#allocation2 + $0x4] sm:$0xf] %v5232_v19  ;;  %v5570_v22 = vpop.f32.mrf.mxu0 }
  0xe3   : > { %v689_v25 = vadd.f32 %v6563_v7, %v652_v21  ;;  %v858_v30 = vsel %vm6566_vm4, %v718_v24, 0.0  ;;  %vm1770_vm4 = vsmask.f32 7424 }
  0xe4   : > { %v535_v26 = vpop.f32.mrf.mxu0 }
  0xe5   : > { %v719_v27 = vmax.f32 %v689_v25, 0.0  ;;  %v653_v28 = vmul.f32 %v6556_v5, %v535_v26 }
  0xe6   : > { %v5571_v29 = vpop.f32.mrf.mxu0 }
  0xe7   : > { %v859_v31 = vsel %vm829_vm8, %v719_v27, 0.0  ;;  %v690_v32 = vadd.f32 %v6563_v7, %v653_v28  ;;  %vm764_vm8 = vcmp.ge.s32.totalorder %v750_v23, 1 }
  0xe8   : > { %v5265_v33 = vpack.c.bf16 %v859_v31, %v858_v30  ;;  %v540_v34 = vpop.f32.mrf.mxu0  ;;  %vm6663_vm10 = vmand %vm764_vm8, %vm774_vm9 }
  0xe9   : > { %v654_v37 = vmul.f32 %v6556_v5, %v540_v34  ;;  %v1038_v39 = vld [vmem:[#allocation2 + $0x4] sm:$0xf]  ;;  %v720_v41 = vmax.f32 %v690_v32, 0.0 }
  0xea   : > { %5332 = vst [vmem:[#allocation2 + $0x8] sm:$0xff] %v5265_v33   ;;  %v5574_v40 = vpop.f32.mrf.mxu0  ;;  %v4914_v44 = vcombine.low %v1037_v35, %v1038_v39  ;;  %v6108_v35 = vld [vmem:[%s8239_s4 + $0x30] sm:$0xff]  }
  0xeb   : > { %v691_v42 = vadd.f32 %v6563_v7, %v654_v37  ;;  %v860_v48 = vsel %vm797_vm12, %v720_v41, 0.0  ;;  %vm765_vm12 = vcmp.ge.s32.totalorder %v751_v53, 1 }
  0xec   : > { %v543_v43 = vpop.f32.mrf.mxu0  ;;  %v1361_v54 = vshrl.u32 %v4914_v44, 16  ;;  %v1364_v55 = vshll.u32 %v4914_v44, 16  ;;  %vm6703_vm14 = vmand %vm765_vm12, %vm775_vm13 }
  0xed   : > { %v721_v45 = vmax.f32 %v691_v42, 0.0  ;;  %v655_v46 = vmul.f32 %v6556_v5, %v543_v43 }
  0xee   : > { %v5575_v47 = vpop.f32.mrf.mxu0  ;;  %v1363_v9 = vrot.slane %v1361_v54, 3  ;;  %v1366_v10 = vrot.slane %v1364_v55, 4 }
  0xef   : > { %v861_v49 = vsel %vm6593_vm11, %v721_v45, 0.0  ;;  %v692_v50 = vadd.f32 %v6563_v7, %v655_v46  ;;  %vm6680_vm11 = vmand %vm6663_vm10, %vm791_vm5 }
  0xf0   : > { %v5270_v51 = vpack.c.bf16 %v861_v49, %v860_v48  ;;  %v548_v52 = vpop.f32.mrf.mxu0  ;;  %v1367_v26 = vor.u32 %v1366_v10, %v1363_v9  ;;  %v6116_v10 = vld [vmem:[%s8239_s4 + $0x20] sm:$0xff]  }
  0xf1   : > { %v656_v56 = vmul.f32 %v6556_v5, %v548_v52  ;;  %v1039_v57 = vld [vmem:[#allocation2 + $0x8] sm:$0xf]  ;;  %v1040_v58 = vld [vmem:[#allocation2 + $0xc] sm:$0xf]  ;;  %v722_v63 = vmax.f32 %v692_v50, 0.0 }
  0xf2   : > { %v6090_v59 = vld [vmem:[#allocation2 + $0x4] sm:$0xff]   ;;  %5333 = vst [vmem:[#allocation2 + $0x10] sm:$0xff] %v5270_v51   ;;  %v5578_v60 = vpop.f32.mrf.mxu0  ;;  %v4894_v61 = vcombine.low %v1038_v39, %v1039_v57  ;;  %v4915_v62 = vcombine.low %v1039_v57, %v1040_v58 }
  0xf3   : > { %v693_v6 = vadd.f32 %v6563_v7, %v656_v56  ;;  %v1774_v16 = vshll.u32 %v6090_v59, 16  ;;  %v862_v20 = vsel %vm6617_vm0, %v722_v63, 0.0  ;;  %v1772_v39 = vshrl.u32 %v6090_v59, 16  ;;  %v6112_v51 = vld [vmem:[%s8239_s4 + $0x28] sm:$0xff]   ;;  %vm6737_vm0 = vmand %vm6703_vm14, %vm791_vm5 }
  0xf4   : > { %v551_v8 = vpop.f32.mrf.mxu0  ;;  %5640 = vmatprep.mubr.bf16.mxu1 %v4894_v61  ;;  %v1369_v11 = vshrl.u32 %v4915_v62, 16  ;;  %v1372_v12 = vshll.u32 %v4915_v62, 16 }
  0xf5   : > { %v723_v13 = vmax.f32 %v693_v6, 0.0  ;;  %v657_v14 = vmul.f32 %v6556_v5, %v551_v8  ;;  %v1776_v31 = vrot.slane %v1774_v16, 1 }
  0xf6   : > { %v1371_v17 = vrot.slane %v1369_v11, 3  ;;  %v1374_v18 = vrot.slane %v1372_v12, 4  ;;  %v5579_v19 = vpop.f32.mrf.mxu0 }
  0xf7   : > { %v863_v21 = vsel %vm800_vm2, %v723_v13, 0.0  ;;  %v694_v22 = vadd.f32 %v6563_v7, %v657_v14  ;;  %v1777_v46 = vor.u32 %v1776_v31, %v1772_v39 }
  0xf8   : > { %v5275_v24 = vpack.c.bf16 %v863_v21, %v862_v20  ;;  %v556_v25 = vpop.f32.mrf.mxu0  ;;  %v6631_v27 = vor.u32 %v1374_v18, %v1371_v17 }
  0xf9   : > { %v658_v28 = vmul.f32 %v6556_v5, %v556_v25  ;;  %v1041_v29 = vld [vmem:[#allocation2 + $0x10] sm:$0xf]  ;;  %v1042_v34 = vld [vmem:[#allocation2 + $0x14] sm:$0xf]  ;;  %v724_v37 = vmax.f32 %v694_v22, 0.0 }
  0xfa   : > { %v6091_v30 = vld [vmem:[#allocation2 + $0xc] sm:$0xff]   ;;  %5334 = vst [vmem:[#allocation2 + $0x18] sm:$0xff] %v5275_v24   ;;  %v5582_v32 = vpop.f32.mrf.mxu0  ;;  %v4895_v33 = vcombine.low %v1040_v58, %v1041_v29  ;;  %v6639_v36 = vsel %vm1359_vm3, %v1367_v26, %v6631_v27  ;;  %v4916_v43 = vcombine.low %v1041_v29, %v1042_v34 }
  0xfb   : > { %v695_v38 = vadd.f32 %v6563_v7, %v658_v28  ;;  %v1779_v40 = vshll.u32 %v6091_v30, 16  ;;  %v864_v52 = vsel %vm6608_vm15, %v724_v37, 0.0  ;;  %v1783_v2 = vshrl.u32 %v6091_v30, 16  ;;  %v6118_v28 = vld [vmem:[%s8239_s4 + $0x18] sm:$0xff]   ;;  %v6122_v29 = vld [vmem:[%s8239_s4 + $0x130] sm:$0xff]   ;;  %v6125_v37 = vld [vmem:[%s8239_s4 + $0x128] sm:$0xff]  }
  0xfc   : > { %v559_v42 = vpop.f32.mrf.mxu0  ;;  %5641 = vmatmul.mubr.bf16.vlgmr.msra.gmra.mxu1 %v4895_v33  ;;  %v1378_v49 = vshrl.u32 %v4916_v43, 16  ;;  %v1381_v50 = vshll.u32 %v4916_v43, 16  ;;  %vm6726_vm15 = vmand %vm6663_vm10, %vm826_vm7  ;;  %v7042_v4 = vld [vmem:[#allocation2 + $0x10] sm:$0xf] }
  0xfd   : > { %v725_v44 = vmax.f32 %v695_v38, 0.0  ;;  %v659_v45 = vmul.f32 %v6556_v5, %v559_v42  ;;  %v1781_v47 = vrot.slane %v1779_v40, 1  ;;  %5665 = vmatpush3.bf16.msra.mxu1 %v6536_v0 }
  0xfe   : > { %v5583_v48 = vpop.f32.mrf.mxu0  ;;  %5666 = vmatprep.subr.bf16.mxu1 %v6108_v35  ;;  %v1380_v59 = vrot.slane %v1378_v49, 3  ;;  %v1383_v60 = vrot.slane %v1381_v50, 4 }
  0xff   : > { %v865_v54 = vsel %vm6646_vm6, %v725_v44, 0.0  ;;  %v696_v55 = vadd.f32 %v6563_v7, %v659_v45  ;;  %v1782_v56 = vsel %vm1770_vm4, %v1777_v46, %v1781_v47  ;;  %v1785_v18 = vor.u32 %v1783_v2, %v1781_v47  ;;  %v6123_v47 = vld [vmem:[%s8239_s4 + $0x10] sm:$0xff]   ;;  %v6128_v2 = vld [vmem:[%s8239_s4 + $0x8] sm:$0xff]   ;;  %vm6785_vm6 = vmand %vm6703_vm14, %vm826_vm7 }
 0x100   : > { %v5280_v57 = vpack.c.bf16 %v865_v54, %v864_v52  ;;  %v564_v58 = vpop.f32.mrf.mxu0  ;;  %5720 = vmatprep.mubr.bf16.mxu0 %v1782_v56  ;;  %v1384_v11 = vor.u32 %v1383_v60, %v1380_v59 }
 0x101   : > { %v660_v61 = vmul.f32 %v6556_v5, %v564_v58  ;;  %v1043_v62 = vld [vmem:[#allocation2 + $0x18] sm:$0xf]  ;;  %5667 = vmatpush3.bf16.msra.mxu1 %v6108_v35  ;;  %v1044_v9 = vld [vmem:[#allocation2 + $0x1c] sm:$0xf]  ;;  %v726_v12 = vmax.f32 %v696_v55, 0.0 }
 0x102   : > { %v6669_v63 = vld [vmem:[#allocation2 + $0x14] sm:$0xff]   ;;  %5335 = vst [vmem:[#allocation2 + $0x20] sm:$0xff] %v5280_v57   ;;  %v5586_v6 = vpop.f32.mrf.mxu0  ;;  %v4896_v8 = vcombine.low %v1042_v34, %v1043_v62  ;;  %5668 = vmatprep.subr.bf16.mxu1 %v6112_v51  ;;  %v4917_v16 = vcombine.low %v1043_v62, %v1044_v9  ;;  %v6686_v20 = vsel %vm1359_vm3, %v6631_v27, %v1384_v11  ;;  %v6742_v57 = vadd.s32 5, %v6549_v3 }
 0x103   : > { %v697_v13 = vadd.f32 %v6563_v7, %v660_v61  ;;  %v1787_v14 = vshll.u32 %v6669_v63, 16  ;;  %v866_v27 = vsel %vm6680_vm11, %v726_v12, 0.0  ;;  %v1791_v45 = vshrl.u32 %v6669_v63, 16  ;;  %v6129_v61 = vld [vmem:[%s8239_s4 + $0x120] sm:$0xff]  }
 0x104   : > { %v567_v19 = vpop.f32.mrf.mxu0  ;;  %5644 = vmatprep.mubr.bf16.mxu1 %v4896_v8  ;;  %v1387_v24 = vshrl.u32 %v4917_v16, 16  ;;  %v1390_v26 = vshll.u32 %v4917_v16, 16  ;;  %vm766_vm2 = vcmp.ge.s32.totalorder %v6742_v57, 1  ;;  %vm776_vm8 = vcmp.le.s32.totalorder %v6742_v57, 16 }
 0x105   : > { %v727_v21 = vmax.f32 %v697_v13, 0.0  ;;  %v661_v22 = vmul.f32 %v6556_v5, %v567_v19  ;;  %v1789_v23 = vrot.slane %v1787_v14, 1  ;;  %5669 = vmatpush3.bf16.msra.mxu1 %v6112_v51  ;;  %v6131_v14 = vld [vmem:[%s8239_s4 + $0x118] sm:$0xff]   ;;  %vm6818_vm9 = vmand %vm766_vm2, %vm776_vm8 }
 0x106   : > { %v5587_v25 = vpop.f32.mrf.mxu0  ;;  %5670 = vmatprep.subr.bf16.mxu1 %v6116_v10  ;;  %v1389_v38 = vrot.slane %v1387_v24, 3  ;;  %v1392_v39 = vrot.slane %v1390_v26, 4 }
 0x107   : > { %v867_v30 = vsel %vm6663_vm10, %v727_v21, 0.0  ;;  %v698_v31 = vadd.f32 %v6563_v7, %v661_v22  ;;  %v1790_v32 = vsel %vm1770_vm4, %v1785_v18, %v1789_v23  ;;  %v1793_v56 = vor.u32 %v1791_v45, %v1789_v23  ;;  %v6766_v18 = vld [vmem:[#allocation2 + $0x1c] sm:$0xf]  ;;  %v6136_v45 = vld [vmem:[%s8239_s4 + $0x110] sm:$0xff]   ;;  %vm6840_vm10 = vmand %vm6818_vm9, %vm791_vm5 }
 0x108   : > { %v5285_v33 = vpack.c.bf16 %v867_v30, %v866_v27  ;;  %v572_v34 = vpop.f32.mrf.mxu0  ;;  %5721 = vmatmul.mubr.bf16.vlgmr.msra.gmra.mxu0 %v1790_v32  ;;  %v6720_v48 = vor.u32 %v1392_v39, %v1389_v38  ;;  %v6791_v39 = vadd.s32 6, %v6549_v3 }
 0x109   : > { %v662_v40 = vmul.f32 %v6556_v5, %v572_v34  ;;  %v1045_v41 = vld [vmem:[#allocation2 + $0x20] sm:$0xf]  ;;  %5671 = vmatpush3.bf16.msra.mxu1 %v6116_v10  ;;  %5785 = vmatpush3.bf16.msra.mxu0 %v6542_v1  ;;  %v6715_v46 = vld [vmem:[#allocation2 + $0x24] sm:$0xf]  ;;  %v728_v49 = vmax.f32 %v698_v31, 0.0 }
 0x10a   : > { %v6711_v42 = vld [vmem:[#allocation2 + $0x1c] sm:$0xff]   ;;  %5336 = vst [vmem:[#allocation2 + $0x28] sm:$0xff] %v5285_v33   ;;  %v5590_v43 = vpop.f32.mrf.mxu0  ;;  %v4897_v44 = vcombine.low %v1044_v9, %v1045_v41  ;;  %5672 = vmatprep.subr.bf16.mxu1 %v6118_v28  ;;  %5786 = vmatprep.subr.bf16.mxu0 %v6122_v29  ;;  %v4918_v52 = vcombine.low %v1045_v41, %v6715_v46  ;;  %vm767_vm11 = vcmp.ge.s32.totalorder %v6791_v39, 1  ;;  %vm777_vm12 = vcmp.le.s32.totalorder %v6791_v39, 16 }
 0x10b   : > { %v699_v50 = vadd.f32 %v6563_v7, %v662_v40  ;;  %v1795_v51 = vshll.u32 %v6711_v42, 16  ;;  %v6746_v0 = vsel %vm1359_vm3, %v1384_v11, %v6720_v48  ;;  %v6755_v6 = vld [vmem:[#allocation2 + $0x20] sm:$0xf]  ;;  %v868_v8 = vsel %vm6726_vm15, %v728_v49, 0.0  ;;  %vm6865_vm13 = vmand %vm767_vm11, %vm777_vm12 }
 0x10c   : > { %v575_v55 = vpop.f32.mrf.mxu0  ;;  %5645 = vmatmul.mubr.bf16.gmra.mxu1 %v4897_v44  ;;  %v1396_v53 = vshrl.u32 %v4918_v52, 16  ;;  %v1399_v63 = vshll.u32 %v4918_v52, 16  ;;  %v5135_v23 = vcombine.low %v6766_v18, %v6755_v6  ;;  %v1799_v26 = vshrl.u32 %v6711_v42, 16  ;;  %vm812_vm15 = vmand %vm6865_vm13, %vm791_vm5 }
 0x10d   : > { %v729_v58 = vmax.f32 %v699_v50, 0.0  ;;  %v663_v59 = vmul.f32 %v6556_v5, %v575_v55  ;;  %v1797_v60 = vrot.slane %v1795_v51, 1  ;;  %5673 = vmatpush3.bf16.msra.mxu1 %v6118_v28  ;;  %5787 = vmatpush3.bf16.msra.mxu0 %v6122_v29  ;;  %v6135_v29 = vld [vmem:[%s8239_s4] sm:$0xff]  }
 0x10e   : > { %v5591_v62 = vpop.f32.mrf.mxu0  ;;  %5674 = vmatprep.subr.bf16.mxu1 %v6123_v47  ;;  %5788 = vmatprep.subr.bf16.mxu0 %v6125_v37  ;;  %v1398_v16 = vrot.slane %v1396_v53, 3  ;;  %v1401_v17 = vrot.slane %v1399_v63, 4 }
 0x10f   : > { %v869_v9 = vsel %vm6737_vm0, %v729_v58, 0.0  ;;  %v700_v10 = vadd.f32 %v6563_v7, %v663_v59  ;;  %v1798_v11 = vsel %vm1770_vm4, %v1793_v56, %v1797_v60  ;;  %v1801_v38 = vor.u32 %v1799_v26, %v1797_v60  ;;  %v6822_v59 = vld [vmem:[#allocation2 + $0x24] sm:$0xf]  ;;  %vm847_vm0 = vmand %vm6865_vm13, %vm826_vm7 }
 0x110   : > { %v5290_v12 = vpack.c.bf16 %v869_v9, %v868_v8  ;;  %v580_v13 = vpop.f32.mrf.mxu0  ;;  %5724 = vmatprep.mubr.bf16.mxu0 %v1798_v11  ;;  %v1402_v27 = vor.u32 %v1401_v17, %v1398_v16  ;;  %v6140_v8 = vld [vmem:[%s8239_s4 + $0x108] sm:$0xff]  }
 0x111   : > { %v664_v19 = vmul.f32 %v6556_v5, %v580_v13  ;;  %v1047_v21 = vld [vmem:[#allocation2 + $0x28] sm:$0xf]  ;;  %5675 = vmatpush3.bf16.msra.mxu1 %v6123_v47  ;;  %5789 = vmatpush3.bf16.msra.mxu0 %v6125_v37  ;;  %v1048_v28 = vld [vmem:[#allocation2 + $0x2c] sm:$0xf]  ;;  %v730_v30 = vmax.f32 %v700_v10, 0.0 }
 0x112   : > { %v6770_v22 = vld [vmem:[#allocation2 + $0x24] sm:$0xff]   ;;  %5337 = vst [vmem:[#allocation2 + $0x30] sm:$0xff] %v5290_v12   ;;  %v5594_v24 = vpop.f32.mrf.mxu0  ;;  %v4898_v25 = vcombine.low %v6715_v46, %v1047_v21  ;;  %5676 = vmatprep.subr.bf16.mxu1 %v6128_v2  ;;  %5790 = vmatprep.subr.bf16.mxu0 %v6129_v61  ;;  %v4919_v33 = vcombine.low %v1047_v21, %v1048_v28 }
 0x113   : > { %v701_v31 = vadd.f32 %v6563_v7, %v664_v19  ;;  %v1803_v32 = vshll.u32 %v6770_v22, 16  ;;  %v6795_v40 = vsel %vm1359_vm3, %v6720_v48, %v1402_v27  ;;  %v6804_v48 = vld [vmem:[%s8239_s4 + $0xf8] sm:$0xff]   ;;  %v6806_v49 = vld [vmem:[#allocation2 + $0x28] sm:$0xf]  ;;  %v870_v1 = vsel %vm6703_vm14, %v730_v30, 0.0  ;;  %v6145_v30 = vld [vmem:[%s8239_s4 + $0x100] sm:$0xff]  }
 0x114   : > { %v583_v37 = vpop.f32.mrf.mxu0  ;;  %5648 = vmatprep.mubr.bf16.mxu1 %v4898_v25  ;;  %v1405_v44 = vshrl.u32 %v4919_v33, 16  ;;  %v1408_v47 = vshll.u32 %v4919_v33, 16  ;;  %v1807_v63 = vshrl.u32 %v6770_v22, 16  ;;  %v5136_v10 = vcombine.low %v6822_v59, %v6806_v49  ;;  %vm6888_vm14 = vmand %vm6818_vm9, %vm826_vm7 }
 0x115   : > { %v731_v41 = vmax.f32 %v701_v31, 0.0  ;;  %v665_v42 = vmul.f32 %v6556_v5, %v583_v37  ;;  %v1805_v43 = vrot.slane %v1803_v32, 1  ;;  %5677 = vmatpush3.bf16.msra.mxu1 %v6128_v2  ;;  %5791 = vmatpush3.bf16.msra.mxu0 %v6129_v61 }
 0x116   : > { %v5595_v46 = vpop.f32.mrf.mxu0  ;;  %5792 = vmatprep.subr.bf16.mxu0 %v6131_v14  ;;  %5678 = vmatprep.subr.bf16.mxu1 %v6135_v29  ;;  %v1407_v35 = vrot.slane %v1405_v44, 3  ;;  %v1410_v58 = vrot.slane %v1408_v47, 4  ;;  %v6869_v44 = vld [vmem:[#allocation2 + $0x2c] sm:$0xf] }
 0x117   : > { %v871_v50 = vsel %vm6785_vm6, %v731_v41, 0.0  ;;  %v702_v51 = vadd.f32 %v6563_v7, %v665_v42  ;;  %v1806_v52 = vsel %vm1770_vm4, %v1801_v38, %v1805_v43  ;;  %v1809_v19 = vor.u32 %v1807_v63, %v1805_v43 }
 0x118   : > { %v5295_v54 = vpack.c.bf16 %v871_v50, %v870_v1  ;;  %v588_v56 = vpop.f32.mrf.mxu0  ;;  %5725 = vmatmul.mubr.bf16.gmra.mxu0 %v1806_v52  ;;  %v1411_v9 = vor.u32 %v1410_v58, %v1407_v35  ;;  %v6882_v52 = vld [vmem:[%s8239_s4 + $0x1b8] sm:$0xff]  }
 0x119   : > { %v666_v60 = vmul.f32 %v6556_v5, %v588_v56  ;;  %v1049_v53 = vld [vmem:[#allocation2 + $0x30] sm:$0xf]  ;;  %5793 = vmatpush3.bf16.msra.mxu0 %v6131_v14  ;;  %5679 = vmatpush3.bf16.msra.mxu1 %v6135_v29  ;;  %v1050_v2 = vld [vmem:[#allocation2 + $0x34] sm:$0xf]  ;;  %v732_v11 = vmax.f32 %v702_v51, 0.0 }
 0x11a   : > { %v6825_v61 = vld [vmem:[#allocation2 + $0x2c] sm:$0xff]   ;;  %5338 = vst [vmem:[#allocation2 + $0x38] sm:$0xff] %v5295_v54   ;;  %v5598_v62 = vpop.f32.mrf.mxu0  ;;  %v4899_v57 = vcombine.low %v1048_v28, %v1049_v53  ;;  %5794 = vmatprep.subr.bf16.mxu0 %v6136_v45  ;;  %5744 = vmatprep.subr.bf16.mxu1 %v6804_v48  ;;  %v4920_v14 = vcombine.low %v1049_v53, %v1050_v2 }
 0x11b   : > { %v703_v12 = vadd.f32 %v6563_v7, %v666_v60  ;;  %v1811_v13 = vshll.u32 %v6825_v61, 16  ;;  %v6847_v21 = vsel %vm1359_vm3, %v1402_v27, %v1411_v9  ;;  %v6853_v31 = vld [vmem:[#allocation2 + $0x30] sm:$0xf]  ;;  %v872_v32 = vsel %vm6840_vm10, %v732_v11, 0.0 }
 0x11c   : > { %v591_v17 = vpop.f32.mrf.mxu0  ;;  %5649 = vmatmul.mubr.bf16.gmra.mxu1 %v4899_v57  ;;  %v1414_v26 = vshrl.u32 %v4920_v14, 16  ;;  %v1417_v29 = vshll.u32 %v4920_v14, 16  ;;  %v5137_v1 = vcombine.low %v6869_v44, %v6853_v31  ;;  %v1815_v58 = vshrl.u32 %v6825_v61, 16 }
 0x11d   : > { %v733_v22 = vmax.f32 %v703_v12, 0.0  ;;  %v667_v24 = vmul.f32 %v6556_v5, %v591_v17  ;;  %v1813_v25 = vrot.slane %v1811_v13, 1  ;;  %5795 = vmatpush3.bf16.msra.mxu0 %v6136_v45  ;;  %v754_v17 = vadd.s32 7, %v6549_v3 }
 0x11e   : > { %v5599_v28 = vpop.f32.mrf.mxu0  ;;  %5796 = vmatprep.subr.bf16.mxu0 %v6140_v8  ;;  %v1416_v42 = vrot.slane %v1414_v26, 3  ;;  %v1419_v43 = vrot.slane %v1417_v29, 4 }
 0x11f   : > { %v873_v27 = vsel %vm6818_vm9, %v733_v22, 0.0  ;;  %v704_v33 = vadd.f32 %v6563_v7, %v667_v24  ;;  %v1814_v34 = vsel %vm1770_vm4, %v1809_v19, %v1813_v25  ;;  %v1817_v63 = vor.u32 %v1815_v58, %v1813_v25  ;;  %v6913_v22 = vld [vmem:[#allocation2 + $0x34] sm:$0xf] }
 0x120   : > { %v5300_v37 = vpack.c.bf16 %v873_v27, %v872_v32  ;;  %v596_v38 = vpop.f32.mrf.mxu0  ;;  %5728 = vmatprep.mubr.bf16.mxu0 %v1814_v34  ;;  %v6877_v51 = vor.u32 %v1419_v43, %v1416_v42  ;;  %vm768_vm2 = vcmp.ge.s32.totalorder %v754_v17, 1  ;;  %vm778_vm6 = vcmp.le.s32.totalorder %v754_v17, 16 }
 0x121   : > { %v668_v45 = vmul.f32 %v6556_v5, %v596_v38  ;;  %v6872_v46 = vld [vmem:[#allocation2 + $0x38] sm:$0xf]  ;;  %5797 = vmatpush3.bf16.msra.mxu0 %v6140_v8  ;;  %v734_v54 = vmax.f32 %v704_v33, 0.0  ;;  %v6911_v19 = vld [vmem:[#allocation2 + $0x3c] sm:$0xf]  ;;  %vm6934_vm8 = vmand %vm768_vm2, %vm778_vm6  ;;  %v756_v58 = vadd.s32 9, %v6549_v3 }
 0x122   : > { %v6109_v47 = vld [vmem:[#allocation2 + $0x34] sm:$0xff]   ;;  %5339 = vst [vmem:[#allocation2 + $0x40] sm:$0xff] %v5300_v37   ;;  %v5602_v39 = vpop.f32.mrf.mxu0  ;;  %v4900_v50 = vcombine.low %v1050_v2, %v6872_v46  ;;  %5798 = vmatprep.subr.bf16.mxu0 %v6145_v30  ;;  %v6900_v62 = vsel %vm1359_vm3, %v1411_v9, %v6877_v51  ;;  %vm815_vm9 = vmand %vm6934_vm8, %vm791_vm5  ;;  %v4921_v15 = vcombine.low %v6872_v46, %v6911_v19  ;;  %v7073_v46 = vld [vmem:[#allocation2 + $0x24] sm:$0xf] }
 0x123   : > { %v705_v35 = vadd.f32 %v6563_v7, %v668_v45  ;;  %v1819_v60 = vshll.u32 %v6109_v47, 16  ;;  %v6904_v61 = vld [vmem:[#allocation2 + $0x38] sm:$0xf]  ;;  %v874_v11 = vsel %vm6888_vm14, %v734_v54, 0.0  ;;  %v1823_v33 = vshrl.u32 %v6109_v47, 16 }
 0x124   : > { %v599_v53 = vpop.f32.mrf.mxu0  ;;  %5652 = vmatprep.mubr.bf16.mxu1 %v4900_v50  ;;  %v755_v50 = vadd.s32 8, %v6549_v3 }
 0x125   : > { %v735_v55 = vmax.f32 %v705_v35, 0.0  ;;  %v669_v57 = vmul.f32 %v6556_v5, %v599_v53  ;;  %v1821_v2 = vrot.slane %v1819_v60, 1  ;;  %5799 = vmatpush3.bf16.msra.mxu0 %v6145_v30 }
 0x126   : > { %v5603_v8 = vpop.f32.mrf.mxu0  ;;  %5864 = vmatprep.subr.bf16.mxu0 %v6882_v52  ;;  %vm769_vm10 = vcmp.ge.s32.totalorder %v755_v50, 1  ;;  %vm779_vm11 = vcmp.le.s32.totalorder %v755_v50, 16 }
 0x127   : > { %v875_v12 = vsel %vm812_vm15, %v735_v55, 0.0  ;;  %v706_v13 = vadd.f32 %v6563_v7, %v669_v57  ;;  %v1822_v9 = vsel %vm1770_vm4, %v1817_v63, %v1821_v2  ;;  %v1825_v43 = vor.u32 %v1823_v33, %v1821_v2  ;;  %v6941_v63 = vld [vmem:[#allocation2 + $0x3c] sm:$0xf]  ;;  %vm6961_vm12 = vmand %vm769_vm10, %vm779_vm11 }
 0x128   : > { %v5305_v14 = vpack.c.bf16 %v875_v12, %v874_v11  ;;  %v604_v16 = vpop.f32.mrf.mxu0  ;;  %5729 = vmatmul.mubr.bf16.gmra.mxu0 %v1822_v9  ;;  %vm818_vm14 = vmand %vm6961_vm12, %vm791_vm5  ;;  %vm770_vm15 = vcmp.ge.s32.totalorder %v756_v58, 1 }
 0x129   : > { %v670_v24 = vmul.f32 %v6556_v5, %v604_v16  ;;  %v6916_v25 = vld [vmem:[#allocation2 + $0x40] sm:$0xf]  ;;  %v736_v32 = vmax.f32 %v706_v13, 0.0  ;;  %v6939_v57 = vld [vmem:[#allocation2 + $0x44] sm:$0xf]  ;;  %vm853_vm2 = vmand %vm6961_vm12, %vm826_vm7 }
 0x12a   : > { %v6113_v26 = vld [vmem:[#allocation2 + $0x3c] sm:$0xff]   ;;  %5340 = vst [vmem:[#allocation2 + $0x48] sm:$0xff] %v5305_v14   ;;  %v5606_v29 = vpop.f32.mrf.mxu0  ;;  %v4901_v30 = vcombine.low %v6911_v19, %v6916_v25  ;;  %v1423_v19 = vshrl.u32 %v4921_v15, 16 }
 0x12b   : > { %v707_v27 = vadd.f32 %v6563_v7, %v670_v24  ;;  %v1827_v34 = vshll.u32 %v6113_v26, 16  ;;  %v6929_v54 = vld [vmem:[#allocation2 + $0x40] sm:$0xf]  ;;  %v876_v47 = vsel %vm6865_vm13, %v736_v32, 0.0  ;;  %v1831_v16 = vshrl.u32 %v6113_v26, 16  ;;  %vm850_vm13 = vmand %vm6934_vm8, %vm826_vm7 }
 0x12c   : > { %v607_v37 = vpop.f32.mrf.mxu0  ;;  %5653 = vmatmul.mubr.bf16.gmra.mxu1 %v4901_v30 }
 0x12d   : > { %v737_v38 = vmax.f32 %v707_v27, 0.0  ;;  %v671_v42 = vmul.f32 %v6556_v5, %v607_v37  ;;  %v1829_v45 = vrot.slane %v1827_v34, 1 }
 0x12e   : > { %v5607_v39 = vpop.f32.mrf.mxu0 }
 0x12f   : > { %v877_v56 = vsel %vm847_vm0, %v737_v38, 0.0  ;;  %v708_v35 = vadd.f32 %v6563_v7, %v671_v42  ;;  %v1830_v60 = vsel %vm1770_vm4, %v1825_v43, %v1829_v45  ;;  %v1833_v32 = vor.u32 %v1831_v16, %v1829_v45 }
 0x130   : > { %v5310_v53 = vpack.c.bf16 %v877_v56, %v876_v47  ;;  %v612_v55 = vpop.f32.mrf.mxu0  ;;  %5732 = vmatprep.mubr.bf16.mxu0 %v1830_v60  ;;  %v6968_v47 = vld [vmem:[#allocation2 + $0x44] sm:$0xf]  ;;  %vm780_vm0 = vcmp.le.s32.totalorder %v756_v58, 16  ;;  %v7065_v58 = vld [vmem:[#allocation2 + $0x1c] sm:$0xf] }
 0x131   : > { %v672_v2 = vmul.f32 %v6556_v5, %v612_v55  ;;  %v6944_v41 = vld [vmem:[#allocation2 + $0x48] sm:$0xf]  ;;  %v738_v9 = vmax.f32 %v708_v35, 0.0  ;;  %v6966_v45 = vld [vmem:[#allocation2 + $0x4c] sm:$0xf]  ;;  %vm7012_vm6 = vmand %vm770_vm15, %vm780_vm0 }
 0x132   : > { %v6117_v8 = vld [vmem:[#allocation2 + $0x44] sm:$0xff]   ;;  %5341 = vst [vmem:[#allocation2 + $0x50] sm:$0xff] %v5310_v53   ;;  %v5610_v12 = vpop.f32.mrf.mxu0  ;;  %v4902_v13 = vcombine.low %v6939_v57, %v6944_v41 }
 0x133   : > { %v709_v14 = vadd.f32 %v6563_v7, %v672_v2  ;;  %v1835_v17 = vshll.u32 %v6117_v8, 16  ;;  %v6956_v34 = vld [vmem:[#allocation2 + $0x48] sm:$0xf]  ;;  %v878_v37 = vsel %vm815_vm9, %v738_v9, 0.0  ;;  %v1839_v9 = vshrl.u32 %v6117_v8, 16 }
 0x134   : > { %v615_v24 = vpop.f32.mrf.mxu0  ;;  %5656 = vmatprep.mubr.bf16.mxu1 %v4902_v13 }
 0x135   : > { %v739_v29 = vmax.f32 %v709_v14, 0.0  ;;  %v673_v30 = vmul.f32 %v6556_v5, %v615_v24  ;;  %v1837_v27 = vrot.slane %v1835_v17, 1 }
 0x136   : > { %v5611_v33 = vpop.f32.mrf.mxu0 }
 0x137   : > { %v879_v26 = vsel %vm6934_vm8, %v739_v29, 0.0  ;;  %v710_v38 = vadd.f32 %v6563_v7, %v673_v30  ;;  %v1838_v43 = vsel %vm1770_vm4, %v1833_v32, %v1837_v27  ;;  %v1841_v29 = vor.u32 %v1839_v9, %v1837_v27  ;;  %v6266_v9 = vld [vmem:[%s8238_s3] ss:$0 sm:$0xff]  ;;  %vm7025_vm8 = vmand %vm7012_vm6, %vm791_vm5 }
 0x138   : > { %v5315_v39 = vpack.c.bf16 %v879_v26, %v878_v37  ;;  %v620_v50 = vpop.f32.mrf.mxu0  ;;  %5733 = vmatmul.mubr.bf16.gmra.mxu0 %v1838_v43  ;;  %vm856_vm5 = vmand %vm7012_vm6, %vm826_vm7 }
 0x139   : > { %v674_v56 = vmul.f32 %v6556_v5, %v620_v50  ;;  %v6971_v35 = vld [vmem:[#allocation2 + $0x50] sm:$0xf]  ;;  %v740_v12 = vmax.f32 %v710_v38, 0.0  ;;  %v6992_v50 = vld [vmem:[#allocation2 + $0x54] sm:$0xf] }
 0x13a   : > { %v6124_v60 = vld [vmem:[#allocation2 + $0x4c] sm:$0xff]   ;;  %5342 = vst [vmem:[#allocation2 + $0x58] sm:$0xff] %v5315_v39   ;;  %v5614_v55 = vpop.f32.mrf.mxu0  ;;  %v4903_v2 = vcombine.low %v6966_v45, %v6971_v35 }
 0x13b   : > { %v711_v13 = vadd.f32 %v6563_v7, %v674_v56  ;;  %v1843_v14 = vshll.u32 %v6124_v60, 16  ;;  %v6988_v33 = vld [vmem:[#allocation2 + $0x50] sm:$0xf]  ;;  %v880_v37 = vsel %vm850_vm13, %v740_v12, 0.0  ;;  %v6994_v56 = vld [vmem:[#allocation2 + $0x4c] sm:$0xf] }
 0x13c   : > { %v623_v16 = vpop.f32.mrf.mxu0  ;;  %5657 = vmatmul.mubr.bf16.gmra.mxu1 %v4903_v2 }
 0x13d   : > { %v741_v17 = vmax.f32 %v711_v13, 0.0  ;;  %v675_v24 = vmul.f32 %v6556_v5, %v623_v16  ;;  %v1845_v30 = vrot.slane %v1843_v14, 1  ;;  %v6265_v5 = vld [vmem:[%s8237_s2] ss:$0 sm:$0xff]  ;;  %v1847_v16 = vshrl.u32 %v6124_v60, 16 }
 0x13e   : > { %v5615_v32 = vpop.f32.mrf.mxu0 }
 0x13f   : > { %v881_v8 = vsel %vm818_vm14, %v741_v17, 0.0  ;;  %v712_v26 = vadd.f32 %v6563_v7, %v675_v24  ;;  %v1846_v38 = vsel %vm1770_vm4, %v1841_v29, %v1845_v30 }
 0x140   : > { %v5320_v43 = vpack.c.bf16 %v881_v8, %v880_v37  ;;  %v628_v39 = vpop.f32.mrf.mxu0  ;;  %5736 = vmatprep.mubr.bf16.mxu0 %v1846_v38  ;;  %v1849_v37 = vor.u32 %v1847_v16, %v1845_v30  ;;  %v7031_v16 = vld [vmem:[#allocation2 + $0x54] sm:$0xf] }
 0x141   : > { %v676_v3 = vmul.f32 %v6265_v5, %v628_v39  ;;  %v6999_v27 = vld [vmem:[#allocation2 + $0x58] sm:$0xf]  ;;  %v742_v13 = vmax.f32 %v712_v26, 0.0 }
 0x142   : > { %v6130_v55 = vld [vmem:[#allocation2 + $0x54] sm:$0xff]   ;;  %5343 = vst [vmem:[#allocation2 + $0x60] sm:$0xff] %v5320_v43   ;;  %v5618_v2 = vpop.f32.mrf.mxu0  ;;  %v4904_v12 = vcombine.low %v6992_v50, %v6999_v27 }
 0x143   : > { %v713_v14 = vadd.f32 %v6266_v9, %v676_v3  ;;  %v1851_v17 = vshll.u32 %v6130_v55, 16  ;;  %v7016_v38 = vld [vmem:[#allocation2 + $0x58] sm:$0xf]  ;;  %v882_v60 = vsel %vm6961_vm12, %v742_v13, 0.0 }
 0x144   : > { %v631_v24 = vpop.f32.mrf.mxu0  ;;  %5660 = vmatprep.mubr.bf16.mxu1 %v4904_v12 }
 0x145   : > { %v743_v29 = vmax.f32 %v713_v14, 0.0  ;;  %v677_v32 = vmul.f32 %v6265_v5, %v631_v24  ;;  %v1853_v8 = vrot.slane %v1851_v17, 1  ;;  %v7029_v14 = vld [vmem:[#allocation2 + $0x5c] sm:$0xf] }
 0x146   : > { %v5619_v26 = vpop.f32.mrf.mxu0 }
 0x147   : > { %v883_v43 = vsel %vm853_vm2, %v743_v29, 0.0  ;;  %v714_v39 = vadd.f32 %v6266_v9, %v677_v32  ;;  %v1854_v3 = vsel %vm1770_vm4, %v1849_v37, %v1853_v8  ;;  %v1855_v37 = vshrl.u32 %v6130_v55, 16  ;;  %v7044_v55 = vld [vmem:[#allocation2 + $0x14] sm:$0xf] }
 0x148   : > { %v5325_v2 = vpack.c.bf16 %v883_v43, %v882_v60  ;;  %v636_v30 = vpop.f32.mrf.mxu0  ;;  %5737 = vmatmul.mubr.bf16.gmra.mxu0 %v1854_v3 }
 0x149   : > { %v744_v42 = vmax.f32 %v714_v39, 0.0  ;;  %v678_v13 = vmul.f32 %v6265_v5, %v636_v30  ;;  %v7033_v17 = vld [vmem:[#allocation2 + $0x60] sm:$0xf]  ;;  %v6138_v26 = vld [vmem:[#allocation2 + $0x64] ss:$0 sps:$4 sm:$0x11]   ;;  %v1857_v30 = vor.u32 %v1855_v37, %v1853_v8 }
 0x14a   : > { %v6137_v24 = vld [vmem:[#allocation2 + $0x5c] sm:$0xff]   ;;  %5344 = vst [vmem:[#allocation2 + $0x68] sm:$0xff] %v5325_v2   ;;  %v5622_v29 = vpop.f32.mrf.mxu0  ;;  %v4905_v32 = vcombine.low %v7029_v14, %v7033_v17  ;;  %v1867_v7 = vshll.u32 %v6138_v26, 16 }
 0x14b   : > { %v715_v60 = vadd.f32 %v6266_v9, %v678_v13  ;;  %v1859_v43 = vshll.u32 %v6137_v24, 16  ;;  %v884_v3 = vsel %vm7025_vm8, %v744_v42, 0.0  ;;  %v1863_v29 = vshrl.u32 %v6137_v24, 16  ;;  %v6149_v24 = vld [vmem:[%s8239_s4 + $0xe8] sm:$0xff]   ;;  %v7071_v26 = vld [vmem:[#allocation2 + $0x20] sm:$0xf] }
 0x14c   : > { %v639_v39 = vpop.f32.mrf.mxu0  ;;  %5661 = vmatmul.mubr.bf16.gmra.mxu1 %v4905_v32  ;;  %v1869_v28 = vrot.slane %v1867_v7, 1  ;;  %v5025_v7 = vcombine.low %v7042_v4, %v7044_v55 }
 0x14d   : > { %v745_v53 = vmax.f32 %v715_v60, 0.0  ;;  %v679_v11 = vmul.f32 %v6265_v5, %v639_v39  ;;  %5680 = vmatprep.mubr.bf16.mxu1 %v6639_v36  ;;  %v1861_v2 = vrot.slane %v1859_v43, 1  ;;  %v6161_v60 = vld [vmem:[%s8239_s4 + $0x1b0] sm:$0xff]   ;;  %v6154_v43 = vld [vmem:[%s8239_s4 + $0xe0] sm:$0xff]   ;;  %v4923_v39 = vcombine.low %v6944_v41, %v6966_v45 }
 0x14e   : > { %v5623_v13 = vpop.f32.mrf.mxu0 }
 0x14f   : > { %v885_v12 = vsel %vm7012_vm6, %v745_v53, 0.0  ;;  %v716_v42 = vadd.f32 %v6266_v9, %v679_v11  ;;  %v1862_v32 = vsel %vm1770_vm4, %v1857_v30, %v1861_v2  ;;  %v1865_v8 = vor.u32 %v1863_v29, %v1861_v2  ;;  %v6146_v11 = vld [vmem:[%s8239_s4 + $0xf0] sm:$0xff]   ;;  %v6155_v29 = vld [vmem:[%s8239_s4 + $0xd8] sm:$0xff]   ;;  %v6165_v13 = vld [vmem:[%s8239_s4 + $0x1a8] sm:$0xff]  }
 0x150   : > { %v5330_v37 = vpack.c.bf16 %v885_v12, %v884_v3  ;;  %5740 = vmatprep.mubr.bf16.mxu0 %v1862_v32  ;;  %v4922_v3 = vcombine.low %v6916_v25, %v6939_v57  ;;  %v1425_v30 = vrot.slane %v1423_v19, 3  ;;  %v7100_v25 = vld [vmem:[#allocation2 + $0x2c] sm:$0xf]  ;;  %v7102_v57 = vld [vmem:[#allocation2 + $0x30] sm:$0xf]  ;;  %v1441_v12 = vshrl.u32 %v4923_v39, 16 }
 0x151   : > { %v746_v36 = vmax.f32 %v716_v42, 0.0  ;;  %v1870_v5 = vsel %vm1770_vm4, %v1865_v8, %v1869_v28  ;;  %v7063_v28 = vld [vmem:[#allocation2 + $0x18] sm:$0xf]  ;;  %v1444_v42 = vshll.u32 %v4923_v39, 16 }
 0x152   : > { %5345 = vst [vmem:[#allocation2 + $0x70] sm:$0xff] %v5330_v37   ;;  %5741 = vmatmul.mubr.bf16.gmra.mxu0 %v1870_v5  ;;  %v1432_v41 = vshrl.u32 %v4922_v3, 16  ;;  %v1435_v45 = vshll.u32 %v4922_v3, 16  ;;  %v4924_v5 = vcombine.low %v6971_v35, %v6992_v50  ;;  %v6172_v19 = vld [vmem:[%s8239_s4 + $0x198] sm:$0xff]  }
 0x153   : > { %v886_v53 = vsel %vm856_vm5, %v746_v36, 0.0  ;;  %5800 = vmatprep.mubr.bf16.mxu0 %v5025_v7  ;;  %v6162_v36 = vld [vmem:[%s8239_s4 + $0xd0] sm:$0xff]   ;;  %v7126_v35 = vld [vmem:[#allocation2 + $0x38] sm:$0xf]  ;;  %v7128_v50 = vld [vmem:[#allocation2 + $0x3c] sm:$0xf] }
 0x154   : > { %v5261_v9 = vpack.c.bf16 %v886_v53, %v886_v53  ;;  %5681 = vmatmul.mubr.bf16.vlgmr.msra.gmra.mxu1 %v6686_v20  ;;  %v1426_v20 = vshll.u32 %v4921_v15, 16  ;;  %v1434_v7 = vrot.slane %v1432_v41, 3  ;;  %v4925_v53 = vcombine.low %v6999_v27, %v7029_v14  ;;  %v7132_v27 = vld [vmem:[#allocation2 + $0x44] sm:$0xf] }
 0x155   : > { %5745 = vmatpush3.bf16.msra.mxu1 %v6804_v48  ;;  %5684 = vmatprep.mubr.bf16.mxu1 %v6746_v0  ;;  %v5026_v48 = vcombine.low %v7063_v28, %v7065_v58  ;;  %v5027_v0 = vcombine.low %v7071_v26, %v7073_v46  ;;  %v1453_v14 = vshll.u32 %v4924_v5, 16  ;;  %v5030_v3 = vcombine.low %v7126_v35, %v7128_v50 }
 0x156   : > { %1036 = vst [vmem:[#allocation2 + $0x78] sm:$0xf] %v5261_v9  ;;  %5746 = vmatprep.subr.bf16.mxu1 %v6146_v11  ;;  %v1428_v2 = vrot.slane %v1426_v20, 4  ;;  %v1443_v9 = vrot.slane %v1441_v12, 3  ;;  %v7130_v20 = vld [vmem:[#allocation2 + $0x40] sm:$0xf]  ;;  %v4926_v41 = vcombine.low %v7033_v17, %v7033_v17 }
 0x158   : > { %v1429_v8 = vor.u32 %v1428_v2, %v1425_v30  ;;  %v6176_v30 = vld [vmem:[%s8239_s4 + $0x190] sm:$0xff]  }
 0x159   : > { %5747 = vmatpush3.bf16.msra.mxu1 %v6146_v11  ;;  %v1437_v11 = vrot.slane %v1435_v45, 4 }
 0x15a   : > { %5801 = vmatmul.mubr.bf16.vlgmr.msra.gmra.mxu0 %v5026_v48  ;;  %5748 = vmatprep.subr.bf16.mxu1 %v6149_v24  ;;  %v1430_v15 = vsel %vm1359_vm3, %v6877_v51, %v1429_v8  ;;  %v6168_v51 = vld [vmem:[%s8239_s4 + $0xc8] sm:$0xff]  }
 0x15b   : > { %5804 = vmatprep.mubr.bf16.mxu0 %v5027_v0  ;;  %5865 = vmatpush3.bf16.msra.mxu0 %v6882_v52  ;;  %v7098_v52 = vld [vmem:[#allocation2 + $0x28] sm:$0xf]  ;;  %v1438_v48 = vor.u32 %v1437_v11, %v1434_v7  ;;  %v1462_v0 = vshll.u32 %v4925_v53, 16  ;;  %v7161_v11 = vld [vmem:[#allocation2 + $0x50] sm:$0xf] }
 0x15c   : > { %5685 = vmatmul.mubr.bf16.gmra.mxu1 %v6795_v40  ;;  %5866 = vmatprep.subr.bf16.mxu0 %v6161_v60  ;;  %v7104_v40 = vld [vmem:[#allocation2 + $0x34] sm:$0xf]  ;;  %v5028_v32 = vcombine.low %v7098_v52, %v7100_v25 }
 0x15d   : > { %5688 = vmatprep.mubr.bf16.mxu1 %v6847_v21  ;;  %5749 = vmatpush3.bf16.msra.mxu1 %v6149_v24  ;;  %v6169_v21 = vld [vmem:[%s8239_s4 + $0x1a0] sm:$0xff]   ;;  %v5029_v37 = vcombine.low %v7102_v57, %v7104_v40  ;;  %v1446_v24 = vrot.slane %v1444_v42, 4  ;;  %v1439_v45 = vsel %vm1359_vm3, %v1429_v8, %v1438_v48  ;;  %v1455_v42 = vrot.slane %v1453_v14, 4  ;;  %v7157_v8 = vld [vmem:[#allocation2 + $0x48] sm:$0xf] }
 0x15e   : > { %5750 = vmatprep.subr.bf16.mxu1 %v6154_v43  ;;  %v6184_v14 = vld [vmem:[%s8239_s4 + $0x180] sm:$0xff]  }
 0x15f   : > { %5867 = vmatpush3.bf16.msra.mxu0 %v6161_v60  ;;  %v1459_v60 = vshrl.u32 %v4925_v53, 16  ;;  %v1447_v39 = vor.u32 %v1446_v24, %v1443_v9  ;;  %v1468_v53 = vshrl.u32 %v4926_v41, 16 }
 0x160   : > { %5868 = vmatprep.subr.bf16.mxu0 %v6165_v13 }
 0x161   : > { %5751 = vmatpush3.bf16.msra.mxu1 %v6154_v43  ;;  %v2084_v43 = vld [vmem:[#allocation2 + $0xc] sm:$0x8] }
 0x162   : > { %5805 = vmatmul.mubr.bf16.gmra.mxu0 %v5028_v32  ;;  %5752 = vmatprep.subr.bf16.mxu1 %v6155_v29  ;;  %v4988_v2 = vcombine.low %v2084_v43, %v7042_v4  ;;  %v4989_v4 = vcombine.low %v7044_v55, %v7063_v28  ;;  %v1448_v32 = vsel %vm1359_vm3, %v1438_v48, %v1447_v39  ;;  %v7163_v55 = vld [vmem:[#allocation2 + $0x54] sm:$0xf]  ;;  %v7168_v28 = vld [vmem:[%s8239_s4 + $0x178] sm:$0xff]  }
 0x163   : > { %5808 = vmatprep.mubr.bf16.mxu0 %v5029_v37  ;;  %5869 = vmatpush3.bf16.msra.mxu0 %v6165_v13  ;;  %v6175_v13 = vld [vmem:[%s8239_s4 + $0xc0] sm:$0xff]   ;;  %v1464_v37 = vrot.slane %v1462_v0, 4  ;;  %v4990_v48 = vcombine.low %v7065_v58, %v7071_v26  ;;  %v3178_v0 = vld [vmem:[#allocation2 + $0x18] sm:$0x8]  ;;  %v1470_v58 = vrot.slane %v1468_v53, 3 }
 0x164   : > { %5689 = vmatmul.mubr.bf16.gmra.mxu1 %v6900_v62  ;;  %5870 = vmatprep.subr.bf16.mxu0 %v6169_v21  ;;  %v1450_v62 = vshrl.u32 %v4924_v5, 16  ;;  %v2190_v17 = vshrl.u32 %v4988_v2, 16  ;;  %v7159_v5 = vld [vmem:[#allocation2 + $0x4c] sm:$0xf]  ;;  %v2193_v7 = vshll.u32 %v4988_v2, 16  ;;  %v2198_v24 = vshrl.u32 %v4989_v4, 16 }
 0x165   : > { %5692 = vmatprep.mubr.bf16.mxu1 %v1430_v15  ;;  %5753 = vmatpush3.bf16.msra.mxu1 %v6155_v29  ;;  %v5031_v29 = vcombine.low %v7130_v20, %v7132_v27  ;;  %v1471_v15 = vshll.u32 %v4926_v41, 16  ;;  %v4991_v2 = vcombine.low %v7073_v46, %v7098_v52  ;;  %v2207_v46 = vshrl.u32 %v4990_v48, 16 }
 0x166   : > { %5754 = vmatprep.subr.bf16.mxu1 %v6162_v36  ;;  %v1452_v12 = vrot.slane %v1450_v62, 3  ;;  %v2192_v43 = vrot.slane %v2190_v17, 3  ;;  %v2200_v41 = vrot.slane %v2198_v24, 3  ;;  %v2210_v52 = vshll.u32 %v4990_v48, 16 }
 0x167   : > { %5871 = vmatpush3.bf16.msra.mxu0 %v6169_v21  ;;  %v1461_v21 = vrot.slane %v1459_v60, 3  ;;  %v5033_v60 = vcombine.low %v7161_v11, %v7163_v55  ;;  %v1473_v26 = vrot.slane %v1471_v15, 4  ;;  %v2216_v17 = vshrl.u32 %v4991_v2, 16 }
 0x168   : > { %5872 = vmatprep.subr.bf16.mxu0 %v6172_v19  ;;  %v1456_v9 = vor.u32 %v1455_v42, %v1452_v12  ;;  %v5098_v12 = vcombine.low %v3178_v0, %v6766_v18  ;;  %v7190_v42 = vld [vmem:[%s8239_s4 + $0x238] sm:$0xff]   ;;  %v2209_v48 = vrot.slane %v2207_v46, 3 }
 0x169   : > { %5755 = vmatpush3.bf16.msra.mxu1 %v6162_v36  ;;  %v6181_v36 = vld [vmem:[%s8239_s4 + $0x188] sm:$0xff]   ;;  %v1465_v62 = vor.u32 %v1464_v37, %v1461_v21  ;;  %v7198_v21 = vld [vmem:[#allocation2 + $0x64] sm:$0xf]  ;;  %v1474_v53 = vor.u32 %v1473_v26, %v1470_v58  ;;  %v2218_v26 = vrot.slane %v2216_v17, 3 }
 0x16a   : > { %5809 = vmatmul.mubr.bf16.gmra.mxu0 %v5030_v3  ;;  %5756 = vmatprep.subr.bf16.mxu1 %v6168_v51  ;;  %v2195_v3 = vrot.slane %v2193_v7, 4  ;;  %v2219_v7 = vshll.u32 %v4991_v2, 16  ;;  %v5101_v2 = vcombine.low %v6853_v31, %v6913_v22 }
 0x16b   : > { %5812 = vmatprep.mubr.bf16.mxu0 %v5031_v29  ;;  %5873 = vmatpush3.bf16.msra.mxu0 %v6172_v19  ;;  %v2201_v19 = vshll.u32 %v4989_v4, 16  ;;  %v1457_v29 = vsel %vm1359_vm3, %v1447_v39, %v1456_v9  ;;  %v7192_v39 = vld [vmem:[#allocation2 + $0x58] sm:$0xf]  ;;  %v7194_v4 = vld [vmem:[#allocation2 + $0x5c] sm:$0xf]  ;;  %v1475_v58 = vsel %vm1359_vm3, %v1465_v62, %v1474_v53 }
 0x16c   : > { %5693 = vmatmul.mubr.bf16.gmra.mxu1 %v1439_v45  ;;  %5874 = vmatprep.subr.bf16.mxu0 %v6176_v30  ;;  %v2196_v15 = vor.u32 %v2195_v3, %v2192_v43  ;;  %v4992_v43 = vcombine.low %v7100_v25, %v7102_v57  ;;  %v7215_v25 = vld [vmem:[#allocation2 + $0x68] sm:$0xf]  ;;  %v7217_v57 = vld [vmem:[#allocation2 + $0x6c] sm:$0xf] }
 0x16d   : > { %5696 = vmatprep.mubr.bf16.mxu1 %v1448_v32  ;;  %5757 = vmatpush3.bf16.msra.mxu1 %v6168_v51  ;;  %v5032_v51 = vcombine.low %v7157_v8, %v7159_v5  ;;  %v2203_v45 = vrot.slane %v2201_v19, 4  ;;  %v7196_v32 = vld [vmem:[#allocation2 + $0x60] sm:$0xf]  ;;  %v3284_v19 = vshrl.u32 %v5098_v12, 16 }
 0x16e   : > { %5758 = vmatprep.subr.bf16.mxu1 %v6175_v13  ;;  %v5035_v0 = vcombine.low %v7196_v32, %v7198_v21  ;;  %v2228_v53 = vshll.u32 %v4992_v43, 16 }
 0x16f   : > { %5875 = vmatpush3.bf16.msra.mxu0 %v6176_v30  ;;  %v5099_v30 = vcombine.low %v6755_v6, %v6822_v59  ;;  %v2204_v24 = vor.u32 %v2203_v45, %v2200_v41  ;;  %v3286_v45 = vrot.slane %v3284_v19, 3 }
 0x170   : > { %5876 = vmatprep.subr.bf16.mxu0 %v6181_v36 }
 0x171   : > { %5759 = vmatpush3.bf16.msra.mxu1 %v6175_v13  ;;  %v1466_v13 = vsel %vm1359_vm3, %v1456_v9, %v1465_v62  ;;  %v3292_v37 = vshrl.u32 %v5099_v30, 16  ;;  %v5034_v9 = vcombine.low %v7192_v39, %v7194_v4  ;;  %v2205_v41 = vsel %vm1359_vm3, %v2196_v15, %v2204_v24 }
 0x172   : > { %5813 = vmatmul.mubr.bf16.gmra.mxu0 %v5032_v51  ;;  %5824 = vmatprep.subr.bf16.mxu1 %v7168_v28  ;;  %v3287_v51 = vshll.u32 %v5098_v12, 16  ;;  %v2225_v62 = vshrl.u32 %v4992_v43, 16  ;;  %v5036_v15 = vcombine.low %v7215_v25, %v7217_v57 }
 0x173   : > { %5816 = vmatprep.mubr.bf16.mxu0 %v5033_v60  ;;  %5877 = vmatpush3.bf16.msra.mxu0 %v6181_v36  ;;  %v3295_v36 = vshll.u32 %v5099_v30, 16  ;;  %v2212_v60 = vrot.slane %v2210_v52, 4  ;;  %v5100_v30 = vcombine.low %v6806_v49, %v6869_v44  ;;  %v8290_v49 = vcombine.low %v6941_v63, %v6929_v54 }
 0x174   : > { %5697 = vmatmul.mubr.bf16.gmra.mxu1 %v1457_v29  ;;  %5878 = vmatprep.subr.bf16.mxu0 %v6184_v14  ;;  %v4993_v29 = vcombine.low %v7104_v40, %v7126_v35  ;;  %v3289_v12 = vrot.slane %v3287_v51, 4  ;;  %v3310_v40 = vshrl.u32 %v5101_v2, 16  ;;  %v3313_v35 = vshll.u32 %v5101_v2, 16 }
 0x175   : > { %5700 = vmatprep.mubr.bf16.mxu1 %v1466_v13  ;;  %v3297_v3 = vrot.slane %v3295_v36, 4  ;;  %v2221_v13 = vrot.slane %v2219_v7, 4  ;;  %v2213_v46 = vor.u32 %v2212_v60, %v2209_v48  ;;  %v3301_v52 = vshrl.u32 %v5100_v30, 16 }
 0x176   : > { %v2234_v17 = vshrl.u32 %v4993_v29, 16  ;;  %v3290_v19 = vor.u32 %v3289_v12, %v3286_v45  ;;  %v5102_v51 = vcombine.low %v6904_v61, %v6941_v63  ;;  %v4994_v48 = vcombine.low %v7128_v50, %v7130_v20 }
 0x177   : > { %5879 = vmatpush3.bf16.msra.mxu0 %v6184_v14  ;;  %v3294_v14 = vrot.slane %v3292_v37, 3  ;;  %v3304_v37 = vshll.u32 %v5100_v30, 16  ;;  %v2222_v7 = vor.u32 %v2221_v13, %v2218_v26  ;;  %v2214_v60 = vsel %vm1359_vm3, %v2204_v24, %v2213_v46 }
 0x178   : > { %5944 = vmatprep.subr.bf16.mxu0 %v7190_v42  ;;  %v3315_v2 = vrot.slane %v3313_v35, 4  ;;  %v2227_v20 = vrot.slane %v2225_v62, 3  ;;  %v2230_v24 = vrot.slane %v2228_v53, 4  ;;  %v2236_v26 = vrot.slane %v2234_v17, 3 }
 0x179   : > { %v3298_v36 = vor.u32 %v3297_v3, %v3294_v14  ;;  %v3306_v30 = vrot.slane %v3304_v37, 4  ;;  %v6185_v14 = vld [vmem:[%s8239_s4 + $0x170] sm:$0xff]   ;;  %v3312_v3 = vrot.slane %v3310_v40, 3  ;;  %v2223_v50 = vsel %vm1359_vm3, %v2213_v46, %v2222_v7 }
 0x17a   : > { %5817 = vmatmul.mubr.bf16.gmra.mxu0 %v5034_v9  ;;  %v2237_v9 = vshll.u32 %v4993_v29, 16  ;;  %v5103_v29 = vcombine.low %v6929_v54, %v6968_v47  ;;  %v3322_v45 = vshll.u32 %v5102_v51, 16  ;;  %v2243_v37 = vshrl.u32 %v4994_v48, 16 }
 0x17b   : > { %5820 = vmatprep.mubr.bf16.mxu0 %v5035_v0  ;;  %v3303_v0 = vrot.slane %v3301_v52, 3  ;;  %v3299_v43 = vsel %vm1359_vm3, %v3290_v19, %v3298_v36  ;;  %v7236_v52 = vor.u32 %v3315_v2, %v3312_v3  ;;  %v2246_v40 = vshll.u32 %v4994_v48, 16  ;;  %v6191_v48 = vld [vmem:[%s8239_s4 + $0x160] sm:$0xff]  }
 0x17c   : > { %5701 = vmatmul.mubr.bf16.gmra.mxu1 %v1475_v58  ;;  %v4995_v58 = vcombine.low %v7132_v27, %v7157_v8  ;;  %v2239_v13 = vrot.slane %v2237_v9, 4  ;;  %v6188_v27 = vld [vmem:[%s8239_s4 + $0x168] sm:$0xff]   ;;  %v3328_v8 = vshrl.u32 %v5103_v29, 16  ;;  %v3331_v46 = vshll.u32 %v5103_v29, 16 }
 0x17d   : > { %5760 = vmatprep.mubr.bf16.mxu1 %v2205_v41  ;;  %v3319_v41 = vshrl.u32 %v5102_v51, 16  ;;  %v3307_v12 = vor.u32 %v3306_v30, %v3303_v0  ;;  %v2231_v62 = vor.u32 %v2230_v24, %v2227_v20  ;;  %v7248_v19 = vcombine.low %v7159_v5, %v7161_v11  ;;  %v7260_v11 = vld [vmem:[#allocation2 + $0x68] sm:$0xf] }
 0x17e   : > { %v2252_v35 = vshrl.u32 %v4995_v58, 16  ;;  %v2255_v53 = vshll.u32 %v4995_v58, 16  ;;  %v7241_v17 = vor.u32 %v2239_v13, %v2236_v26  ;;  %v3330_v30 = vrot.slane %v3328_v8, 3  ;;  %v6199_v58 = vld [vmem:[%s8239_s4 + $0x228] sm:$0xff]  }
 0x17f   : > { %v3321_v9 = vrot.slane %v3319_v41, 3  ;;  %v3308_v51 = vsel %vm1359_vm3, %v3298_v36, %v3307_v12  ;;  %v3317_v0 = vsel %vm1359_vm3, %v3307_v12, %v7236_v52  ;;  %v5105_v5 = vcombine.low %v6988_v33, %v7031_v16  ;;  %v7262_v36 = vld [vmem:[#allocation2 + $0x70] sm:$0xf]  ;;  %v7279_v41 = vld [vmem:[#allocation2 + $0x74] sm:$0xf] }
 0x180   : > { %v2232_v3 = vsel %vm1359_vm3, %v2222_v7, %v2231_v62  ;;  %v2245_v2 = vrot.slane %v2243_v37, 3  ;;  %v2248_v29 = vrot.slane %v2246_v40, 4  ;;  %v2241_v20 = vsel %vm1359_vm3, %v2231_v62, %v7241_v17  ;;  %v7277_v7 = vld [vmem:[#allocation2 + $0x6c] sm:$0xf] }
 0x181   : > { %v2254_v26 = vrot.slane %v2252_v35, 3  ;;  %v5145_v12 = vcombine.low %v7277_v7, %v7262_v36  ;;  %v3346_v37 = vshrl.u32 %v5105_v5, 16  ;;  %v3349_v40 = vshll.u32 %v5105_v5, 16  ;;  %v7288_v35 = vld [vmem:[#allocation2 + $0x5c] sm:$0xf] }
 0x182   : > { %5821 = vmatmul.mubr.bf16.gmra.mxu0 %v5036_v15  ;;  %v6196_v15 = vld [vmem:[%s8239_s4 + $0x230] sm:$0xff]   ;;  %v2261_v62 = vshrl.u32 %v7248_v19, 16 }
 0x183   : > { %5880 = vmatprep.mubr.bf16.mxu0 %v3299_v43  ;;  %v3333_v43 = vrot.slane %v3331_v46, 4  ;;  %v6192_v46 = vld [vmem:[%s8239_s4 + $0x158] sm:$0xff]  }
 0x184   : > { %5761 = vmatmul.mubr.bf16.vlgmr.msra.gmra.mxu1 %v2214_v60  ;;  %v5104_v60 = vcombine.low %v6956_v34, %v6994_v56 }
 0x185   : > { %5825 = vmatpush3.bf16.msra.mxu1 %v7168_v28  ;;  %5764 = vmatprep.mubr.bf16.mxu1 %v2223_v50  ;;  %v3324_v28 = vrot.slane %v3322_v45, 4  ;;  %v7271_v50 = vld [vmem:[#allocation2 + $0x78] sm:$0xf]  ;;  %v3334_v8 = vor.u32 %v3333_v43, %v3330_v30  ;;  %v6202_v30 = vld [vmem:[%s8239_s4 + $0x220] sm:$0xff]  }
 0x186   : > { %5826 = vmatprep.subr.bf16.mxu1 %v6185_v14  ;;  %v3340_v13 = vshll.u32 %v5104_v60, 16 }
 0x187   : > { %v3325_v24 = vor.u32 %v3324_v28, %v3321_v9  ;;  %v2249_v9 = vor.u32 %v2248_v29, %v2245_v2  ;;  %v7294_v28 = vld [vmem:[#allocation2 + $0x60] sm:$0xf]  ;;  %v3351_v2 = vrot.slane %v3349_v40, 4  ;;  %v6197_v29 = vld [vmem:[%s8239_s4 + $0x150] sm:$0xff]  }
 0x189   : > { %5827 = vmatpush3.bf16.msra.mxu1 %v6185_v14  ;;  %v4997_v14 = vcombine.low %v7163_v55, %v7192_v39  ;;  %v2257_v55 = vrot.slane %v2255_v53, 4  ;;  %v7275_v39 = vld [vmem:[#allocation2 + $0x64] sm:$0xf]  ;;  %v2264_v53 = vshll.u32 %v7248_v19, 16  ;;  %v3326_v43 = vsel %vm1359_vm3, %v7236_v52, %v3325_v24 }
 0x18a   : > { %5881 = vmatmul.mubr.bf16.vlgmr.msra.gmra.mxu0 %v3308_v51  ;;  %5828 = vmatprep.subr.bf16.mxu1 %v6188_v27  ;;  %v5144_v45 = vcombine.low %v7275_v39, %v7260_v11  ;;  %v5106_v19 = vcombine.low %v7016_v38, %v7288_v35  ;;  %v4998_v52 = vcombine.low %v7194_v4, %v7196_v32  ;;  %v6204_v4 = vld [vmem:[%s8239_s4 + $0x218] sm:$0xff]  }
 0x18b   : > { %5884 = vmatprep.mubr.bf16.mxu0 %v3317_v0  ;;  %5945 = vmatpush3.bf16.msra.mxu0 %v7190_v42  ;;  %v3337_v42 = vshrl.u32 %v5104_v60, 16  ;;  %v2270_v51 = vshrl.u32 %v4997_v14, 16  ;;  %v2273_v60 = vshll.u32 %v4997_v14, 16  ;;  %v2258_v0 = vor.u32 %v2257_v55, %v2254_v26 }
 0x18c   : > { %5765 = vmatmul.mubr.bf16.gmra.mxu1 %v2232_v3  ;;  %5946 = vmatprep.subr.bf16.mxu0 %v6196_v15  ;;  %v3342_v3 = vrot.slane %v3340_v13, 4  ;;  %v3348_v14 = vrot.slane %v3346_v37, 3  ;;  %v2263_v26 = vrot.slane %v2261_v62, 3  ;;  %v2266_v55 = vrot.slane %v2264_v53, 4 }
 0x18d   : > { %5768 = vmatprep.mubr.bf16.mxu1 %v2241_v20  ;;  %5829 = vmatpush3.bf16.msra.mxu1 %v6188_v27  ;;  %v5146_v27 = vcombine.low %v7279_v41, %v7271_v50  ;;  %v3339_v5 = vrot.slane %v3337_v42, 3  ;;  %v5107_v20 = vcombine.low %v7294_v28, %v7275_v39  ;;  %v2259_v42 = vsel %vm1359_vm3, %v2249_v9, %v2258_v0  ;;  %v6258_v39 = vld [vmem:[%s8242_s7 + $0x30] sm:$0xff]  }
 0x18e   : > { %5830 = vmatprep.subr.bf16.mxu1 %v6191_v48  ;;  %v2272_v13 = vrot.slane %v2270_v51, 3  ;;  %v2275_v37 = vrot.slane %v2273_v60, 4  ;;  %v3358_v40 = vshll.u32 %v5106_v19, 16  ;;  %v3352_v62 = vor.u32 %v3351_v2, %v3348_v14 }
 0x18f   : > { %5947 = vmatpush3.bf16.msra.mxu0 %v6196_v15  ;;  %v3335_v15 = vsel %vm1359_vm3, %v3325_v24, %v3334_v8  ;;  %v4999_v24 = vcombine.low %v7198_v21, %v7215_v25  ;;  %v3343_v32 = vor.u32 %v3342_v3, %v3339_v5  ;;  %v3367_v53 = vshll.u32 %v5107_v20, 16  ;;  %v6201_v21 = vld [vmem:[%s8239_s4 + $0x148] sm:$0xff]  }
 0x190   : > { %5948 = vmatprep.subr.bf16.mxu0 %v6199_v58  ;;  %v2279_v25 = vshrl.u32 %v4998_v52, 16  ;;  %v2267_v51 = vor.u32 %v2266_v55, %v2263_v26  ;;  %v5108_v14 = vcombine.low %v7260_v11, %v7277_v7 }
 0x191   : > { %5831 = vmatpush3.bf16.msra.mxu1 %v6191_v48  ;;  %v2250_v48 = vsel %vm1359_vm3, %v7241_v17, %v2249_v9  ;;  %v3355_v17 = vshrl.u32 %v5106_v19, 16  ;;  %v2282_v9 = vshll.u32 %v4998_v52, 16  ;;  %v2288_v60 = vshrl.u32 %v4999_v24, 16 }
 0x192   : > { %5885 = vmatmul.mubr.bf16.gmra.mxu0 %v3326_v43  ;;  %5832 = vmatprep.subr.bf16.mxu1 %v6192_v46  ;;  %v2291_v43 = vshll.u32 %v4999_v24, 16  ;;  %v3344_v5 = vsel %vm1359_vm3, %v3334_v8, %v3343_v32  ;;  %v3360_v19 = vrot.slane %v3358_v40, 4  ;;  %v3353_v2 = vsel %vm1359_vm3, %v3343_v32, %v3352_v62 }
 0x193   : > { %5888 = vmatprep.mubr.bf16.mxu0 %v3335_v15  ;;  %5949 = vmatpush3.bf16.msra.mxu0 %v6199_v58  ;;  %v3364_v58 = vshrl.u32 %v5107_v20, 16  ;;  %v2276_v15 = vor.u32 %v2275_v37, %v2272_v13  ;;  %v3357_v3 = vrot.slane %v3355_v17, 3  ;;  %v3369_v20 = vrot.slane %v3367_v53, 4  ;;  %v6212_v37 = vld [vmem:[%s8239_s4 + $0x208] sm:$0xff]   ;;  %v7344_v53 = vld [vmem:[%s8239_s4 + $0x1f8] sm:$0xff]  }
 0x194   : > { %5769 = vmatmul.mubr.bf16.gmra.mxu1 %v2250_v48  ;;  %5950 = vmatprep.subr.bf16.mxu0 %v6202_v30  ;;  %v5109_v52 = vcombine.low %v7262_v36, %v7279_v41  ;;  %v6206_v48 = vld [vmem:[%s8239_s4 + $0x140] sm:$0xff]   ;;  %v5000_v8 = vcombine.low %v7217_v57, %v7217_v57  ;;  %v2281_v26 = vrot.slane %v2279_v25, 3  ;;  %v2284_v55 = vrot.slane %v2282_v9, 4 }
 0x195   : > { %5772 = vmatprep.mubr.bf16.mxu1 %v2259_v42  ;;  %5833 = vmatpush3.bf16.msra.mxu1 %v6192_v46  ;;  %v6209_v46 = vld [vmem:[%s8239_s4 + $0x210] sm:$0xff]   ;;  %v2277_v24 = vsel %vm1359_vm3, %v2267_v51, %v2276_v15  ;;  %v2290_v42 = vrot.slane %v2288_v60, 3  ;;  %v2293_v13 = vrot.slane %v2291_v43, 4  ;;  %v3361_v32 = vor.u32 %v3360_v19, %v3357_v3  ;;  %v7346_v43 = vld [vmem:[#allocation2 + $0x18] sm:$0xff]  }
 0x196   : > { %5834 = vmatprep.subr.bf16.mxu1 %v6197_v29  ;;  %v3373_v57 = vshrl.u32 %v5108_v14, 16  ;;  %v3376_v17 = vshll.u32 %v5108_v14, 16  ;;  %v3382_v40 = vshrl.u32 %v5109_v52, 16  ;;  %v2297_v25 = vshrl.u32 %v5000_v8, 16 }
 0x197   : > { %5951 = vmatpush3.bf16.msra.mxu0 %v6202_v30  ;;  %v3366_v30 = vrot.slane %v3364_v58, 3  ;;  %v3385_v58 = vshll.u32 %v5109_v52, 16  ;;  %v2300_v9 = vshll.u32 %v5000_v8, 16  ;;  %v2294_v60 = vor.u32 %v2293_v13, %v2290_v42 }
 0x198   : > { %5952 = vmatprep.subr.bf16.mxu0 %v6204_v4  ;;  %v3375_v3 = vrot.slane %v3373_v57, 3  ;;  %v3378_v19 = vrot.slane %v3376_v17, 4  ;;  %v5110_v14 = vcombine.low %v7271_v50, %v7271_v50  ;;  %v2299_v8 = vrot.slane %v2297_v25, 3  ;;  %v6213_v57 = vld [vmem:[#allocation2 + $0x20] sm:$0xff]   ;;  %v7359_v25 = vld [vmem:[#allocation2 + $0x28] sm:$0xff]  }
 0x199   : > { %5835 = vmatpush3.bf16.msra.mxu1 %v6197_v29  ;;  %v2268_v29 = vsel %vm1359_vm3, %v2258_v0, %v2267_v51  ;;  %v3370_v0 = vor.u32 %v3369_v20, %v3366_v30  ;;  %v2285_v51 = vor.u32 %v2284_v55, %v2281_v26  ;;  %v3387_v30 = vrot.slane %v3385_v58, 4  ;;  %v6214_v26 = vld [vmem:[#allocation2 + $0x1c] sm:$0xff]   ;;  %v6215_v17 = vld [vmem:[#allocation2 + $0x24] sm:$0xff]  }
 0x19a   : > { %5889 = vmatmul.mubr.bf16.gmra.mxu0 %v3344_v5  ;;  %5836 = vmatprep.subr.bf16.mxu1 %v6201_v21  ;;  %v3362_v5 = vsel %vm1359_vm3, %v3352_v62, %v3361_v32  ;;  %v3379_v55 = vor.u32 %v3378_v19, %v3375_v3  ;;  %v3394_v42 = vshll.u32 %v5110_v14, 16  ;;  %v6259_v50 = vld [vmem:[%s8242_s7 + $0x28] sm:$0xff]  }
 0x19b   : > { %5892 = vmatprep.mubr.bf16.mxu0 %v3353_v2  ;;  %5953 = vmatpush3.bf16.msra.mxu0 %v6204_v4  ;;  %v6207_v4 = vld [vmem:[#allocation2 + $0x10] sm:$0xff]   ;;  %v3371_v2 = vsel %vm1359_vm3, %v3361_v32, %v3370_v0  ;;  %v2286_v52 = vsel %vm1359_vm3, %v2276_v15, %v2285_v51  ;;  %v2295_v62 = vsel %vm1359_vm3, %v2285_v51, %v2294_v60 }
 0x19c   : > { %5773 = vmatmul.mubr.bf16.gmra.mxu1 %v2268_v29  ;;  %5954 = vmatprep.subr.bf16.mxu0 %v6209_v46  ;;  %v2868_v20 = vshll.u32 %v6207_v4, 16  ;;  %v2302_v29 = vrot.slane %v2300_v9, 4  ;;  %v3380_v9 = vsel %vm1359_vm3, %v3370_v0, %v3379_v55 }
 0x19d   : > { %5776 = vmatprep.mubr.bf16.mxu1 %v2277_v24  ;;  %5837 = vmatpush3.bf16.msra.mxu1 %v6201_v21  ;;  %v6217_v21 = vld [vmem:[%s8239_s4 + $0x200] sm:$0xff]   ;;  %v3391_v24 = vshrl.u32 %v5110_v14, 16  ;;  %v2881_v14 = vshll.u32 %v6213_v57, 16 }
 0x19e   : > { %5838 = vmatprep.subr.bf16.mxu1 %v6206_v48  ;;  %v2870_v32 = vrot.slane %v2868_v20, 1  ;;  %v2303_v15 = vor.u32 %v2302_v29, %v2299_v8  ;;  %v6219_v20 = vld [vmem:[#allocation2 + $0x2c] sm:$0xff]   ;;  %v3960_v8 = vshrl.u32 %v6214_v26, 16 }
 0x19f   : > { %5955 = vmatpush3.bf16.msra.mxu0 %v6209_v46  ;;  %v3384_v46 = vrot.slane %v3382_v40, 3  ;;  %v2866_v40 = vshrl.u32 %v6207_v4, 16  ;;  %v3393_v51 = vrot.slane %v3391_v24, 3 }
 0x1a0   : > { %5956 = vmatprep.subr.bf16.mxu0 %v6212_v37 }
 0x1a1   : > { %5839 = vmatpush3.bf16.msra.mxu1 %v6206_v48  ;;  %v2873_v48 = vshll.u32 %v7346_v43, 16  ;;  %v3388_v13 = vor.u32 %v3387_v30, %v3384_v46  ;;  %v2871_v19 = vor.u32 %v2870_v32, %v2866_v40  ;;  %v2304_v46 = vsel %vm1359_vm3, %v2294_v60, %v2303_v15  ;;  %v7369_v15 = vld [vmem:[#allocation2 + $0x38] sm:$0xff]  }
 0x1a2   : > { %5893 = vmatmul.mubr.bf16.gmra.mxu0 %v3362_v5  ;;  %5904 = vmatprep.subr.bf16.mxu1 %v7344_v53  ;;  %v3396_v5 = vrot.slane %v3394_v42, 4  ;;  %v2889_v30 = vshll.u32 %v7359_v25, 16  ;;  %v2885_v60 = vshrl.u32 %v6213_v57, 16  ;;  %v3975_v32 = vshll.u32 %v6219_v20, 16 }
 0x1a3   : > { %5896 = vmatprep.mubr.bf16.mxu0 %v3371_v2  ;;  %5957 = vmatpush3.bf16.msra.mxu0 %v6212_v37  ;;  %v2875_v58 = vrot.slane %v2873_v48, 1  ;;  %v3962_v37 = vshll.u32 %v6214_v26, 16  ;;  %v3389_v3 = vsel %vm1359_vm3, %v3379_v55, %v3388_v13  ;;  %v3967_v2 = vshll.u32 %v6215_v17, 16  ;;  %v7366_v48 = vld [vmem:[#allocation2 + $0x34] sm:$0xff]  }
 0x1a4   : > { %5777 = vmatmul.mubr.bf16.gmra.mxu1 %v2286_v52  ;;  %5958 = vmatprep.subr.bf16.mxu0 %v6217_v21  ;;  %v3397_v0 = vor.u32 %v3396_v5, %v3393_v51  ;;  %v2883_v52 = vrot.slane %v2881_v14, 1  ;;  %v2877_v55 = vshrl.u32 %v7346_v43, 16  ;;  %v2891_v42 = vrot.slane %v2889_v30, 1  ;;  %v6218_v26 = vld [vmem:[%s8239_s4 + $0x1f0] sm:$0xff]   ;;  %v6225_v30 = vld [vmem:[#allocation2 + $0x40] sm:$0xff]  }
 0x1a5   : > { %5780 = vmatprep.mubr.bf16.mxu1 %v2295_v62  ;;  %v2876_v4 = vsel %vm1770_vm4, %v2871_v19, %v2875_v58  ;;  %v3969_v29 = vrot.slane %v3967_v2, 1  ;;  %v6220_v62 = vld [vmem:[#allocation2 + $0x30] sm:$0xff]   ;;  %v3983_v43 = vshll.u32 %v7366_v48, 16  ;;  %v6224_v19 = vld [vmem:[#allocation2 + $0x3c] sm:$0xff]   ;;  %v3971_v14 = vshrl.u32 %v6215_v17, 16  ;;  %v7387_v17 = vld [vmem:[#allocation2 + $0x48] sm:$0xff]  }
 0x1a6   : > { %v2879_v40 = vor.u32 %v2877_v55, %v2875_v58  ;;  %v2887_v51 = vor.u32 %v2885_v60, %v2883_v52  ;;  %v2897_v5 = vshll.u32 %v6220_v62, 16  ;;  %v3977_v58 = vrot.slane %v3975_v32, 1 }
 0x1a7   : > { %5959 = vmatpush3.bf16.msra.mxu0 %v6217_v21  ;;  %v3964_v21 = vrot.slane %v3962_v37, 1  ;;  %v3398_v37 = vsel %vm1359_vm3, %v3388_v13, %v3397_v0  ;;  %v2905_v13 = vshll.u32 %v7369_v15, 16  ;;  %v7384_v0 = vld [vmem:[#allocation2 + $0x44] sm:$0xff]  }
 0x1a8   : > { %v2884_v57 = vsel %vm1770_vm4, %v2879_v40, %v2883_v52  ;;  %v2899_v2 = vrot.slane %v2897_v5, 1  ;;  %v3973_v52 = vor.u32 %v3971_v14, %v3969_v29  ;;  %v6230_v5 = vld [vmem:[#allocation2 + $0x4c] sm:$0xff]  }
 0x1a9   : > { %v3965_v24 = vor.u32 %v3964_v21, %v3960_v8  ;;  %v6223_v21 = vld [vmem:[%s8239_s4 + $0x1e8] sm:$0xff]   ;;  %v2893_v8 = vshrl.u32 %v7359_v25, 16  ;;  %v2907_v60 = vrot.slane %v2905_v13, 1  ;;  %v6228_v25 = vld [vmem:[%s8239_s4 + $0x1e0] sm:$0xff]   ;;  %v6229_v13 = vld [vmem:[%s8239_s4 + $0x1d8] sm:$0xff]  }
 0x1aa   : > { %5897 = vmatmul.mubr.bf16.gmra.mxu0 %v3380_v9  ;;  %v6231_v14 = vld [vmem:[#allocation2 + $0x50] sm:$0xff]  }
 0x1ab   : > { %5900 = vmatprep.mubr.bf16.mxu0 %v3389_v3  ;;  %v3970_v9 = vsel %vm1770_vm4, %v3965_v24, %v3969_v29  ;;  %v2892_v3 = vsel %vm1770_vm4, %v2887_v51, %v2891_v42  ;;  %v2901_v24 = vshrl.u32 %v6220_v62, 16  ;;  %v2895_v32 = vor.u32 %v2893_v8, %v2891_v42 }
 0x1ac   : > { %5781 = vmatmul.mubr.bf16.gmra.mxu1 %v2304_v46  ;;  %v3979_v46 = vshrl.u32 %v6219_v20, 16  ;;  %v3978_v20 = vsel %vm1770_vm4, %v3973_v52, %v3977_v58  ;;  %v3999_v29 = vshll.u32 %v7384_v0, 16  ;;  %v2921_v42 = vshll.u32 %v7387_v17, 16 }
 0x1ad   : > { %5840 = vmatprep.mubr.bf16.mxu1 %v2876_v4  ;;  %v3985_v4 = vrot.slane %v3983_v43, 1  ;;  %v2900_v62 = vsel %vm1770_vm4, %v2895_v32, %v2899_v2  ;;  %v3987_v43 = vshrl.u32 %v7366_v48, 16  ;;  %v2909_v52 = vshrl.u32 %v7369_v15, 16  ;;  %v6234_v15 = vld [vmem:[%s8239_s4 + $0x1d0] sm:$0xff]  }
 0x1ae   : > { %v3981_v55 = vor.u32 %v3979_v46, %v3977_v58  ;;  %v4001_v58 = vrot.slane %v3999_v29, 1  ;;  %v6235_v29 = vld [vmem:[#allocation2 + $0x5c] sm:$0xff]  }
 0x1af   : > { %v3989_v46 = vor.u32 %v3987_v43, %v3985_v4  ;;  %v6236_v43 = vld [vmem:[#allocation2 + $0x60] sm:$0xff]  }
 0x1b0   : > { %v3986_v40 = vsel %vm1770_vm4, %v3981_v55, %v3985_v4  ;;  %v2917_v55 = vshrl.u32 %v6225_v30, 16 }
 0x1b2   : > { %5901 = vmatmul.mubr.bf16.gmra.mxu0 %v3398_v37  ;;  %v2903_v37 = vor.u32 %v2901_v24, %v2899_v2  ;;  %v7402_v2 = vld [vmem:[#allocation2 + $0x54] sm:$0xff]   ;;  %v2923_v24 = vrot.slane %v2921_v42, 1 }
 0x1b3   : > { %5960 = vmatprep.mubr.bf16.mxu0 %v3970_v9  ;;  %v2913_v9 = vshll.u32 %v6225_v30, 16  ;;  %v4015_v4 = vshll.u32 %v7402_v2, 16 }
 0x1b4   : > { %5841 = vmatmul.mubr.bf16.vlgmr.msra.gmra.mxu1 %v2884_v57  ;;  %v2908_v51 = vsel %vm1770_vm4, %v2903_v37, %v2907_v60 }
 0x1b5   : > { %5905 = vmatpush3.bf16.msra.mxu1 %v7344_v53  ;;  %5844 = vmatprep.mubr.bf16.mxu1 %v2892_v3  ;;  %v3991_v53 = vshll.u32 %v6224_v19, 16  ;;  %v2915_v57 = vrot.slane %v2913_v9, 1  ;;  %v3995_v3 = vshrl.u32 %v6224_v19, 16  ;;  %v2911_v19 = vor.u32 %v2909_v52, %v2907_v60 }
 0x1b6   : > { %5906 = vmatprep.subr.bf16.mxu1 %v6218_v26  ;;  %v4017_v42 = vrot.slane %v4015_v4, 1  ;;  %v2925_v52 = vshrl.u32 %v7387_v17, 16  ;;  %v6243_v17 = vld [vmem:[%s8239_s4 + $0x1c0] sm:$0xff]  }
 0x1b7   : > { %v2919_v32 = vor.u32 %v2917_v55, %v2915_v57  ;;  %v2916_v30 = vsel %vm1770_vm4, %v2911_v19, %v2915_v57  ;;  %v7419_v57 = vld [vmem:[#allocation2 + $0x64] sm:$0xff]   ;;  %v2933_v55 = vshrl.u32 %v6231_v14, 16 }
 0x1b9   : > { %5907 = vmatpush3.bf16.msra.mxu1 %v6218_v26  ;;  %v3993_v26 = vrot.slane %v3991_v53, 1  ;;  %v7405_v53 = vld [vmem:[#allocation2 + $0x58] sm:$0xff]   ;;  %v2924_v37 = vsel %vm1770_vm4, %v2919_v32, %v2923_v24 }
 0x1ba   : > { %5961 = vmatmul.mubr.bf16.vlgmr.msra.gmra.mxu0 %v3978_v20  ;;  %5908 = vmatprep.subr.bf16.mxu1 %v6223_v21  ;;  %v2937_v9 = vshll.u32 %v7405_v53, 16 }
 0x1bb   : > { %5964 = vmatprep.mubr.bf16.mxu0 %v3986_v40  ;;  %v3997_v8 = vor.u32 %v3995_v3, %v3993_v26  ;;  %v3994_v48 = vsel %vm1770_vm4, %v3989_v46, %v3993_v26  ;;  %v2929_v40 = vshll.u32 %v6231_v14, 16  ;;  %v4011_v26 = vshrl.u32 %v6230_v5, 16  ;;  %v6239_v3 = vld [vmem:[%s8239_s4 + $0x1c8] sm:$0xff]  }
 0x1bc   : > { %5845 = vmatmul.mubr.bf16.gmra.mxu1 %v2900_v62  ;;  %v7417_v62 = vpop.f32.mrf.mxu1 }
 0x1bd   : > { %5848 = vmatprep.mubr.bf16.mxu1 %v2908_v51  ;;  %5909 = vmatpush3.bf16.msra.mxu1 %v6223_v21  ;;  %v4007_v21 = vshll.u32 %v6230_v5, 16  ;;  %v4002_v20 = vsel %vm1770_vm4, %v3997_v8, %v4001_v58  ;;  %v2931_v51 = vrot.slane %v2929_v40, 1  ;;  %v2945_v40 = vshll.u32 %v6236_v43, 16 }
 0x1be   : > { %5910 = vmatprep.subr.bf16.mxu1 %v6228_v25  ;;  %v7428_v19 = vpop.f32.mrf.mxu1 }
 0x1bf   : > { %v4009_v60 = vrot.slane %v4007_v21, 1  ;;  %v7425_v21 = vld [vmem:[#allocation2 + $0x68] sm:$0xff]   ;;  %v2935_v32 = vor.u32 %v2933_v55, %v2931_v51 }
 0x1c1   : > { %5911 = vmatpush3.bf16.msra.mxu1 %v6228_v25  ;;  %v4003_v25 = vshrl.u32 %v7384_v0, 16  ;;  %v4013_v8 = vor.u32 %v4011_v26, %v4009_v60  ;;  %v2939_v0 = vrot.slane %v2937_v9, 1  ;;  %v2947_v9 = vrot.slane %v2945_v40, 1 }
 0x1c2   : > { %5965 = vmatmul.mubr.bf16.gmra.mxu0 %v3994_v48  ;;  %5912 = vmatprep.subr.bf16.mxu1 %v6229_v13  ;;  %v2927_v48 = vor.u32 %v2925_v52, %v2923_v24  ;;  %v2941_v52 = vshrl.u32 %v7405_v53, 16 }
 0x1c3   : > { %5968 = vmatprep.mubr.bf16.mxu0 %v4002_v20  ;;  %v4005_v46 = vor.u32 %v4003_v25, %v4001_v58  ;;  %v4018_v20 = vsel %vm1770_vm4, %v4013_v8, %v4017_v42  ;;  %v4031_v58 = vshll.u32 %v7419_v57, 16  ;;  %v2940_v24 = vsel %vm1770_vm4, %v2935_v32, %v2939_v0  ;;  %v6241_v8 = vld [vmem:[#allocation2 + $0x70] ss:$0 sps:$4 sm:$0x11]  }
 0x1c4   : > { %5849 = vmatmul.mubr.bf16.gmra.mxu1 %v2916_v30  ;;  %v2932_v14 = vsel %vm1770_vm4, %v2927_v48, %v2931_v51  ;;  %v6240_v30 = vld [vmem:[#allocation2 + $0x6c] sm:$0xff]   ;;  %v4027_v25 = vshrl.u32 %v6235_v29, 16 }
 0x1c5   : > { %5852 = vmatprep.mubr.bf16.mxu1 %v2924_v37  ;;  %5913 = vmatpush3.bf16.msra.mxu1 %v6229_v13  ;;  %v4023_v13 = vshll.u32 %v6235_v29, 16  ;;  %v4010_v5 = vsel %vm1770_vm4, %v4005_v46, %v4009_v60  ;;  %v4019_v37 = vshrl.u32 %v7402_v2, 16  ;;  %v7439_v60 = vpop.f32.mrf.mxu1  ;;  %v4033_v26 = vrot.slane %v4031_v58, 1  ;;  %v6242_v46 = vld [vmem:[#allocation2 + $0x74] sm:$0xff]  }
 0x1c6   : > { %5914 = vmatprep.subr.bf16.mxu1 %v6234_v15  ;;  %v2961_v58 = vshll.u32 %v6241_v8, 16 }
 0x1c7   : > { %v4025_v4 = vrot.slane %v4023_v13, 1  ;;  %v4021_v51 = vor.u32 %v4019_v37, %v4017_v42  ;;  %v7445_v32 = vpop.f32.mrf.mxu1  ;;  %v4047_v42 = vshll.u32 %v6242_v46, 16 }
 0x1c8   : > { %v7442_v55 = vpop.f32.mrf.mxu0 }
 0x1c9   : > { %5915 = vmatpush3.bf16.msra.mxu1 %v6234_v15  ;;  %v2953_v15 = vshll.u32 %v7425_v21, 16  ;;  %v4029_v13 = vor.u32 %v4027_v25, %v4025_v4  ;;  %v4026_v2 = vsel %vm1770_vm4, %v4021_v51, %v4025_v4  ;;  %v6245_v4 = vld [vmem:[#allocation2 + $0x7c] ss:$0 sps:$4 sm:$0x11]   ;;  %v4049_v37 = vrot.slane %v4047_v42, 1 }
 0x1ca   : > { %5969 = vmatmul.mubr.bf16.gmra.mxu0 %v4010_v5  ;;  %5916 = vmatprep.subr.bf16.mxu1 %v6239_v3  ;;  %v2949_v5 = vshrl.u32 %v6236_v43, 16  ;;  %v2957_v51 = vshrl.u32 %v7425_v21, 16 }
 0x1cb   : > { %5972 = vmatprep.mubr.bf16.mxu0 %v4018_v20  ;;  %v2955_v48 = vrot.slane %v2953_v15, 1  ;;  %v4039_v20 = vshll.u32 %v6240_v30, 16  ;;  %v4034_v29 = vsel %vm1770_vm4, %v4029_v13, %v4033_v26  ;;  %v4043_v15 = vshrl.u32 %v6240_v30, 16 }
 0x1cc   : > { %5853 = vmatmul.mubr.bf16.gmra.mxu1 %v2932_v14  ;;  %v2951_v40 = vor.u32 %v2949_v5, %v2947_v9  ;;  %v7449_v14 = vpop.f32.mrf.mxu0  ;;  %v7451_v43 = vpop.f32.mrf.mxu1 }
 0x1cd   : > { %5856 = vmatprep.mubr.bf16.mxu1 %v2940_v24  ;;  %5917 = vmatpush3.bf16.msra.mxu1 %v6239_v3  ;;  %v2943_v3 = vor.u32 %v2941_v52, %v2939_v0  ;;  %v4041_v0 = vrot.slane %v4039_v20, 1  ;;  %v4055_v20 = vshll.u32 %v6245_v4, 16  ;;  %v8291_v4 = vcombine.low %v6968_v47, %v6956_v34 }
 0x1ce   : > { %5918 = vmatprep.subr.bf16.mxu1 %v6243_v17  ;;  %v2956_v24 = vsel %vm1770_vm4, %v2951_v40, %v2955_v48  ;;  %v7456_v52 = vpop.f32.mrf.mxu0  ;;  %v7458_v8 = vpop.f32.mrf.mxu1 }
 0x1cf   : > { %v2948_v53 = vsel %vm1770_vm4, %v2943_v3, %v2947_v9  ;;  %v2963_v9 = vrot.slane %v2961_v58, 1  ;;  %v4045_v13 = vor.u32 %v4043_v15, %v4041_v0  ;;  %v4051_v3 = vshrl.u32 %v6242_v46, 16 }
 0x1d0   : > { %v7465_v21 = vpop.f32.mrf.mxu1  ;;  %v4057_v40 = vrot.slane %v4055_v20, 1  ;;  %v5143_v15 = vcombine.low %v7288_v35, %v7294_v28 }
 0x1d1   : > { %5919 = vmatpush3.bf16.msra.mxu1 %v6243_v17  ;;  %v4035_v17 = vshrl.u32 %v7419_v57, 16  ;;  %v4050_v57 = vsel %vm1770_vm4, %v4045_v13, %v4049_v37 }
 0x1d2   : > { %5973 = vmatmul.mubr.bf16.gmra.mxu0 %v4026_v2  ;;  %v2959_v2 = vor.u32 %v2957_v51, %v2955_v48  ;;  %v7472_v46 = vpop.f32.mrf.mxu1 }
 0x1d3   : > { %5976 = vmatprep.mubr.bf16.mxu0 %v4034_v29  ;;  %v4037_v25 = vor.u32 %v4035_v17, %v4033_v26  ;;  %v7463_v26 = vpop.f32.mrf.mxu0  ;;  %v4053_v29 = vor.u32 %v4051_v3, %v4049_v37  ;;  %8285 = vst [vmem:[#allocation4_spill] sm:$0xff] %v7472_v46  ;;  %v8289_v17 = vcombine.low %v6913_v22, %v6904_v61 }
 0x1d4   : > { %5857 = vmatmul.mubr.bf16.gmra.mxu1 %v2948_v53  ;;  %v2964_v30 = vsel %vm1770_vm4, %v2959_v2, %v2963_v9  ;;  %v8292_v61 = vcombine.low %v6994_v56, %v6988_v33 }
 0x1d5   : > { %5860 = vmatprep.mubr.bf16.mxu1 %v2956_v24  ;;  %v4042_v5 = vsel %vm1770_vm4, %v4037_v25, %v4041_v0  ;;  %v4058_v42 = vsel %vm1770_vm4, %v4053_v29, %v4057_v40  ;;  %v8293_v25 = vcombine.low %v7031_v16, %v7016_v38  ;;  %v6257_v16 = vld [vmem:[%s8242_s7 + $0x38] sm:$0xff]  }
 0x1d6   : > { %5984 = vmatprep.subr.bf16.mxu1 %v6257_v16 }
 0x1d8   : > { %v7470_v48 = vpop.f32.mrf.mxu0 }
 0x1d9   : > { %8284 = vst [vmem:[#allocation3_spill] sm:$0xff] %v7470_v48 }
 0x1da   : > { %5977 = vmatmul.mubr.bf16.gmra.mxu0 %v4042_v5  ;;  %v7475_v53 = vpop.f32.mrf.mxu0 }
 0x1db   : > { %5980 = vmatprep.mubr.bf16.mxu0 %v4050_v57  ;;  %8286 = vst [vmem:[#allocation5_spill] sm:$0xff] %v7475_v53 }
 0x1dc   : > { %5861 = vmatmul.mubr.bf16.gmra.mxu1 %v2964_v30  ;;  %v7477_v58 = vpop.f32.mrf.mxu1  ;;  %v7485_v6 = vpop.f32.mrf.mxu0  ;;  %v6260_v30 = vld [vmem:[%s8242_s7 + $0x20] sm:$0xff]  }
 0x1dd   : > { %5920 = vmatprep.mubr.bf16.mxu1 %v5135_v23  ;;  %8287 = vst [vmem:[#allocation6_spill] sm:$0xff] %v7485_v6 }
 0x1de   : > { %v7487_v18 = vpop.f32.mrf.mxu1  ;;  %v7489_v23 = vpop.f32.mrf.mxu0 }
 0x1df   : > { %8288 = vst [vmem:[#allocation7_spill] sm:$0xff] %v7489_v23 }
 0x1e0   : > { %v7491_v24 = vpop.f32.mrf.mxu1 }
 0x1e2   : > { %5981 = vmatmul.mubr.bf16.gmra.mxu0 %v4058_v42  ;;  %v7501_v59 = vpop.f32.mrf.mxu1 }
 0x1e4   : > { %5921 = vmatmul.mubr.bf16.vlgmr.msra.gmra.mxu1 %v5136_v10 }
 0x1e5   : > { %5924 = vmatprep.mubr.bf16.mxu1 %v5137_v1  ;;  %5985 = vmatpush3.bf16.msra.mxu1 %v6257_v16 }
 0x1e6   : > { %5986 = vmatprep.subr.bf16.mxu1 %v6258_v39 }
 0x1e8   : > { %v7493_v0 = vpop.f32.mrf.mxu0 }
 0x1e9   : > { %5987 = vmatpush3.bf16.msra.mxu1 %v6258_v39 }
 0x1ea   : > { %v7503_v10 = vpop.f32.mrf.mxu0  ;;  %5988 = vmatprep.subr.bf16.mxu1 %v6259_v50 }
 0x1ec   : > { %5925 = vmatmul.mubr.bf16.gmra.mxu1 %v8289_v17  ;;  %v7505_v31 = vpop.f32.mrf.mxu1  ;;  %v7507_v44 = vpop.f32.mrf.mxu0 }
 0x1ed   : > { %5928 = vmatprep.mubr.bf16.mxu1 %v8290_v49  ;;  %5989 = vmatpush3.bf16.msra.mxu1 %v6259_v50 }
 0x1ee   : > { %v7509_v1 = vpop.f32.mrf.mxu1  ;;  %v7517_v22 = vpop.f32.mrf.mxu0  ;;  %5990 = vmatprep.subr.bf16.mxu1 %v6260_v30 }
 0x1f0   : > { %v7519_v54 = vpop.f32.mrf.mxu1 }
 0x1f1   : > { %5991 = vmatpush3.bf16.msra.mxu1 %v6260_v30 }
 0x1f2   : > { %v7525_v37 = vpop.f32.mrf.mxu1 }
 0x1f4   : > { %5929 = vmatmul.mubr.bf16.gmra.mxu1 %v8291_v4 }
 0x1f5   : > { %5932 = vmatprep.mubr.bf16.mxu1 %v8292_v61  ;;  %v6261_v61 = vld [vmem:[%s8242_s7 + $0x18] sm:$0xff]  }
 0x1f6   : > { %5992 = vmatprep.subr.bf16.mxu1 %v6261_v61 }
 0x1f7   : > { %5993 = vmatpush3.bf16.msra.mxu1 %v6261_v61 }
 0x1f8   : > { %v7521_v63 = vpop.f32.mrf.mxu0 }
 0x1fa   : > { %v7530_v34 = vpop.f32.mrf.mxu0 }
 0x1fc   : > { %5933 = vmatmul.mubr.bf16.gmra.mxu1 %v8293_v25  ;;  %v7532_v47 = vpop.f32.mrf.mxu1  ;;  %v7534_v33 = vpop.f32.mrf.mxu0 }
 0x1fd   : > { %5936 = vmatprep.mubr.bf16.mxu1 %v5143_v15 }
 0x1fe   : > { %v7536_v56 = vpop.f32.mrf.mxu1  ;;  %v7544_v35 = vpop.f32.mrf.mxu0 }
 0x200   : > { %v7546_v38 = vpop.f32.mrf.mxu1 }
 0x202   : > { %v7553_v51 = vpop.f32.mrf.mxu1 }
 0x204   : > { %5937 = vmatmul.mubr.bf16.gmra.mxu1 %v5144_v45 }
 0x205   : > { %5940 = vmatprep.mubr.bf16.mxu1 %v5145_v12 }
 0x208   : > { %v7551_v28 = vpop.f32.mrf.mxu0 }
 0x20a   : > { %v7555_v9 = vpop.f32.mrf.mxu0 }
 0x20c   : > { %v7557_v11 = vpop.f32.mrf.mxu1  ;;  %5941 = vmatmul.mubr.bf16.gmra.mxu1 %v5146_v27  ;;  %v7562_v36 = vpop.f32.mrf.mxu0 }
 0x20e   : > { %v7567_v7 = vpop.f32.mrf.mxu1  ;;  %v7569_v45 = vpop.f32.mrf.mxu0 }
 0x210   : > { %v7571_v12 = vpop.f32.mrf.mxu1 }
 0x212   : > { %v7573_v13 = vpop.f32.mrf.mxu1  ;;  %v7575_v5 = vpop.f32.mrf.mxu0 }
 0x214   : > { %v7580_v41 = vpop.f32.mrf.mxu1  ;;  %v7582_v27 = vpop.f32.mrf.mxu0 }
 0x216   : > { %v7584_v2 = vpop.f32.mrf.mxu1  ;;  %v7586_v3 = vpop.f32.mrf.mxu0 }
 0x218   : > { %v7588_v20 = vpop.f32.mrf.mxu1  ;;  %v7590_v57 = vpop.f32.mrf.mxu0 }
 0x21a   : > { %v7595_v29 = vpop.f32.mrf.mxu1  ;;  %v7597_v40 = vpop.f32.mrf.mxu0 }
 0x21c   : > { %v7599_v42 = vpop.f32.mrf.mxu1  ;;  %v7601_v17 = vpop.f32.mrf.mxu0 }
 0x21e   : > { %v7603_v49 = vpop.f32.mrf.mxu1  ;;  %v7605_v4 = vpop.f32.mrf.mxu0 }
 0x21f   : > { %8294 = vst [vmem:[#allocation8_spill] sm:$0xff] %v7605_v4 }
 0x220   : > { %v7610_v15 = vpop.f32.mrf.mxu1  ;;  %v7612_v25 = vpop.f32.mrf.mxu0 }
 0x221   : > { %8295 = vst [vmem:[#allocation9_spill] sm:$0xff] %v7612_v25 }
 0x222   : > { %v7614_v16 = vpop.f32.mrf.mxu1  ;;  %v7616_v39 = vpop.f32.mrf.mxu0 }
 0x223   : > { %8296 = vst [vmem:[#allocation10_spill] sm:$0xff] %v7614_v16  ;;  %8297 = vst [vmem:[#allocation11_spill] sm:$0xff] %v7616_v39 }
 0x224   : > { %v5690_v50 = vpop.f32.mrf.mxu1  ;;  %v7618_v30 = vpop.f32.mrf.mxu0 }
 0x225   : > { %8298 = vst [vmem:[#allocation12_spill] sm:$0xff] %v7618_v30  ;;  %v1611_v23 = vadd.f32 %v5690_v50, %v7477_v58 }
 0x226   : > { %v1602_v6 = vpop.f32.mrf.mxu1  ;;  %v7621_v53 = vpop.f32.mrf.mxu0 }
 0x227   : > { %v1603_v46 = vadd.f32 %v1602_v6, %v7487_v18  ;;  %v7625_v4 = vadd.f32 %v7493_v0, %v1611_v23 }
 0x228   : > { %v5691_v25 = vpop.f32.mrf.mxu1  ;;  %v7627_v48 = vpop.f32.mrf.mxu0 }
 0x229   : > { %v1614_v16 = vadd.f32 %v5691_v25, %v7491_v24  ;;  %v7631_v61 = vadd.f32 %v7503_v10, %v1603_v46  ;;  %v6262_v46 = vld [vmem:[%s8242_s7 + $0x10] sm:$0xff]  }
 0x22a   : > { %v1605_v39 = vpop.f32.mrf.mxu1  ;;  %v7633_v30 = vpop.f32.mrf.mxu0  ;;  %5994 = vmatprep.subr.bf16.mxu1 %v6262_v46 }
 0x22b   : > { %v1606_v58 = vadd.f32 %v1605_v39, %v7501_v59  ;;  %v7637_v50 = vadd.f32 %v7507_v44, %v1614_v16  ;;  %5995 = vmatpush3.bf16.msra.mxu1 %v6262_v46 }
 0x22c   : > { %v5694_v6 = vpop.f32.mrf.mxu1  ;;  %v7639_v18 = vpop.f32.mrf.mxu0 }
 0x22d   : > { %v1627_v23 = vadd.f32 %v5694_v6, %v7505_v31  ;;  %v7643_v0 = vadd.f32 %v7517_v22, %v1606_v58 }
 0x22e   : > { %v1618_v24 = vpop.f32.mrf.mxu1  ;;  %v7648_v10 = vpop.f32.mrf.mxu0 }
 0x22f   : > { %v1619_v59 = vadd.f32 %v1618_v24, %v7509_v1  ;;  %v7652_v44 = vadd.f32 %v7521_v63, %v1627_v23  ;;  %v6263_v63 = vld [vmem:[%s8242_s7 + $0x8] sm:$0xff]  }
 0x230   : > { %v5695_v25 = vpop.f32.mrf.mxu1  ;;  %v7654_v16 = vpop.f32.mrf.mxu0  ;;  %5996 = vmatprep.subr.bf16.mxu1 %v6263_v63 }
 0x231   : > { %v1630_v31 = vadd.f32 %v5695_v25, %v7519_v54  ;;  %v7658_v22 = vadd.f32 %v7530_v34, %v1619_v59  ;;  %5997 = vmatpush3.bf16.msra.mxu1 %v6263_v63 }
 0x232   : > { %v1621_v39 = vpop.f32.mrf.mxu1  ;;  %v7660_v58 = vpop.f32.mrf.mxu0 }
 0x233   : > { %v1622_v6 = vadd.f32 %v1621_v39, %v7525_v37  ;;  %v7664_v1 = vadd.f32 %v7534_v33, %v1630_v31 }
 0x234   : > { %v5698_v23 = vpop.f32.mrf.mxu1  ;;  %v7669_v24 = vpop.f32.mrf.mxu0 }
 0x235   : > { %v1643_v54 = vadd.f32 %v5698_v23, %v7532_v47  ;;  %v7673_v34 = vadd.f32 %v7544_v35, %v1622_v6  ;;  %v6264_v35 = vld [vmem:[%s8242_s7] sm:$0xff]  }
 0x236   : > { %v1634_v46 = vpop.f32.mrf.mxu1  ;;  %v7675_v59 = vpop.f32.mrf.mxu0  ;;  %5998 = vmatprep.subr.bf16.mxu1 %v6264_v35 }
 0x237   : > { %v1635_v37 = vadd.f32 %v1634_v46, %v7536_v56  ;;  %v7679_v33 = vadd.f32 %v7551_v28, %v1643_v54  ;;  %5999 = vmatpush3.bf16.msra.mxu1 %v6264_v35 }
 0x238   : > { %v5699_v25 = vpop.f32.mrf.mxu1  ;;  %v7681_v31 = vpop.f32.mrf.mxu0 }
 0x239   : > { %v1646_v39 = vadd.f32 %v5699_v25, %v7546_v38  ;;  %v7685_v47 = vadd.f32 %v7555_v9, %v1635_v37  ;;  %v1579_v25 = vadd.f32 %v7580_v41, %v7417_v62  ;;  %v1582_v62 = vadd.f32 %v7588_v20, %v7439_v60 }
 0x23a   : > { %v1637_v6 = vpop.f32.mrf.mxu1  ;;  %v7690_v23 = vpop.f32.mrf.mxu0 }
 0x23b   : > { %v1638_v56 = vadd.f32 %v1637_v6, %v7553_v51  ;;  %v7694_v28 = vadd.f32 %v7562_v36, %v1646_v39 }
 0x23c   : > { %v5702_v63 = vpop.f32.mrf.mxu1  ;;  %v7696_v54 = vpop.f32.mrf.mxu0 }
 0x23d   : > { %v1659_v38 = vadd.f32 %v5702_v63, %v7557_v11  ;;  %v7700_v9 = vadd.f32 %v7569_v45, %v1638_v56  ;;  %v1571_v11 = vadd.f32 %v7584_v2, %v7428_v19 }
 0x23e   : > { %v1650_v46 = vpop.f32.mrf.mxu1  ;;  %v7702_v37 = vpop.f32.mrf.mxu0 }
 0x23f   : > { %v1651_v51 = vadd.f32 %v1650_v46, %v7567_v7  ;;  %v7708_v36 = vadd.f32 %v7575_v5, %v1659_v38  ;;  %v2062_v5 = vadd.f32 %v7442_v55, %v1579_v25  ;;  %v2060_v2 = vadd.f32 %v7449_v14, %v1571_v11 }
 0x240   : > { %v5703_v39 = vpop.f32.mrf.mxu1  ;;  %v7710_v6 = vpop.f32.mrf.mxu0  ;;  %v1595_v55 = vadd.f32 %v7599_v42, %v7451_v43  ;;  %v1587_v14 = vadd.f32 %v7603_v49, %v7458_v8  ;;  %v8299_v42 = vld [vmem:[#allocation3_spill] sm:$0xff]  ;;  %v8301_v49 = vld [vmem:[#allocation4_spill] sm:$0xff] }
 0x241   : > { %v1662_v45 = vadd.f32 %v5703_v39, %v7571_v12  ;;  %v7716_v35 = vadd.f32 %v7582_v27, %v1651_v51  ;;  %v1574_v12 = vadd.f32 %v7595_v29, %v7445_v32 }
 0x242   : > { %v1653_v56 = vpop.f32.mrf.mxu1  ;;  %v7718_v63 = vpop.f32.mrf.mxu0 }
 0x243   : > { %v1654_v7 = vadd.f32 %v1653_v56, %v7573_v13  ;;  %v7725_v41 = vadd.f32 %v7586_v3, %v1662_v45  ;;  %v2063_v3 = vadd.f32 %v7456_v52, %v1582_v62  ;;  %v2061_v29 = vadd.f32 %v7463_v26, %v1574_v12  ;;  %v8300_v56 = vld [vmem:[#allocation8_spill] sm:$0xff]  ;;  %v8302_v26 = vld [vmem:[#allocation10_spill] sm:$0xff] }
 0x244   : > { %v5762_v38 = vpop.f32.mrf.mxu1  ;;  %v7727_v19 = vpop.f32.mrf.mxu0  ;;  %v1598_v52 = vadd.f32 %v7610_v15, %v7465_v21  ;;  %v2066_v45 = vadd.f32 %v8299_v42, %v1595_v55  ;;  %v8305_v55 = vld [vmem:[#allocation6_spill] sm:$0xff]  ;;  %v8307_v42 = vld [vmem:[#allocation7_spill] sm:$0xff] }
 0x245   : > { %v2496_v27 = vadd.f32 %v5762_v38, %v2062_v5  ;;  %v7733_v46 = vadd.f32 %v7590_v57, %v1654_v7  ;;  %v1590_v5 = vadd.f32 %v8302_v26, %v8301_v49  ;;  %v8303_v38 = vld [vmem:[#allocation5_spill] sm:$0xff] }
 0x246   : > { %v2399_v60 = vpop.f32.mrf.mxu1  ;;  %v7735_v20 = vpop.f32.mrf.mxu0  ;;  %v2064_v12 = vadd.f32 %v8303_v38, %v1587_v14 }
 0x247   : > { %v2494_v13 = vadd.f32 %v2399_v60, %v2060_v2  ;;  %v7741_v25 = vadd.f32 %v7597_v40, %v2496_v27  ;;  %v8304_v27 = vld [vmem:[#allocation9_spill] sm:$0xff] }
 0x248   : > { %v5763_v51 = vpop.f32.mrf.mxu1  ;;  %v7743_v32 = vpop.f32.mrf.mxu0 }
 0x249   : > { %v2497_v57 = vadd.f32 %v5763_v51, %v2063_v3  ;;  %v7749_v39 = vadd.f32 %v7601_v17, %v2494_v13  ;;  %v2067_v13 = vadd.f32 %v8305_v55, %v1598_v52  ;;  %v8306_v3 = vld [vmem:[#allocation11_spill] sm:$0xff] }
 0x24a   : > { %v2402_v11 = vpop.f32.mrf.mxu1  ;;  %v7751_v43 = vpop.f32.mrf.mxu0 }
 0x24b   : > { %v2495_v40 = vadd.f32 %v2402_v11, %v2061_v29  ;;  %v7757_v62 = vadd.f32 %v8300_v56, %v2497_v57  ;;  %v8308_v56 = vld [vmem:[#allocation12_spill] sm:$0xff] }
 0x24c   : > { %v5766_v7 = vpop.f32.mrf.mxu1  ;;  %v7759_v8 = vpop.f32.mrf.mxu0 }
 0x24d   : > { %v2500_v17 = vadd.f32 %v5766_v7, %v2066_v45  ;;  %v7765_v2 = vadd.f32 %v8304_v27, %v2495_v40  ;;  %v2065_v45 = vadd.f32 %v8307_v42, %v1590_v5 }
 0x24e   : > { %v2415_v60 = vpop.f32.mrf.mxu1  ;;  %v7767_v21 = vpop.f32.mrf.mxu0 }
 0x24f   : > { %v2498_v15 = vadd.f32 %v2415_v60, %v2064_v12  ;;  %v7771_v51 = vadd.f32 %v8306_v3, %v2500_v17 }
 0x250   : > { %v5767_v57 = vpop.f32.mrf.mxu1  ;;  %v7773_v29 = vpop.f32.mrf.mxu0 }
 0x251   : > { %v2501_v11 = vadd.f32 %v5767_v57, %v2067_v13  ;;  %v7777_v14 = vadd.f32 %v8308_v56, %v2498_v15 }
 0x252   : > { %v2418_v40 = vpop.f32.mrf.mxu1  ;;  %v7779_v7 = vpop.f32.mrf.mxu0 }
 0x253   : > { %v2499_v49 = vadd.f32 %v2418_v40, %v2065_v45  ;;  %v7782_v26 = vadd.f32 %v7621_v53, %v2501_v11 }
 0x254   : > { %v5770_v52 = vpop.f32.mrf.mxu1  ;;  %v7784_v38 = vpop.f32.mrf.mxu0 }
 0x255   : > { %v2504_v17 = vadd.f32 %v5770_v52, %v7625_v4  ;;  %v7788_v12 = vadd.f32 %v7627_v48, %v2499_v49 }
 0x256   : > { %v2431_v27 = vpop.f32.mrf.mxu1  ;;  %v7790_v5 = vpop.f32.mrf.mxu0 }
 0x257   : > { %v2502_v60 = vadd.f32 %v2431_v27, %v7631_v61  ;;  %v7794_v15 = vadd.f32 %v7633_v30, %v2504_v17 }
 0x258   : > { %v5771_v55 = vpop.f32.mrf.mxu1  ;;  %v7796_v13 = vpop.f32.mrf.mxu0 }
 0x259   : > { %v2505_v53 = vadd.f32 %v5771_v55, %v7637_v50  ;;  %v7800_v3 = vadd.f32 %v7639_v18, %v2502_v60 }
 0x25a   : > { %v2434_v4 = vpop.f32.mrf.mxu1  ;;  %v7802_v57 = vpop.f32.mrf.mxu0 }
 0x25b   : > { %v2503_v48 = vadd.f32 %v2434_v4, %v7643_v0  ;;  %v7806_v11 = vadd.f32 %v7648_v10, %v2505_v53 }
 0x25c   : > { %v5774_v61 = vpop.f32.mrf.mxu1  ;;  %v7808_v42 = vpop.f32.mrf.mxu0 }
 0x25d   : > { %v2508_v30 = vadd.f32 %v5774_v61, %v7652_v44  ;;  %v7812_v45 = vadd.f32 %v7654_v16, %v2503_v48 }
 0x25e   : > { %v2447_v50 = vpop.f32.mrf.mxu1  ;;  %v7814_v56 = vpop.f32.mrf.mxu0 }
 0x25f   : > { %v2506_v18 = vadd.f32 %v2447_v50, %v7658_v22  ;;  %v7818_v40 = vadd.f32 %v7660_v58, %v2508_v30 }
 0x260   : > { %v5775_v0 = vpop.f32.mrf.mxu1  ;;  %v7820_v49 = vpop.f32.mrf.mxu0 }
 0x261   : > { %v2509_v10 = vadd.f32 %v5775_v0, %v7664_v1  ;;  %v7824_v52 = vadd.f32 %v7669_v24, %v2506_v18 }
 0x262   : > { %v2450_v44 = vpop.f32.mrf.mxu1  ;;  %v7826_v17 = vpop.f32.mrf.mxu0 }
 0x263   : > { %8309 = vst [vmem:[#allocation3_spill] sm:$0xff] %v7826_v17  ;;  %v2507_v16 = vadd.f32 %v2450_v44, %v7673_v34  ;;  %v7830_v27 = vadd.f32 %v7675_v59, %v2509_v10 }
 0x264   : > { %v5778_v22 = vpop.f32.mrf.mxu1  ;;  %v7832_v60 = vpop.f32.mrf.mxu0 }
 0x265   : > { %8310 = vst [vmem:[#allocation8_spill] sm:$0xff] %v7832_v60  ;;  %v2512_v58 = vadd.f32 %v5778_v22, %v7679_v33  ;;  %v7836_v55 = vadd.f32 %v7681_v31, %v2507_v16 }
 0x266   : > { %v2463_v1 = vpop.f32.mrf.mxu1  ;;  %v7838_v53 = vpop.f32.mrf.mxu0 }
 0x267   : > { %8311 = vst [vmem:[#allocation4_spill] sm:$0xff] %v7838_v53  ;;  %v2510_v24 = vadd.f32 %v2463_v1, %v7685_v47  ;;  %v7842_v4 = vadd.f32 %v7690_v23, %v2512_v58 }
 0x268   : > { %v5779_v34 = vpop.f32.mrf.mxu1  ;;  %v7844_v48 = vpop.f32.mrf.mxu0 }
 0x269   : > { %8312 = vst [vmem:[#allocation10_spill] sm:$0xff] %v7842_v4  ;;  %8313 = vst [vmem:[#allocation5_spill] sm:$0xff] %v7844_v48  ;;  %v2513_v59 = vadd.f32 %v5779_v34, %v7694_v28  ;;  %v7848_v61 = vadd.f32 %v7696_v54, %v2510_v24 }
 0x26a   : > { %v2466_v33 = vpop.f32.mrf.mxu1  ;;  %v7850_v30 = vpop.f32.mrf.mxu0 }
 0x26b   : > { %8314 = vst [vmem:[#allocation9_spill] sm:$0xff] %v7848_v61  ;;  %8315 = vst [vmem:[#allocation6_spill] sm:$0xff] %v7850_v30  ;;  %v2511_v31 = vadd.f32 %v2466_v33, %v7700_v9  ;;  %v7854_v50 = vadd.f32 %v7702_v37, %v2513_v59 }
 0x26c   : > { %v5782_v47 = vpop.f32.mrf.mxu1  ;;  %v7856_v18 = vpop.f32.mrf.mxu0 }
 0x26d   : > { %8316 = vst [vmem:[#allocation11_spill] sm:$0xff] %v7854_v50  ;;  %8317 = vst [vmem:[#allocation7_spill] sm:$0xff] %v7856_v18  ;;  %v2516_v23 = vadd.f32 %v5782_v47, %v7708_v36  ;;  %v7860_v0 = vadd.f32 %v7710_v6, %v2511_v31 }
 0x26e   : > { %v2479_v28 = vpop.f32.mrf.mxu1  ;;  %v7862_v10 = vpop.f32.mrf.mxu0 }
 0x26f   : > { %8318 = vst [vmem:[#allocation12_spill] sm:$0xff] %v7860_v0  ;;  %8319 = vst [vmem:[#allocation13_spill] sm:$0xff] %v7862_v10  ;;  %v2514_v54 = vadd.f32 %v2479_v28, %v7716_v35  ;;  %v7866_v44 = vadd.f32 %v7718_v63, %v2516_v23 }
 0x270   : > { %v5783_v9 = vpop.f32.mrf.mxu1  ;;  %v7868_v16 = vpop.f32.mrf.mxu0 }
 0x271   : > { %8320 = vst [vmem:[#allocation14_spill] sm:$0xff] %v7866_v44  ;;  %8321 = vst [vmem:[#allocation15_spill] sm:$0xff] %v7868_v16  ;;  %v2517_v37 = vadd.f32 %v5783_v9, %v7725_v41  ;;  %v7872_v22 = vadd.f32 %v7727_v19, %v2514_v54 }
 0x272   : > { %v2482_v36 = vpop.f32.mrf.mxu1  ;;  %v7874_v58 = vpop.f32.mrf.mxu0 }
 0x273   : > { %8322 = vst [vmem:[#allocation16_spill] sm:$0xff] %v7872_v22  ;;  %8323 = vst [vmem:[#allocation17_spill] sm:$0xff] %v7874_v58  ;;  %v2515_v6 = vadd.f32 %v2482_v36, %v7733_v46  ;;  %v7878_v1 = vadd.f32 %v7735_v20, %v2517_v37 }
 0x274   : > { %v5842_v35 = vpop.f32.mrf.mxu1  ;;  %v7880_v24 = vpop.f32.mrf.mxu0 }
 0x275   : > { %8324 = vst [vmem:[#allocation18_spill] sm:$0xff] %v7878_v1  ;;  %8325 = vst [vmem:[#allocation19_spill] sm:$0xff] %v7880_v24  ;;  %v7883_v63 = vadd.f32 %v7743_v32, %v2515_v6  ;;  %v3156_v53 = vadd.f32 %v5842_v35, %v7741_v25  ;;  %v7944_v35 = vld [vmem:[%s8240_s5] ss:$0 sm:$0xff] }
 0x276   : > { %v3059_v34 = vpop.f32.mrf.mxu1  ;;  %v7885_v59 = vpop.f32.mrf.mxu0 }
 0x277   : > { %8326 = vst [vmem:[#allocation20_spill] sm:$0xff] %v7883_v63  ;;  %8327 = vst [vmem:[#allocation21_spill] sm:$0xff] %v7885_v59 }
 0x278   : > { %v5843_v41 = vpop.f32.mrf.mxu1  ;;  %v7887_v19 = vpop.f32.mrf.mxu0 }
 0x279   : > { %8328 = vst [vmem:[#allocation22_spill] sm:$0xff] %v7887_v19 }
 0x27a   : > { %v3062_v33 = vpop.f32.mrf.mxu1  ;;  %v5962_v31 = vpop.f32.mrf.mxu0 }
 0x27c   : > { %v5846_v47 = vpop.f32.mrf.mxu1  ;;  %v4153_v23 = vpop.f32.mrf.mxu0 }
 0x27e   : > { %v3075_v46 = vpop.f32.mrf.mxu1  ;;  %v5963_v28 = vpop.f32.mrf.mxu0 }
 0x280   : > { %v5847_v20 = vpop.f32.mrf.mxu1  ;;  %v4156_v9 = vpop.f32.mrf.mxu0 }
 0x282   : > { %v3078_v54 = vpop.f32.mrf.mxu1  ;;  %v7891_v32 = vpop.f32.mrf.mxu0 }
 0x284   : > { %v5850_v37 = vpop.f32.mrf.mxu1  ;;  %v7897_v24 = vpop.f32.mrf.mxu0 }
 0x286   : > { %v7889_v36 = vpop.f32.mrf.mxu1  ;;  %v7903_v63 = vpop.f32.mrf.mxu0 }
 0x288   : > { %v7893_v6 = vpop.f32.mrf.mxu1  ;;  %v7909_v16 = vpop.f32.mrf.mxu0 }
 0x28a   : > { %v7895_v59 = vpop.f32.mrf.mxu1  ;;  %v7915_v18 = vpop.f32.mrf.mxu0 }
 0x28c   : > { %v7899_v19 = vpop.f32.mrf.mxu1  ;;  %v7921_v50 = vpop.f32.mrf.mxu0 }
 0x28e   : > { %v7901_v58 = vpop.f32.mrf.mxu1  ;;  %v7928_v4 = vpop.f32.mrf.mxu0 }
 0x290   : > { %v7905_v1 = vpop.f32.mrf.mxu1  ;;  %v7937_v17 = vpop.f32.mrf.mxu0 }
 0x292   : > { %v7907_v22 = vpop.f32.mrf.mxu1 }
 0x293   : > { %8329 = vst [vmem:[#allocation23_spill] sm:$0xff] %v7907_v22 }
 0x294   : > { %v7911_v10 = vpop.f32.mrf.mxu1 }
 0x295   : > { %8330 = vst [vmem:[#allocation24_spill] sm:$0xff] %v7911_v10 }
 0x296   : > { %v7913_v44 = vpop.f32.mrf.mxu1 }
 0x297   : > { %8331 = vst [vmem:[#allocation25_spill] sm:$0xff] %v7913_v44  ;;  %v3154_v44 = vadd.f32 %v3059_v34, %v7749_v39  ;;  %v3160_v34 = vadd.f32 %v5846_v47, %v7771_v51  ;;  %v7957_v51 = vld [vmem:[%s8241_s6] ss:$0 sm:$0xff] }
 0x298   : > { %v7917_v30 = vpop.f32.mrf.mxu1 }
 0x299   : > { %8332 = vst [vmem:[#allocation26_spill] sm:$0xff] %v7917_v30  ;;  %v3157_v30 = vadd.f32 %v5843_v41, %v7757_v62  ;;  %v3588_v25 = vadd.f32 %v7759_v8, %v3154_v44  ;;  %v7949_v41 = vpop.f32.mrf.mxu0 }
 0x29a   : > { %v7919_v0 = vpop.f32.mrf.mxu1 }
 0x29b   : > { %8333 = vst [vmem:[#allocation27_spill] sm:$0xff] %v7919_v0  ;;  %v3590_v0 = vadd.f32 %v7751_v43, %v3156_v53  ;;  %v3591_v43 = vadd.f32 %v7767_v21, %v3157_v30  ;;  %v3158_v53 = vadd.f32 %v3075_v46, %v7777_v14  ;;  %v3594_v14 = vadd.f32 %v7779_v7, %v3160_v34 }
 0x29c   : > { %v7923_v61 = vpop.f32.mrf.mxu1 }
 0x29d   : > { %8334 = vst [vmem:[#allocation28_spill] sm:$0xff] %v7923_v61  ;;  %v3155_v61 = vadd.f32 %v3062_v33, %v7765_v2  ;;  %v3161_v33 = vadd.f32 %v5847_v20, %v7782_v26  ;;  %v3159_v20 = vadd.f32 %v3078_v54, %v7788_v12 }
 0x29e   : > { %v7925_v48 = vpop.f32.mrf.mxu1 }
 0x29f   : > { %8335 = vst [vmem:[#allocation29_spill] sm:$0xff] %v7925_v48  ;;  %v3595_v7 = vadd.f32 %v7790_v5, %v3161_v33 }
 0x2a0   : > { %v7930_v60 = vpop.f32.mrf.mxu1 }
 0x2a2   : > { %v7933_v10 = vpop.f32.mrf.mxu1 }
 0x2a3   : > { %8336 = vst [vmem:[#allocation30_spill] sm:$0xff] %v7933_v10 }
 0x2a4   : > { %v5922_v22 = vpop.f32.mrf.mxu1 }
 0x2a5   : > { %v3832_v48 = vadd.f32 %v5922_v22, %v3590_v0  ;;  %v3589_v22 = vadd.f32 %v7773_v29, %v3155_v61 }
 0x2a6   : > { %v3735_v39 = vpop.f32.mrf.mxu1 }
 0x2a7   : > { %v4250_v10 = vadd.f32 %v5962_v31, %v3832_v48  ;;  %v3830_v62 = vadd.f32 %v3735_v39, %v3588_v25  ;;  %v7960_v31 = vpop.f32.mrf.mxu0 }
 0x2a8   : > { %v5923_v2 = vpop.f32.mrf.mxu1 }
 0x2a9   : > { %v4281_v0 = vmul.f32 %v7944_v35, %v4250_v10  ;;  %v4248_v8 = vadd.f32 %v4153_v23, %v3830_v62  ;;  %v3833_v44 = vadd.f32 %v5923_v2, %v3591_v43  ;;  %v3592_v23 = vadd.f32 %v7784_v38, %v3158_v53  ;;  %v7974_v53 = vpop.f32.mrf.mxu0 }
 0x2aa   : > { %v3738_v48 = vpop.f32.mrf.mxu1  ;;  %v3162_v43 = vadd.f32 %v7889_v36, %v7800_v3  ;;  %v3165_v2 = vadd.f32 %v7893_v6, %v7806_v11  ;;  %v3163_v36 = vadd.f32 %v7895_v59, %v7812_v45 }
 0x2ab   : > { %v4251_v21 = vadd.f32 %v5963_v28, %v3833_v44  ;;  %v3831_v30 = vadd.f32 %v3738_v48, %v3589_v22  ;;  %v4279_v10 = vmul.f32 %v7944_v35, %v4248_v8  ;;  %v4312_v29 = vadd.f32 %v7957_v51, %v4281_v0 }
 0x2ac   : > { %v5926_v47 = vpop.f32.mrf.mxu1  ;;  %v3164_v28 = vadd.f32 %v5850_v37, %v7794_v15 }
 0x2ad   : > { %v4282_v26 = vmul.f32 %v7944_v35, %v4251_v21  ;;  %v4249_v61 = vadd.f32 %v4156_v9, %v3831_v30  ;;  %v3836_v46 = vadd.f32 %v5926_v47, %v3594_v14  ;;  %v4310_v12 = vadd.f32 %v7957_v51, %v4279_v10 }
 0x2ae   : > { %v3751_v25 = vpop.f32.mrf.mxu1  ;;  %v4336_v54 = vmax.f32 %v4312_v29, 0.0  ;;  %v3598_v33 = vadd.f32 %v7802_v57, %v3164_v28  ;;  %v3596_v10 = vadd.f32 %v7808_v42, %v3162_v43  ;;  %v3599_v57 = vadd.f32 %v7814_v56, %v3165_v2 }
 0x2af   : > { %v4313_v39 = vadd.f32 %v7957_v51, %v4282_v26  ;;  %v4280_v34 = vmul.f32 %v7944_v35, %v4249_v61  ;;  %v4254_v62 = vadd.f32 %v7891_v32, %v3836_v46  ;;  %v3834_v38 = vadd.f32 %v3751_v25, %v3592_v23 }
 0x2b0   : > { %v5927_v9 = vpop.f32.mrf.mxu1  ;;  %v3593_v32 = vadd.f32 %v7796_v13, %v3159_v20  ;;  %v4334_v21 = vmax.f32 %v4310_v12, 0.0  ;;  %v3168_v23 = vadd.f32 %v7899_v19, %v7818_v40  ;;  %v3166_v56 = vadd.f32 %v7901_v58, %v7824_v52  ;;  %v8338_v58 = vld [vmem:[#allocation3_spill] sm:$0xff] }
 0x2b1   : > { %v4337_v15 = vmax.f32 %v4313_v39, 0.0  ;;  %v4252_v37 = vadd.f32 %v7897_v24, %v3834_v38  ;;  %v3837_v5 = vadd.f32 %v5927_v9, %v3595_v7  ;;  %v4285_v0 = vmul.f32 %v7944_v35, %v4254_v62  ;;  %v7987_v24 = vpop.f32.mrf.mxu0 }
 0x2b2   : > { %v3754_v8 = vpop.f32.mrf.mxu1  ;;  %v4311_v3 = vadd.f32 %v7957_v51, %v4280_v34  ;;  %v3602_v9 = vadd.f32 %v8338_v58, %v3168_v23 }
 0x2b3   : > { %v4359_v44 = vpack.c.bf16 %v4337_v15, %v4336_v54  ;;  %v4255_v22 = vadd.f32 %v7903_v63, %v3837_v5  ;;  %v4283_v48 = vmul.f32 %v7944_v35, %v4252_v37  ;;  %v3835_v11 = vadd.f32 %v3754_v8, %v3593_v32  ;;  %v7999_v46 = vpop.f32.mrf.mxu0  ;;  %v8340_v32 = vld [vmem:[#allocation10_spill] sm:$0xff] }
 0x2b4   : > { %v5930_v6 = vpop.f32.mrf.mxu1  ;;  %v4335_v30 = vmax.f32 %v4311_v3, 0.0  ;;  %v4316_v45 = vadd.f32 %v7957_v51, %v4285_v0  ;;  %v8339_v0 = vld [vmem:[#allocation8_spill] sm:$0xff] }
 0x2b5   : > { %v4286_v13 = vmul.f32 %v7944_v35, %v4255_v22  ;;  %v3840_v14 = vadd.f32 %v5930_v6, %v3598_v33  ;;  %v4253_v59 = vadd.f32 %v7909_v16, %v3835_v11  ;;  %v3597_v16 = vadd.f32 %v7820_v49, %v3163_v36  ;;  %v8337_v49 = vld [vmem:[#allocation23_spill] sm:$0xff]  ;;  %v8342_v22 = vld [vmem:[#allocation4_spill] sm:$0xff] }
 0x2b6   : > { %v3767_v63 = vpop.f32.mrf.mxu1  ;;  %v4358_v47 = vpack.c.bf16 %v4335_v30, %v4334_v21  ;;  %v4314_v28 = vadd.f32 %v7957_v51, %v4283_v48  ;;  %v4340_v7 = vmax.f32 %v4316_v45, 0.0  ;;  %v3167_v38 = vadd.f32 %v8337_v49, %v7836_v55  ;;  %v8344_v45 = vld [vmem:[#allocation9_spill] sm:$0xff] }
 0x2b7   : > { %v4317_v29 = vadd.f32 %v7957_v51, %v4286_v13  ;;  %v4258_v26 = vadd.f32 %v7915_v18, %v3840_v14  ;;  %v3838_v61 = vadd.f32 %v3767_v63, %v3596_v10  ;;  %v4284_v42 = vmul.f32 %v7944_v35, %v4253_v59  ;;  %v8343_v13 = vld [vmem:[#allocation5_spill] sm:$0xff] }
 0x2b8   : > { %6000 = vmatprep.mubr.bf16.mxu1 %v4358_v47  ;;  %v5931_v20 = vpop.f32.mrf.mxu1  ;;  %v3169_v18 = vadd.f32 %v7905_v1, %v7830_v27  ;;  %v4338_v27 = vmax.f32 %v4314_v28, 0.0  ;;  %v3600_v55 = vadd.f32 %v8339_v0, %v3166_v56  ;;  %v3601_v14 = vadd.f32 %v8343_v13, %v3167_v38  ;;  %v8345_v59 = vld [vmem:[#allocation25_spill] sm:$0xff]  ;;  %v8348_v28 = vld [vmem:[#allocation12_spill] sm:$0xff]  ;;  %v8349_v56 = vld [vmem:[#allocation27_spill] sm:$0xff] }
 0x2b9   : > { %v4341_v25 = vmax.f32 %v4317_v29, 0.0  ;;  %v4256_v40 = vadd.f32 %v7921_v50, %v3838_v61  ;;  %v3841_v19 = vadd.f32 %v5931_v20, %v3599_v57  ;;  %6001 = vmatmul.mubr.bf16.vlgmr.msra.gmra.mxu1 %v4359_v44  ;;  %v4289_v39 = vmul.f32 %v7944_v35, %v4258_v26  ;;  %v8015_v50 = vpop.f32.mrf.mxu0  ;;  %v8346_v29 = vld [vmem:[#allocation11_spill] sm:$0xff]  ;;  %v8347_v26 = vld [vmem:[#allocation26_spill] sm:$0xff] }
 0x2ba   : > { %v3770_v34 = vpop.f32.mrf.mxu1  ;;  %v4315_v62 = vadd.f32 %v7957_v51, %v4284_v42  ;;  %v3603_v33 = vadd.f32 %v8342_v22, %v3169_v18  ;;  %v3170_v63 = vadd.f32 %v8345_v59, %v8344_v45  ;;  %v3173_v61 = vadd.f32 %v8347_v26, %v8346_v29  ;;  %v8350_v18 = vld [vmem:[#allocation6_spill] sm:$0xff]  ;;  %v8356_v22 = vld [vmem:[#allocation16_spill] sm:$0xff]  ;;  %v8361_v29 = vld [vmem:[#allocation17_spill] sm:$0xff] }
 0x2bb   : > { %v4259_v43 = vadd.f32 %v7928_v4, %v3841_v19  ;;  %v3839_v52 = vadd.f32 %v3770_v34, %v3597_v16  ;;  %v4287_v12 = vmul.f32 %v7944_v35, %v4256_v40  ;;  %v4361_v15 = vpack.c.bf16 %v4341_v25, %v4340_v7  ;;  %v8341_v4 = vld [vmem:[#allocation24_spill] sm:$0xff] }
 0x2bc   : > { %v5934_v54 = vpop.f32.mrf.mxu1  ;;  %v4339_v1 = vmax.f32 %v4315_v62, 0.0  ;;  %v3172_v8 = vadd.f32 %v8341_v4, %v8340_v32  ;;  %v4320_v3 = vadd.f32 %v7957_v51, %v4289_v39  ;;  %v3171_v25 = vadd.f32 %v8349_v56, %v8348_v28  ;;  %v8359_v59 = vld [vmem:[#allocation20_spill] sm:$0xff] }
 0x2bd   : > { %v4290_v37 = vmul.f32 %v7944_v35, %v4259_v43  ;;  %v4257_v5 = vadd.f32 %v7937_v17, %v3839_v52  ;;  %v3844_v2 = vadd.f32 %v5934_v54, %v3602_v9  ;;  %v5979_v17 = vpop.f32.mrf.mxu0  ;;  %v4318_v10 = vadd.f32 %v7957_v51, %v4287_v12  ;;  %v8351_v9 = vld [vmem:[#allocation7_spill] sm:$0xff]  ;;  %v8352_v54 = vld [vmem:[#allocation14_spill] sm:$0xff] }
 0x2be   : > { %v3783_v36 = vpop.f32.mrf.mxu1  ;;  %v4360_v44 = vpack.c.bf16 %v4339_v1, %v4338_v27  ;;  %v3606_v7 = vadd.f32 %v8350_v18, %v3172_v8  ;;  %v3604_v12 = vadd.f32 %v8351_v9, %v3170_v63  ;;  %v8353_v27 = vld [vmem:[#allocation28_spill] sm:$0xff]  ;;  %v8360_v63 = vld [vmem:[#allocation30_spill] sm:$0xff] }
 0x2bf   : > { %v4321_v48 = vadd.f32 %v7957_v51, %v4290_v37  ;;  %v4288_v11 = vmul.f32 %v7944_v35, %v4257_v5  ;;  %v4262_v6 = vadd.f32 %v7949_v41, %v3844_v2  ;;  %v3842_v21 = vadd.f32 %v3783_v36, %v3600_v55  ;;  %v8354_v5 = vld [vmem:[#allocation13_spill] sm:$0xff] }
 0x2c0   : > { %6004 = vmatprep.mubr.bf16.mxu1 %v4360_v44  ;;  %v5935_v30 = vpop.f32.mrf.mxu1  ;;  %v4344_v41 = vmax.f32 %v4320_v3, 0.0  ;;  %v4342_v62 = vmax.f32 %v4318_v10, 0.0  ;;  %v3607_v2 = vadd.f32 %v8354_v5, %v3173_v61  ;;  %v8355_v3 = vld [vmem:[#allocation15_spill] sm:$0xff] }
 0x2c1   : > { %v4345_v47 = vmax.f32 %v4321_v48, 0.0  ;;  %v4260_v57 = vadd.f32 %v7960_v31, %v3842_v21  ;;  %v3845_v23 = vadd.f32 %v5935_v30, %v3603_v33  ;;  %6005 = vmatmul.mubr.bf16.gmra.mxu1 %v4361_v15  ;;  %v4293_v42 = vmul.f32 %v7944_v35, %v4262_v6  ;;  %v4220_v31 = vpop.f32.mrf.mxu0  ;;  %v8357_v33 = vld [vmem:[#allocation29_spill] sm:$0xff]  ;;  %v8358_v30 = vld [vmem:[#allocation18_spill] sm:$0xff] }
 0x2c2   : > { %v3786_v20 = vpop.f32.mrf.mxu1  ;;  %v4319_v16 = vadd.f32 %v7957_v51, %v4288_v11  ;;  %v3605_v36 = vadd.f32 %v8355_v3, %v3171_v25  ;;  %v3174_v48 = vadd.f32 %v8357_v33, %v8356_v22  ;;  %v3177_v13 = vadd.f32 %v7930_v60, %v8358_v30  ;;  %v8362_v25 = vld [vmem:[#allocation19_spill] sm:$0xff] }
 0x2c3   : > { %v4263_v40 = vadd.f32 %v7974_v53, %v3845_v23  ;;  %v3843_v19 = vadd.f32 %v3786_v20, %v3601_v14  ;;  %v4291_v39 = vmul.f32 %v7944_v35, %v4260_v57  ;;  %v4363_v38 = vpack.c.bf16 %v4345_v47, %v4344_v41 }
 0x2c4   : > { %v5938_v34 = vpop.f32.mrf.mxu1  ;;  %v4343_v49 = vmax.f32 %v4319_v16, 0.0  ;;  %v3176_v53 = vadd.f32 %v8353_v27, %v8352_v54  ;;  %v4324_v1 = vadd.f32 %v7957_v51, %v4293_v42  ;;  %v3175_v47 = vadd.f32 %v8360_v63, %v8359_v59  ;;  %v5208_v59 = vld [vmem:[%s6410_s27 + $0x28] sm:$0xff] }
 0x2c5   : > { %v4294_v43 = vmul.f32 %v7944_v35, %v4263_v40  ;;  %v4261_v52 = vadd.f32 %v7987_v24, %v3843_v19  ;;  %v3848_v58 = vadd.f32 %v5938_v34, %v3606_v7  ;;  %v5982_v24 = vpop.f32.mrf.mxu0  ;;  %v4322_v44 = vadd.f32 %v7957_v51, %v4291_v39  ;;  %v8363_v7 = vld [vmem:[#allocation21_spill] sm:$0xff] }
 0x2c6   : > { %v3799_v15 = vpop.f32.mrf.mxu1  ;;  %v4362_v37 = vpack.c.bf16 %v4343_v49, %v4342_v62  ;;  %v3610_v26 = vadd.f32 %v8361_v29, %v3176_v53  ;;  %v3608_v40 = vadd.f32 %v8362_v25, %v3174_v48  ;;  %v3611_v39 = vadd.f32 %v8363_v7, %v3177_v13  ;;  %v5212_v7 = vld [vmem:[%s6410_s27 + $0x48] sm:$0xff] }
 0x2c7   : > { %v4325_v0 = vadd.f32 %v7957_v51, %v4294_v43  ;;  %v4292_v55 = vmul.f32 %v7944_v35, %v4261_v52  ;;  %v4266_v32 = vadd.f32 %v7999_v46, %v3848_v58  ;;  %v3846_v4 = vadd.f32 %v3799_v15, %v3604_v12  ;;  %v4233_v61 = vpop.f32.mrf.mxu0  ;;  %v8364_v58 = vld [vmem:[#allocation22_spill] sm:$0xff] }
 0x2c8   : > { %6008 = vmatprep.mubr.bf16.mxu1 %v4362_v37  ;;  %v5939_v8 = vpop.f32.mrf.mxu1  ;;  %v4348_v46 = vmax.f32 %v4324_v1, 0.0  ;;  %v4346_v42 = vmax.f32 %v4322_v44, 0.0 }
 0x2c9   : > { %v4349_v11 = vmax.f32 %v4325_v0, 0.0  ;;  %v4264_v6 = vadd.f32 %v8015_v50, %v3846_v4  ;;  %v3849_v21 = vadd.f32 %v5939_v8, %v3607_v2  ;;  %6009 = vmatmul.mubr.bf16.gmra.mxu1 %v4363_v38  ;;  %v4297_v14 = vmul.f32 %v7944_v35, %v4266_v32  ;;  %v5983_v43 = vpop.f32.mrf.mxu0 }
 0x2ca   : > { %v3802_v10 = vpop.f32.mrf.mxu1  ;;  %v4323_v45 = vadd.f32 %v7957_v51, %v4292_v55 }
 0x2cb   : > { %v4267_v57 = vadd.f32 %v5979_v17, %v3849_v21  ;;  %v3847_v23 = vadd.f32 %v3802_v10, %v3605_v36  ;;  %v4295_v50 = vmul.f32 %v7944_v35, %v4264_v6  ;;  %v4365_v60 = vpack.c.bf16 %v4349_v11, %v4348_v46  ;;  %v4236_v55 = vpop.f32.mrf.mxu0  ;;  %v8093_v10 = vld [vmem:[%s8244_s9] ss:$0 sm:$0xff] }
 0x2cc   : > { %v5942_v41 = vpop.f32.mrf.mxu1  ;;  %v4347_v20 = vmax.f32 %v4323_v45, 0.0  ;;  %v4328_v19 = vadd.f32 %v7957_v51, %v4297_v14 }
 0x2cd   : > { %v4298_v16 = vmul.f32 %v7944_v35, %v4267_v57  ;;  %v4265_v28 = vadd.f32 %v4220_v31, %v3847_v23  ;;  %v3852_v56 = vadd.f32 %v5942_v41, %v3610_v26  ;;  %v3609_v31 = vadd.f32 %v8364_v58, %v3175_v47  ;;  %v5206_v23 = vld [vmem:[%s6410_s27 + $0x18] sm:$0xff]  ;;  %v5209_v41 = vld [vmem:[%s6410_s27 + $0x30] sm:$0xff] }
 0x2ce   : > { %v3815_v18 = vpop.f32.mrf.mxu1  ;;  %v4364_v17 = vpack.c.bf16 %v4347_v20, %v4346_v42  ;;  %v4326_v9 = vadd.f32 %v7957_v51, %v4295_v50  ;;  %v4352_v1 = vmax.f32 %v4328_v19, 0.0 }
 0x2cf   : > { %v4329_v34 = vadd.f32 %v7957_v51, %v4298_v16  ;;  %v4296_v62 = vmul.f32 %v7944_v35, %v4265_v28  ;;  %v4270_v49 = vadd.f32 %v5982_v24, %v3852_v56  ;;  %v3850_v38 = vadd.f32 %v3815_v18, %v3608_v40  ;;  %v5207_v56 = vld [vmem:[%s6410_s27 + $0x20] sm:$0xff] }
 0x2d0   : > { %6012 = vmatprep.mubr.bf16.mxu1 %v4364_v17  ;;  %v5943_v52 = vpop.f32.mrf.mxu1  ;;  %v4350_v32 = vmax.f32 %v4326_v9, 0.0 }
 0x2d1   : > { %v4353_v12 = vmax.f32 %v4329_v34, 0.0  ;;  %v4301_v54 = vmul.f32 %v7944_v35, %v4270_v49  ;;  %v4268_v27 = vadd.f32 %v4233_v61, %v3850_v38  ;;  %v3853_v53 = vadd.f32 %v5943_v52, %v3611_v39  ;;  %6013 = vmatmul.mubr.bf16.gmra.mxu1 %v4365_v60 }
 0x2d2   : > { %v3818_v15 = vpop.f32.mrf.mxu1  ;;  %v4327_v37 = vadd.f32 %v7957_v51, %v4296_v62 }
 0x2d3   : > { %v4299_v5 = vmul.f32 %v7944_v35, %v4268_v27  ;;  %v4271_v2 = vadd.f32 %v5983_v43, %v3853_v53  ;;  %v3851_v0 = vadd.f32 %v3818_v15, %v3609_v31  ;;  %v4367_v24 = vpack.c.bf16 %v4353_v12, %v4352_v1  ;;  %v5210_v43 = vld [vmem:[%s6410_s27 + $0x38] sm:$0xff] }
 0x2d4   : > { %v4351_v4 = vmax.f32 %v4327_v37, 0.0  ;;  %v4332_v8 = vadd.f32 %v7957_v51, %v4301_v54  ;;  %v5213_v54 = vld [vmem:[%s6410_s27 + $0x50] sm:$0xff] }
 0x2d5   : > { %v4302_v3 = vmul.f32 %v7944_v35, %v4271_v2  ;;  %v4269_v36 = vadd.f32 %v4236_v55, %v3851_v0  ;;  %v4330_v48 = vadd.f32 %v7957_v51, %v4299_v5  ;;  %v5211_v5 = vld [vmem:[%s6410_s27 + $0x40] sm:$0xff] }
 0x2d6   : > { %v4366_v44 = vpack.c.bf16 %v4351_v4, %v4350_v32  ;;  %v4356_v11 = vmax.f32 %v4332_v8, 0.0 }
 0x2d7   : > { %v4333_v22 = vadd.f32 %v7957_v51, %v4302_v3  ;;  %v4300_v33 = vmul.f32 %v7944_v35, %v4269_v36  ;;  %v4354_v30 = vmax.f32 %v4330_v48, 0.0  ;;  %v8088_v35 = vld [vmem:[%s8243_s8] ss:$0 sm:$0xff] }
 0x2d8   : > { %6016 = vmatprep.mubr.bf16.mxu1 %v4366_v44 }
 0x2d9   : > { %v4357_v6 = vmax.f32 %v4333_v22, 0.0  ;;  %6017 = vmatmul.mubr.bf16.gmra.mxu1 %v4367_v24  ;;  %v4331_v21 = vadd.f32 %v7957_v51, %v4300_v33  ;;  %v5216_v24 = vld [vmem:[%s6410_s27 + $0x68] sm:$0xff]  ;;  %v5214_v33 = vld [vmem:[%s6410_s27 + $0x58] sm:$0xff] }
 0x2db   : > { %v4355_v13 = vmax.f32 %v4331_v21, 0.0  ;;  %v4369_v46 = vpack.c.bf16 %v4357_v6, %v4356_v11 }
 0x2dd   : > { %v4368_v14 = vpack.c.bf16 %v4355_v13, %v4354_v30  ;;  %v5217_v13 = vld [vmem:[%s6410_s27 + $0x70] sm:$0xff] }
 0x2df   : > { %6020 = vmatprep.mubr.bf16.mxu1 %v4368_v14 }
 0x2e1   : > { %6021 = vmatmul.mubr.bf16.gmra.mxu1 %v4369_v46 }
 0x379   : > { %v6002_v51 = vpop.f32.mrf.mxu1 }
 0x37a   : > { %v4572_v45 = vmul.f32 %v6002_v51, %v8088_v35 }
 0x37b   : > { %v4468_v63 = vpop.f32.mrf.mxu1 }
 0x37c   : > { %v4603_v47 = vadd.f32 %v8093_v10, %v4572_v45  ;;  %v4570_v57 = vmul.f32 %v8088_v35, %v4468_v63  ;;  %v5215_v63 = vld [vmem:[%s6410_s27 + $0x60] sm:$0xff] }
 0x37d   : > { %v6003_v29 = vpop.f32.mrf.mxu1 }
 0x37e   : > { %v4654_v26 = vadd.f32 %v5208_v59, %v4603_v47  ;;  %v4601_v61 = vadd.f32 %v8093_v10, %v4570_v57  ;;  %v4573_v50 = vmul.f32 %v6003_v29, %v8088_v35 }
 0x37f   : > { %v4471_v42 = vpop.f32.mrf.mxu1 }
 0x380   : > { %v4678_v20 = vmax.f32 %v4654_v26, 0.0  ;;  %v4652_v60 = vadd.f32 %v5206_v23, %v4601_v61  ;;  %v4604_v16 = vadd.f32 %v8093_v10, %v4573_v50  ;;  %v4571_v28 = vmul.f32 %v8088_v35, %v4471_v42  ;;  %v5220_v61 = vld [vmem:[%s6410_s27 + $0x88] sm:$0xff] }
 0x381   : > { %v6006_v25 = vpop.f32.mrf.mxu1 }
 0x382   : > { %4702 = vst.msk [vmem:[%s8105_s29 + $0x10] sm:$0xff] %vm444_vm1, %v4678_v20  ;;  %v4676_v40 = vmax.f32 %v4652_v60, 0.0  ;;  %v4655_v19 = vadd.f32 %v5209_v41, %v4604_v16  ;;  %v4602_v18 = vadd.f32 %v8093_v10, %v4571_v28  ;;  %v4576_v17 = vmul.f32 %v6006_v25, %v8088_v35  ;;  %v5218_v16 = vld [vmem:[%s6410_s27 + $0x78] sm:$0xff] }
 0x383   : > { %v4484_v39 = vpop.f32.mrf.mxu1 }
 0x384   : > { %4700 = vst.msk [vmem:[%s8105_s29] sm:$0xff] %vm444_vm1, %v4676_v40  ;;  %v4679_v34 = vmax.f32 %v4655_v19, 0.0  ;;  %v4653_v62 = vadd.f32 %v5207_v56, %v4602_v18  ;;  %v4607_v49 = vadd.f32 %v8093_v10, %v4576_v17  ;;  %v4574_v38 = vmul.f32 %v8088_v35, %v4484_v39  ;;  %v5221_v18 = vld [vmem:[%s6410_s27 + $0x90] sm:$0xff] }
 0x385   : > { %v6007_v52 = vpop.f32.mrf.mxu1 }
 0x386   : > { %4703 = vst.msk [vmem:[%s8105_s29 + $0x18] sm:$0xff] %vm444_vm1, %v4679_v34  ;;  %v4677_v58 = vmax.f32 %v4653_v62, 0.0  ;;  %v4658_v31 = vadd.f32 %v5212_v7, %v4607_v49  ;;  %v4605_v9 = vadd.f32 %v8093_v10, %v4574_v38  ;;  %v4577_v12 = vmul.f32 %v6007_v52, %v8088_v35  ;;  %v5219_v49 = vld [vmem:[%s6410_s27 + $0x80] sm:$0xff] }
 0x387   : > { %v4487_v27 = vpop.f32.mrf.mxu1 }
 0x388   : > { %4701 = vst.msk [vmem:[%s8105_s29 + $0x8] sm:$0xff] %vm444_vm1, %v4677_v58  ;;  %v4682_v53 = vmax.f32 %v4658_v31, 0.0  ;;  %v4656_v1 = vadd.f32 %v5210_v43, %v4605_v9  ;;  %v4608_v15 = vadd.f32 %v8093_v10, %v4577_v12  ;;  %v4575_v37 = vmul.f32 %v8088_v35, %v4487_v27  ;;  %v5224_v9 = vld [vmem:[%s6410_s27 + $0xa8] sm:$0xff] }
 0x389   : > { %v6010_v2 = vpop.f32.mrf.mxu1 }
 0x38a   : > { %4706 = vst.msk [vmem:[%s8105_s29 + $0x30] sm:$0xff] %vm444_vm1, %v4682_v53  ;;  %v4680_v0 = vmax.f32 %v4656_v1, 0.0  ;;  %v4659_v55 = vadd.f32 %v5213_v54, %v4608_v15  ;;  %v4606_v32 = vadd.f32 %v8093_v10, %v4575_v37  ;;  %v4580_v4 = vmul.f32 %v6010_v2, %v8088_v35  ;;  %v5222_v15 = vld [vmem:[%s6410_s27 + $0x98] sm:$0xff] }
 0x38b   : > { %v4500_v8 = vpop.f32.mrf.mxu1 }
 0x38c   : > { %4704 = vst.msk [vmem:[%s8105_s29 + $0x20] sm:$0xff] %vm444_vm1, %v4680_v0  ;;  %v4683_v3 = vmax.f32 %v4659_v55, 0.0  ;;  %v4657_v36 = vadd.f32 %v5211_v5, %v4606_v32  ;;  %v4611_v44 = vadd.f32 %v8093_v10, %v4580_v4  ;;  %v4578_v22 = vmul.f32 %v8088_v35, %v4500_v8  ;;  %v5225_v32 = vld [vmem:[%s6410_s27 + $0xb0] sm:$0xff] }
 0x38d   : > { %v6011_v48 = vpop.f32.mrf.mxu1 }
 0x38e   : > { %4707 = vst.msk [vmem:[%s8105_s29 + $0x38] sm:$0xff] %vm444_vm1, %v4683_v3  ;;  %v4681_v11 = vmax.f32 %v4657_v36, 0.0  ;;  %v4662_v6 = vadd.f32 %v5216_v24, %v4611_v44  ;;  %v4609_v21 = vadd.f32 %v8093_v10, %v4578_v22  ;;  %v4581_v30 = vmul.f32 %v6011_v48, %v8088_v35  ;;  %v5223_v44 = vld [vmem:[%s6410_s27 + $0xa0] sm:$0xff] }
 0x38f   : > { %v4503_v46 = vpop.f32.mrf.mxu1 }
 0x390   : > { %4705 = vst.msk [vmem:[%s8105_s29 + $0x28] sm:$0xff] %vm444_vm1, %v4681_v11  ;;  %v4686_v14 = vmax.f32 %v4662_v6, 0.0  ;;  %v4660_v51 = vadd.f32 %v5214_v33, %v4609_v21  ;;  %v4612_v45 = vadd.f32 %v8093_v10, %v4581_v30  ;;  %v4579_v59 = vmul.f32 %v8088_v35, %v4503_v46  ;;  %v5228_v21 = vld [vmem:[%s6410_s27 + $0xc8] sm:$0xff] }
 0x391   : > { %v6014_v47 = vpop.f32.mrf.mxu1 }
 0x392   : > { %4710 = vst.msk [vmem:[%s8105_s29 + $0x50] sm:$0xff] %vm444_vm1, %v4686_v14  ;;  %v4684_v57 = vmax.f32 %v4660_v51, 0.0  ;;  %v4663_v23 = vadd.f32 %v5217_v13, %v4612_v45  ;;  %v4610_v29 = vadd.f32 %v8093_v10, %v4579_v59  ;;  %v4584_v26 = vmul.f32 %v6014_v47, %v8088_v35  ;;  %v5226_v45 = vld [vmem:[%s6410_s27 + $0xb8] sm:$0xff] }
 0x393   : > { %v4516_v50 = vpop.f32.mrf.mxu1 }
 0x394   : > { %4708 = vst.msk [vmem:[%s8105_s29 + $0x40] sm:$0xff] %vm444_vm1, %v4684_v57  ;;  %v4687_v41 = vmax.f32 %v4663_v23, 0.0  ;;  %v4661_v42 = vadd.f32 %v5215_v63, %v4610_v29  ;;  %v4615_v20 = vadd.f32 %v8093_v10, %v4584_v26  ;;  %v4582_v60 = vmul.f32 %v8088_v35, %v4516_v50  ;;  %v5229_v29 = vld [vmem:[%s6410_s27 + $0xd0] sm:$0xff] }
 0x395   : > { %v6015_v28 = vpop.f32.mrf.mxu1 }
 0x396   : > { %4711 = vst.msk [vmem:[%s8105_s29 + $0x58] sm:$0xff] %vm444_vm1, %v4687_v41  ;;  %v4685_v56 = vmax.f32 %v4661_v42, 0.0  ;;  %v4666_v25 = vadd.f32 %v5220_v61, %v4615_v20  ;;  %v4613_v40 = vadd.f32 %v8093_v10, %v4582_v60  ;;  %v4585_v19 = vmul.f32 %v6015_v28, %v8088_v35  ;;  %v5227_v20 = vld [vmem:[%s6410_s27 + $0xc0] sm:$0xff] }
 0x397   : > { %v4519_v17 = vpop.f32.mrf.mxu1 }
 0x398   : > { %4709 = vst.msk [vmem:[%s8105_s29 + $0x48] sm:$0xff] %vm444_vm1, %v4685_v56  ;;  %v4690_v7 = vmax.f32 %v4666_v25, 0.0  ;;  %v4664_v39 = vadd.f32 %v5218_v16, %v4613_v40  ;;  %v4616_v34 = vadd.f32 %v8093_v10, %v4585_v19  ;;  %v4583_v62 = vmul.f32 %v8088_v35, %v4519_v17 }
 0x399   : > { %v6018_v38 = vpop.f32.mrf.mxu1 }
 0x39a   : > { %4714 = vst.msk [vmem:[%s8105_s29 + $0x70] sm:$0xff] %vm444_vm1, %v4690_v7  ;;  %v4688_v43 = vmax.f32 %v4664_v39, 0.0  ;;  %v4667_v52 = vadd.f32 %v5221_v18, %v4616_v34  ;;  %v4614_v58 = vadd.f32 %v8093_v10, %v4583_v62  ;;  %v4588_v31 = vmul.f32 %v6018_v38, %v8088_v35 }
 0x39b   : > { %v4532_v12 = vpop.f32.mrf.mxu1 }
 0x39c   : > { %4712 = vst.msk [vmem:[%s8105_s29 + $0x60] sm:$0xff] %vm444_vm1, %v4688_v43  ;;  %v4691_v54 = vmax.f32 %v4667_v52, 0.0  ;;  %v4665_v27 = vadd.f32 %v5219_v49, %v4614_v58  ;;  %v4619_v53 = vadd.f32 %v8093_v10, %v4588_v31  ;;  %v4586_v1 = vmul.f32 %v8088_v35, %v4532_v12 }
 0x39d   : > { %v6019_v37 = vpop.f32.mrf.mxu1 }
 0x39e   : > { %4715 = vst.msk [vmem:[%s8105_s29 + $0x78] sm:$0xff] %vm444_vm1, %v4691_v54  ;;  %v4689_v5 = vmax.f32 %v4665_v27, 0.0  ;;  %v4670_v2 = vadd.f32 %v5224_v9, %v4619_v53  ;;  %v4617_v0 = vadd.f32 %v8093_v10, %v4586_v1  ;;  %v4589_v55 = vmul.f32 %v6019_v37, %v8088_v35 }
 0x39f   : > { %v4535_v4 = vpop.f32.mrf.mxu1 }
 0x3a0   : > { %4713 = vst.msk [vmem:[%s8105_s29 + $0x68] sm:$0xff] %vm444_vm1, %v4689_v5  ;;  %v4694_v24 = vmax.f32 %v4670_v2, 0.0  ;;  %v4668_v8 = vadd.f32 %v5222_v15, %v4617_v0  ;;  %v4620_v3 = vadd.f32 %v8093_v10, %v4589_v55  ;;  %v4587_v36 = vmul.f32 %v8088_v35, %v4535_v4 }
 0x3a1   : > { %v6022_v22 = vpop.f32.mrf.mxu1 }
 0x3a2   : > { %4718 = vst.msk [vmem:[%s8105_s29 + $0x90] sm:$0xff] %vm444_vm1, %v4694_v24  ;;  %v4692_v33 = vmax.f32 %v4668_v8, 0.0  ;;  %v4671_v48 = vadd.f32 %v5225_v32, %v4620_v3  ;;  %v4618_v11 = vadd.f32 %v8093_v10, %v4587_v36  ;;  %v4592_v6 = vmul.f32 %v6022_v22, %v8088_v35 }
 0x3a3   : > { %v4548_v30 = vpop.f32.mrf.mxu1 }
 0x3a4   : > { %4716 = vst.msk [vmem:[%s8105_s29 + $0x80] sm:$0xff] %vm444_vm1, %v4692_v33  ;;  %v4695_v13 = vmax.f32 %v4671_v48, 0.0  ;;  %v4669_v46 = vadd.f32 %v5223_v44, %v4618_v11  ;;  %v4623_v14 = vadd.f32 %v8093_v10, %v4592_v6  ;;  %v4590_v51 = vmul.f32 %v8088_v35, %v4548_v30 }
 0x3a5   : > { %v6023_v59 = vpop.f32.mrf.mxu1 }
 0x3a6   : > { %4719 = vst.msk [vmem:[%s8105_s29 + $0x98] sm:$0xff] %vm444_vm1, %v4695_v13  ;;  %v4693_v63 = vmax.f32 %v4669_v46, 0.0  ;;  %v4674_v47 = vadd.f32 %v5228_v21, %v4623_v14  ;;  %v4621_v57 = vadd.f32 %v8093_v10, %v4590_v51  ;;  %v4593_v23 = vmul.f32 %v6023_v59, %v8088_v35 }
 0x3a7   : > { %v4551_v26 = vpop.f32.mrf.mxu1 }
 0x3a8   : > { %4717 = vst.msk [vmem:[%s8105_s29 + $0x88] sm:$0xff] %vm444_vm1, %v4693_v63  ;;  %v4698_v61 = vmax.f32 %v4674_v47, 0.0  ;;  %v4672_v50 = vadd.f32 %v5226_v45, %v4621_v57  ;;  %v4624_v41 = vadd.f32 %v8093_v10, %v4593_v23  ;;  %v4591_v42 = vmul.f32 %v8088_v35, %v4551_v26 }
 0x3aa   : > { %4722 = vst.msk [vmem:[%s8105_s29 + $0xb0] sm:$0xff] %vm444_vm1, %v4698_v61  ;;  %v4696_v60 = vmax.f32 %v4672_v50, 0.0  ;;  %v4675_v16 = vadd.f32 %v5229_v29, %v4624_v41  ;;  %v4622_v28 = vadd.f32 %v8093_v10, %v4591_v42 }
 0x3ac   : > { %4720 = vst.msk [vmem:[%s8105_s29 + $0xa0] sm:$0xff] %vm444_vm1, %v4696_v60  ;;  %v4699_v56 = vmax.f32 %v4675_v16, 0.0  ;;  %v4673_v25 = vadd.f32 %v5227_v20, %v4622_v28 }
 0x3ae   : > { %4723 = vst.msk [vmem:[%s8105_s29 + $0xb8] sm:$0xff] %vm444_vm1, %v4699_v56  ;;  %v4697_v40 = vmax.f32 %v4673_v25, 0.0 }
 0x3b0   : > { %4721 = vst.msk [vmem:[%s8105_s29 + $0xa8] sm:$0xff] %vm444_vm1, %v4697_v40 }
 0x3b1 PF: > { %s20_s17 = sadd.s32 1, %s6305_s17   ;;  %s8365_s13 = smov %s6297_s15 }
 0x3b2   : > { %p17_p7 = scmp.ge.s32.totalorder %s20_s17, 6   ;;  %s8366_s14 = smov %s6301_s16 }
 0x3b3   : > { %s8367_s15 = smov %s8370_s18  ;;  %s8368_s16 = smov %s8374_s19 }
 0x3b4   :  { %19 = sbr.rel (!%p17_p7) target bundleno = 3 (0x3), region = 100 }

</bundles_post_ra>
